<compile_context>
chip_gen: v6e
topology: v6e:2x2x1
jax: 0.10.0
libtpu: 0.0.40
codegen_flags: <defaults>
</compile_context>

<pallas_src>
import jax
import jax.numpy as jnp
from jax.experimental import pallas as pl
from jax.experimental.pallas import tpu as pltpu


# ----------------------------------------------------------------------------
# Single fused kernel: conv1+pool -> fir block (x2, collapsed 3x3) -> conv5
#                      -> pool -> fc1 -> fc2 -> fc3
# Layout: channels on sublanes (16), flat spatial index on lanes.
# ----------------------------------------------------------------------------
def _mynet_kernel(a_ref, w1_ref, b1_ref, meff_ref, bf_ref, m5_ref, b5_ref,
                  sel_ref, wfc1_ref, bfc1_ref, wfc2_ref, bfc2_ref,
                  wfc3_ref, bfc3_ref, out_ref, ga_ref, gb_ref):
    f32, bf16 = jnp.float32, jnp.bfloat16

    # ---- conv1 (5x5 valid, 3->16) + ReLU + 2x2 max-pool ---------------------
    # a_ref[0, q] holds lane-dense im2col patches of pool quadrant q:
    # [75, 196] with lane s = 14*i + j over the pooled 14x14 grid, so pooling
    # is an elementwise max of the four quadrant matmul results.
    w1t = w1_ref[...]                                          # [16, 75] bf16
    b1 = b1_ref[...]                                           # [16, 1]  f32
    h = None
    for q in range(4):
        acc = jnp.dot(w1t, a_ref[0, q], preferred_element_type=f32) + b1
        acc = jnp.maximum(acc, 0.0)
        h = acc if h is None else jnp.maximum(h, acc)          # [16, 196] f32

    # ---- scatter pooled 14x14 (pitch 14) into zero-padded 16x16 grid --------
    # grid lane = 16*(i+1) + (j+1); ring lanes stay exactly zero (required by
    # the collapsed fir conv / exact bias field).
    ga_ref[...] = jnp.zeros_like(ga_ref)
    for i in range(14):
        ga_ref[:, 17 + 16 * i: 31 + 16 * i] = h[:, 14 * i: 14 * i + 14]
    ga = ga_ref[...]                                           # [16, 256] f32
    ghb = ga.astype(bf16)                                      # cast once
    hres = ga[:, 17:239]                                       # f32 residual

    bias222 = bf_ref[...][:, 17:239]                           # [16, 222] f32

    # valid window lanes (s = 16i + j with j < 14) for masked grid stores
    lane = jax.lax.broadcasted_iota(jnp.int32, (16, 222), 1)
    keep = (lane & 15) < 14

    # ---- fir block: collapsed 3x3 conv (16->16, SAME) applied twice ---------
    def fir(grid_bf):                                          # [16,256] bf16
        acc = bias222
        for t in range(9):
            off = (t // 3 - 1) * 16 + (t % 3 - 1)
            win = grid_bf[:, 17 + off: 239 + off]              # [16,222] bf16
            acc = acc + jnp.dot(meff_ref[t], win, preferred_element_type=f32)
        return acc                                             # [16,222] f32

    def to_grid(z):
        # masked interior store into a zeroed bf16 padded grid
        gb_ref[...] = jnp.zeros_like(gb_ref)
        gb_ref[:, 17:239] = jnp.where(keep, z, 0.0).astype(bf16)
        return gb_ref[...]                                     # [16,256] bf16

    z1 = jnp.maximum(fir(ghb), 0.0)                  # relu(conv4(conv3(conv2)))
    g1 = to_grid(z1)
    z2 = jnp.maximum(fir(g1) + hres, 0.0)            # relu(h + block(block(h)))
    g2 = to_grid(z2)

    # ---- conv5 (5x5 valid, 16->16): output lane m = 16*oh + ow --------------
    acc5 = jnp.zeros((16, 160), f32) + b5_ref[...]
    for t in range(25):
        st = 17 + (t // 5) * 16 + (t % 5)
        acc5 = acc5 + jnp.dot(m5_ref[t], g2[:, st: st + 160],
                              preferred_element_type=f32)

    # ---- 2x2 max-pool of the 10x10 conv5 output (valid lanes: ow < 10) ------
    v = jnp.maximum(acc5[:, 0:144], acc5[:, 16:160])           # vertical pairs
    hm = jnp.maximum(v[:, 0:143], v[:, 1:144])                 # [16,143]; pooled
    # values sit at lanes 32*i + 2*j

    # ---- fc1 -> fc2 -> fc3 (fused epilogue) ---------------------------------
    # lane compaction via 0/1 selection matmul; NCHW flatten folded into the
    # per-channel fc1 weight slabs -> no reshape/transpose needed.
    pc = jnp.dot(hm.astype(bf16), sel_ref[...], preferred_element_type=f32)  # [16,32]
    y = bfc1_ref[...]                                          # [1,120]
    for c in range(16):
        y = y + jnp.dot(pc[c:c + 1, :].astype(bf16), wfc1_ref[c],
                        preferred_element_type=f32)
    y = jnp.maximum(y, 0.0)
    y = jnp.dot(y.astype(bf16), wfc2_ref[...], preferred_element_type=f32) + bfc2_ref[...]
    y = jnp.maximum(y, 0.0)
    y = jnp.dot(y.astype(bf16), wfc3_ref[...], preferred_element_type=f32) + bfc3_ref[...]
    out_ref[0] = y                                             # [1,10]


# ----------------------------------------------------------------------------
# Forward pass (mirrors MyNet.forward)
# ----------------------------------------------------------------------------
def mynet_forward(params, x_nchw):
    f32, bf16 = jnp.float32, jnp.bfloat16
    B = x_nchw.shape[0]
    assert x_nchw.shape[1:] == (3, 32, 32)
    x = jnp.transpose(x_nchw, (0, 2, 3, 1))                    # NHWC [B,32,32,3]

    # ----------------- trace-time / XLA-side parameter transforms ------------
    w1, b1 = params["conv1"]                                   # [16,3,5,5],[16]
    W1T = jnp.transpose(w1, (0, 2, 3, 1)).reshape(16, 75).astype(bf16)
    b1c = b1.reshape(16, 1).astype(f32)

    w2, b2 = params["conv2"]                                   # [4,16,1,1]
    w3, b3 = params["conv3"]                                   # [4,4,3,3]
    w4, b4 = params["conv4"]                                   # [16,4,1,1]
    M2 = w2.reshape(4, 16).T                                   # [16,4]
    M3 = jnp.transpose(w3, (2, 3, 1, 0))                       # [3,3,4in,4out]
    M4 = w4.reshape(16, 4).T                                   # [4,16]
    # collapsed per-tap 16->16 weights of conv4(conv3(conv2(.))), transposed
    # for the lane-dense layout (out-channels first)
    MeffT = jnp.einsum("ia,yxab,bo->yxoi", M2, M3, M4).reshape(9, 16, 16).astype(bf16)
    # exact bias field (conv3's zero padding makes the b2 term position dependent)
    up = jnp.pad(jnp.broadcast_to(b2, (14, 14, 4)), ((1, 1), (1, 1), (0, 0)))
    v = jnp.broadcast_to(b3, (14, 14, 4))
    for dy in range(3):
        for dx in range(3):
            v = v + up[dy:dy + 14, dx:dx + 14, :] @ M3[dy, dx]
    bias_field = v @ M4 + b4                                   # [14,14,16]
    BFT = (jnp.zeros((16, 16, 16), f32).at[1:15, 1:15, :].set(bias_field)
           .reshape(256, 16).T)                                # [16,256]

    w5, b5 = params["conv5"]                                   # [16,16,5,5]
    M5T = jnp.transpose(w5, (2, 3, 0, 1)).reshape(25, 16, 16).astype(bf16)
    b5c = b5.reshape(16, 1).astype(f32)

    fw1, fb1 = params["fc1"]                                   # [120,400]
    fw2, fb2 = params["fc2"]                                   # [84,120]
    fw3, fb3 = params["fc3"]                                   # [10,84]
    # pooled value for (i,j) sits at hm lane 32*i + 2*j
    sel = (32 * jnp.arange(5)[:, None] + 2 * jnp.arange(5)[None, :]).reshape(25)
    S = jnp.zeros((143, 32), f32).at[sel, jnp.arange(25)].set(1.0).astype(bf16)
    # torch NCHW flatten (c*25 + p) folded into per-channel fc1 weight slabs
    w3d = fw1.reshape(120, 16, 25).transpose(1, 2, 0)          # [16,25,120]
    WFC1 = jnp.zeros((16, 32, 120), f32).at[:, :25, :].set(w3d).astype(bf16)
    WFC2 = fw2.T.astype(bf16)
    WFC3 = fw3.T.astype(bf16)

    # ----------------- conv1 im2col, quadrant-ordered, lane-dense ------------
    # TODO(synk): build these patches in-kernel from the raw bf16 image to cut
    # HBM input traffic ~20x (A1T is 115 KB/image vs 6 KB raw).
    pats = jnp.stack([x[:, dy:dy + 28, dx:dx + 28, :]
                      for dy in range(5) for dx in range(5)], axis=3)  # [B,28,28,25,3]
    pats = pats.reshape(B, 28, 28, 75)
    pats = pats.reshape(B, 14, 2, 14, 2, 75).transpose(0, 2, 4, 5, 1, 3)
    A1T = pats.reshape(B, 4, 75, 196).astype(bf16)             # [B,4,75,196]

    out = pl.pallas_call(
        _mynet_kernel,
        out_shape=jax.ShapeDtypeStruct((B, 1, 10), f32),
        grid=(B,),
        in_specs=[
            pl.BlockSpec((1, 4, 75, 196), lambda b: (b, 0, 0, 0)),
            pl.BlockSpec((16, 75), lambda b: (0, 0)),
            pl.BlockSpec((16, 1), lambda b: (0, 0)),
            pl.BlockSpec((9, 16, 16), lambda b: (0, 0, 0)),
            pl.BlockSpec((16, 256), lambda b: (0, 0)),
            pl.BlockSpec((25, 16, 16), lambda b: (0, 0, 0)),
            pl.BlockSpec((16, 1), lambda b: (0, 0)),
            pl.BlockSpec((143, 32), lambda b: (0, 0)),
            pl.BlockSpec((16, 32, 120), lambda b: (0, 0, 0)),
            pl.BlockSpec((1, 120), lambda b: (0, 0)),
            pl.BlockSpec((120, 84), lambda b: (0, 0)),
            pl.BlockSpec((1, 84), lambda b: (0, 0)),
            pl.BlockSpec((84, 10), lambda b: (0, 0)),
            pl.BlockSpec((1, 10), lambda b: (0, 0)),
        ],
        out_specs=pl.BlockSpec((1, 1, 10), lambda b: (b, 0, 0)),
        scratch_shapes=[pltpu.VMEM((16, 256), f32),    # padded h grid (f32, residual)
                        pltpu.VMEM((16, 256), bf16)],  # padded fir/conv5 grid (bf16)
        compiler_params=pltpu.CompilerParams(
            dimension_semantics=("parallel",),
            vmem_limit_bytes=32 * 1024 * 1024),
    )(A1T, W1T, b1c, MeffT, BFT, M5T, b5c, S, WFC1,
      fb1.reshape(1, 120).astype(f32),
      WFC2, fb2.reshape(1, 84).astype(f32),
      WFC3, fb3.reshape(1, 10).astype(f32))
    return out.reshape(B, 10)


# ----------------------------------------------------------------------------
# Parameter init (deterministic, PyTorch-default-style uniform(-1/sqrt(fan_in)))
# ----------------------------------------------------------------------------
def _init_conv(key, out_c, in_c, k):
    kw, kb = jax.random.split(key)
    bound = 1.0 / (in_c * k * k) ** 0.5
    w = jax.random.uniform(kw, (out_c, in_c, k, k), jnp.float32, -bound, bound)
    b = jax.random.uniform(kb, (out_c,), jnp.float32, -bound, bound)
    return w, b


def _init_linear(key, out_f, in_f):
    kw, kb = jax.random.split(key)
    bound = 1.0 / in_f ** 0.5
    w = jax.random.uniform(kw, (out_f, in_f), jnp.float32, -bound, bound)
    b = jax.random.uniform(kb, (out_f,), jnp.float32, -bound, bound)
    return w, b


def init_params(key):
    ks = jax.random.split(key, 8)
    return {
        "conv1": _init_conv(ks[0], 16, 3, 5),
        "conv2": _init_conv(ks[1], 4, 16, 1),
        "conv3": _init_conv(ks[2], 4, 4, 3),
        "conv4": _init_conv(ks[3], 16, 4, 1),
        "conv5": _init_conv(ks[4], 16, 16, 5),
        "fc1": _init_linear(ks[5], 120, 16 * 5 * 5),
        "fc2": _init_linear(ks[6], 84, 120),
        "fc3": _init_linear(ks[7], 10, 84),
    }


if __name__ == "__main__":
    key = jax.random.PRNGKey(0)
    k_param, k_x = jax.random.split(key)
    params = init_params(k_param)
    # Input implied by fc1 = 16*5*5: 3x32x32 images. Small batch = 2 (even, so
    # v7x's two TensorCores each take one grid step).
    x = jax.random.normal(k_x, (2, 3, 32, 32), jnp.float32)

    out = jax.jit(mynet_forward)(params, x)
    out = jax.block_until_ready(out)
    assert out.shape == (2, 10) and out.dtype == jnp.float32
    print("KERNEL_OK")
</pallas_src>

<mosaic_0001>
module attributes {stable_mosaic.version = 11 : i64} {
  func.func @_mynet_kernel(%arg0: i32, %arg1: memref<1x4x75x196xbf16, #tpu.memory_space<vmem>>, %arg2: memref<16x75xbf16, #tpu.memory_space<vmem>>, %arg3: memref<16x1xf32, #tpu.memory_space<vmem>>, %arg4: memref<9x16x16xbf16, #tpu.memory_space<vmem>>, %arg5: memref<16x256xf32, #tpu.memory_space<vmem>>, %arg6: memref<25x16x16xbf16, #tpu.memory_space<vmem>>, %arg7: memref<16x1xf32, #tpu.memory_space<vmem>>, %arg8: memref<143x32xbf16, #tpu.memory_space<vmem>>, %arg9: memref<16x32x120xbf16, #tpu.memory_space<vmem>>, %arg10: memref<1x120xf32, #tpu.memory_space<vmem>>, %arg11: memref<120x84xbf16, #tpu.memory_space<vmem>>, %arg12: memref<1x84xf32, #tpu.memory_space<vmem>>, %arg13: memref<84x10xbf16, #tpu.memory_space<vmem>>, %arg14: memref<1x10xf32, #tpu.memory_space<vmem>>, %arg15: memref<1x1x10xf32, #tpu.memory_space<vmem>>, %arg16: memref<16x256xf32, #tpu.memory_space<vmem>>, %arg17: memref<16x256xbf16, #tpu.memory_space<vmem>>) attributes {dimension_semantics = [#tpu.dimension_semantics<parallel>], iteration_bounds = array<i64: 2>, scalar_prefetch = 0 : i64, scratch_operands = 2 : i64, tpu.core_type = #tpu.core_type<tc>, window_params = [{transform_indices = @transform_0, window_bounds = array<i64: 1, 4, 75, 196>}, {pipeline_mode = #tpu.pipeline_mode<synchronous>, transform_indices = @transform_1, window_bounds = array<i64: 16, 75>}, {pipeline_mode = #tpu.pipeline_mode<synchronous>, transform_indices = @transform_2, window_bounds = array<i64: 16, 1>}, {pipeline_mode = #tpu.pipeline_mode<synchronous>, transform_indices = @transform_3, window_bounds = array<i64: 9, 16, 16>}, {pipeline_mode = #tpu.pipeline_mode<synchronous>, transform_indices = @transform_4, window_bounds = array<i64: 16, 256>}, {pipeline_mode = #tpu.pipeline_mode<synchronous>, transform_indices = @transform_5, window_bounds = array<i64: 25, 16, 16>}, {pipeline_mode = #tpu.pipeline_mode<synchronous>, transform_indices = @transform_6, window_bounds = array<i64: 16, 1>}, {pipeline_mode = #tpu.pipeline_mode<synchronous>, transform_indices = @transform_7, window_bounds = array<i64: 143, 32>}, {pipeline_mode = #tpu.pipeline_mode<synchronous>, transform_indices = @transform_8, window_bounds = array<i64: 16, 32, 120>}, {pipeline_mode = #tpu.pipeline_mode<synchronous>, transform_indices = @transform_9, window_bounds = array<i64: 1, 120>}, {pipeline_mode = #tpu.pipeline_mode<synchronous>, transform_indices = @transform_10, window_bounds = array<i64: 120, 84>}, {pipeline_mode = #tpu.pipeline_mode<synchronous>, transform_indices = @transform_11, window_bounds = array<i64: 1, 84>}, {pipeline_mode = #tpu.pipeline_mode<synchronous>, transform_indices = @transform_12, window_bounds = array<i64: 84, 10>}, {pipeline_mode = #tpu.pipeline_mode<synchronous>, transform_indices = @transform_13, window_bounds = array<i64: 1, 10>}, {transform_indices = @transform_14, window_bounds = array<i64: 1, 1, 10>}]} {
    %c0 = arith.constant 0 : index
    %c0_0 = arith.constant 0 : index
    %0 = vector.load %arg2[%c0, %c0_0] : memref<16x75xbf16, #tpu.memory_space<vmem>>, vector<16x75xbf16>
    %c0_1 = arith.constant 0 : index
    %c0_2 = arith.constant 0 : index
    %1 = vector.load %arg3[%c0_1, %c0_2] : memref<16x1xf32, #tpu.memory_space<vmem>>, vector<16x1xf32>
    %c0_3 = arith.constant 0 : index
    %c0_4 = arith.constant 0 : index
    %c0_5 = arith.constant 0 : index
    %c0_6 = arith.constant 0 : index
    %2 = vector.load %arg1[%c0_3, %c0_4, %c0_5, %c0_6] : memref<1x4x75x196xbf16, #tpu.memory_space<vmem>>, vector<1x1x75x196xbf16>
    %3 = vector.shape_cast %2 : vector<1x1x75x196xbf16> to vector<75x196xbf16>
    %cst = arith.constant dense<0.000000e+00> : vector<16x196xf32>
    %4 = tpu.matmul %0, %3, %cst {dimension_numbers = #tpu.dot_dimension_numbers<[1], [0], [0], [1], [0, 0, 1, 1], [], []>} : vector<16x75xbf16>, vector<75x196xbf16>, vector<16x196xf32> -> vector<16x196xf32>
    %5 = vector.broadcast %1 : vector<16x1xf32> to vector<16x196xf32>
    %6 = arith.addf %4, %5 : vector<16x196xf32>
    %cst_7 = arith.constant 0.000000e+00 : f32
    %7 = vector.broadcast %cst_7 : f32 to vector<16x196xf32>
    %8 = arith.maximumf %6, %7 : vector<16x196xf32>
    %c0_8 = arith.constant 0 : index
    %c1 = arith.constant 1 : index
    %c0_9 = arith.constant 0 : index
    %c0_10 = arith.constant 0 : index
    %9 = vector.load %arg1[%c0_8, %c1, %c0_9, %c0_10] : memref<1x4x75x196xbf16, #tpu.memory_space<vmem>>, vector<1x1x75x196xbf16>
    %10 = vector.shape_cast %9 : vector<1x1x75x196xbf16> to vector<75x196xbf16>
    %cst_11 = arith.constant dense<0.000000e+00> : vector<16x196xf32>
    %11 = tpu.matmul %0, %10, %cst_11 {dimension_numbers = #tpu.dot_dimension_numbers<[1], [0], [0], [1], [0, 0, 1, 1], [], []>} : vector<16x75xbf16>, vector<75x196xbf16>, vector<16x196xf32> -> vector<16x196xf32>
    %12 = vector.broadcast %1 : vector<16x1xf32> to vector<16x196xf32>
    %13 = arith.addf %11, %12 : vector<16x196xf32>
    %cst_12 = arith.constant 0.000000e+00 : f32
    %14 = vector.broadcast %cst_12 : f32 to vector<16x196xf32>
    %15 = arith.maximumf %13, %14 : vector<16x196xf32>
    %16 = arith.maximumf %8, %15 : vector<16x196xf32>
    %c0_13 = arith.constant 0 : index
    %c2 = arith.constant 2 : index
    %c0_14 = arith.constant 0 : index
    %c0_15 = arith.constant 0 : index
    %17 = vector.load %arg1[%c0_13, %c2, %c0_14, %c0_15] : memref<1x4x75x196xbf16, #tpu.memory_space<vmem>>, vector<1x1x75x196xbf16>
    %18 = vector.shape_cast %17 : vector<1x1x75x196xbf16> to vector<75x196xbf16>
    %cst_16 = arith.constant dense<0.000000e+00> : vector<16x196xf32>
    %19 = tpu.matmul %0, %18, %cst_16 {dimension_numbers = #tpu.dot_dimension_numbers<[1], [0], [0], [1], [0, 0, 1, 1], [], []>} : vector<16x75xbf16>, vector<75x196xbf16>, vector<16x196xf32> -> vector<16x196xf32>
    %20 = vector.broadcast %1 : vector<16x1xf32> to vector<16x196xf32>
    %21 = arith.addf %19, %20 : vector<16x196xf32>
    %cst_17 = arith.constant 0.000000e+00 : f32
    %22 = vector.broadcast %cst_17 : f32 to vector<16x196xf32>
    %23 = arith.maximumf %21, %22 : vector<16x196xf32>
    %24 = arith.maximumf %16, %23 : vector<16x196xf32>
    %c0_18 = arith.constant 0 : index
    %c3 = arith.constant 3 : index
    %c0_19 = arith.constant 0 : index
    %c0_20 = arith.constant 0 : index
    %25 = vector.load %arg1[%c0_18, %c3, %c0_19, %c0_20] : memref<1x4x75x196xbf16, #tpu.memory_space<vmem>>, vector<1x1x75x196xbf16>
    %26 = vector.shape_cast %25 : vector<1x1x75x196xbf16> to vector<75x196xbf16>
    %cst_21 = arith.constant dense<0.000000e+00> : vector<16x196xf32>
    %27 = tpu.matmul %0, %26, %cst_21 {dimension_numbers = #tpu.dot_dimension_numbers<[1], [0], [0], [1], [0, 0, 1, 1], [], []>} : vector<16x75xbf16>, vector<75x196xbf16>, vector<16x196xf32> -> vector<16x196xf32>
    %28 = vector.broadcast %1 : vector<16x1xf32> to vector<16x196xf32>
    %29 = arith.addf %27, %28 : vector<16x196xf32>
    %cst_22 = arith.constant 0.000000e+00 : f32
    %30 = vector.broadcast %cst_22 : f32 to vector<16x196xf32>
    %31 = arith.maximumf %29, %30 : vector<16x196xf32>
    %32 = arith.maximumf %24, %31 : vector<16x196xf32>
    %cst_23 = arith.constant 0.000000e+00 : f32
    %33 = vector.broadcast %cst_23 : f32 to vector<16x256xf32>
    %c0_24 = arith.constant 0 : index
    %c0_25 = arith.constant 0 : index
    %34 = vector.load %arg16[%c0_24, %c0_25] : memref<16x256xf32, #tpu.memory_space<vmem>>, vector<16x256xf32>
    tpu.vector_store %arg16[%c0_24, %c0_25], %33 {strides = array<i32>} : memref<16x256xf32, #tpu.memory_space<vmem>>, vector<16x256xf32>,
    %35 = vector.extract_strided_slice %32 {offsets = [0, 0], sizes = [16, 14], strides = [1, 1]} : vector<16x196xf32> to vector<16x14xf32>
    %c0_26 = arith.constant 0 : index
    %c17 = arith.constant 17 : index
    %36 = vector.load %arg16[%c0_26, %c17] : memref<16x256xf32, #tpu.memory_space<vmem>>, vector<16x14xf32>
    tpu.vector_store %arg16[%c0_26, %c17], %35 {strides = array<i32>} : memref<16x256xf32, #tpu.memory_space<vmem>>, vector<16x14xf32>,
    %37 = vector.extract_strided_slice %32 {offsets = [0, 14], sizes = [16, 14], strides = [1, 1]} : vector<16x196xf32> to vector<16x14xf32>
    %c0_27 = arith.constant 0 : index
    %c33 = arith.constant 33 : index
    %38 = vector.load %arg16[%c0_27, %c33] : memref<16x256xf32, #tpu.memory_space<vmem>>, vector<16x14xf32>
    tpu.vector_store %arg16[%c0_27, %c33], %37 {strides = array<i32>} : memref<16x256xf32, #tpu.memory_space<vmem>>, vector<16x14xf32>,
    %39 = vector.extract_strided_slice %32 {offsets = [0, 28], sizes = [16, 14], strides = [1, 1]} : vector<16x196xf32> to vector<16x14xf32>
    %c0_28 = arith.constant 0 : index
    %c49 = arith.constant 49 : index
    %40 = vector.load %arg16[%c0_28, %c49] : memref<16x256xf32, #tpu.memory_space<vmem>>, vector<16x14xf32>
    tpu.vector_store %arg16[%c0_28, %c49], %39 {strides = array<i32>} : memref<16x256xf32, #tpu.memory_space<vmem>>, vector<16x14xf32>,
    %41 = vector.extract_strided_slice %32 {offsets = [0, 42], sizes = [16, 14], strides = [1, 1]} : vector<16x196xf32> to vector<16x14xf32>
    %c0_29 = arith.constant 0 : index
    %c65 = arith.constant 65 : index
    %42 = vector.load %arg16[%c0_29, %c65] : memref<16x256xf32, #tpu.memory_space<vmem>>, vector<16x14xf32>
    tpu.vector_store %arg16[%c0_29, %c65], %41 {strides = array<i32>} : memref<16x256xf32, #tpu.memory_space<vmem>>, vector<16x14xf32>,
    %43 = vector.extract_strided_slice %32 {offsets = [0, 56], sizes = [16, 14], strides = [1, 1]} : vector<16x196xf32> to vector<16x14xf32>
    %c0_30 = arith.constant 0 : index
    %c81 = arith.constant 81 : index
    %44 = vector.load %arg16[%c0_30, %c81] : memref<16x256xf32, #tpu.memory_space<vmem>>, vector<16x14xf32>
    tpu.vector_store %arg16[%c0_30, %c81], %43 {strides = array<i32>} : memref<16x256xf32, #tpu.memory_space<vmem>>, vector<16x14xf32>,
    %45 = vector.extract_strided_slice %32 {offsets = [0, 70], sizes = [16, 14], strides = [1, 1]} : vector<16x196xf32> to vector<16x14xf32>
    %c0_31 = arith.constant 0 : index
    %c97 = arith.constant 97 : index
    %46 = vector.load %arg16[%c0_31, %c97] : memref<16x256xf32, #tpu.memory_space<vmem>>, vector<16x14xf32>
    tpu.vector_store %arg16[%c0_31, %c97], %45 {strides = array<i32>} : memref<16x256xf32, #tpu.memory_space<vmem>>, vector<16x14xf32>,
    %47 = vector.extract_strided_slice %32 {offsets = [0, 84], sizes = [16, 14], strides = [1, 1]} : vector<16x196xf32> to vector<16x14xf32>
    %c0_32 = arith.constant 0 : index
    %c113 = arith.constant 113 : index
    %48 = vector.load %arg16[%c0_32, %c113] : memref<16x256xf32, #tpu.memory_space<vmem>>, vector<16x14xf32>
    tpu.vector_store %arg16[%c0_32, %c113], %47 {strides = array<i32>} : memref<16x256xf32, #tpu.memory_space<vmem>>, vector<16x14xf32>,
    %49 = vector.extract_strided_slice %32 {offsets = [0, 98], sizes = [16, 14], strides = [1, 1]} : vector<16x196xf32> to vector<16x14xf32>
    %c0_33 = arith.constant 0 : index
    %c129 = arith.constant 129 : index
    %50 = vector.load %arg16[%c0_33, %c129] : memref<16x256xf32, #tpu.memory_space<vmem>>, vector<16x14xf32>
    tpu.vector_store %arg16[%c0_33, %c129], %49 {strides = array<i32>} : memref<16x256xf32, #tpu.memory_space<vmem>>, vector<16x14xf32>,
    %51 = vector.extract_strided_slice %32 {offsets = [0, 112], sizes = [16, 14], strides = [1, 1]} : vector<16x196xf32> to vector<16x14xf32>
    %c0_34 = arith.constant 0 : index
    %c145 = arith.constant 145 : index
    %52 = vector.load %arg16[%c0_34, %c145] : memref<16x256xf32, #tpu.memory_space<vmem>>, vector<16x14xf32>
    tpu.vector_store %arg16[%c0_34, %c145], %51 {strides = array<i32>} : memref<16x256xf32, #tpu.memory_space<vmem>>, vector<16x14xf32>,
    %53 = vector.extract_strided_slice %32 {offsets = [0, 126], sizes = [16, 14], strides = [1, 1]} : vector<16x196xf32> to vector<16x14xf32>
    %c0_35 = arith.constant 0 : index
    %c161 = arith.constant 161 : index
    %54 = vector.load %arg16[%c0_35, %c161] : memref<16x256xf32, #tpu.memory_space<vmem>>, vector<16x14xf32>
    tpu.vector_store %arg16[%c0_35, %c161], %53 {strides = array<i32>} : memref<16x256xf32, #tpu.memory_space<vmem>>, vector<16x14xf32>,
    %55 = vector.extract_strided_slice %32 {offsets = [0, 140], sizes = [16, 14], strides = [1, 1]} : vector<16x196xf32> to vector<16x14xf32>
    %c0_36 = arith.constant 0 : index
    %c177 = arith.constant 177 : index
    %56 = vector.load %arg16[%c0_36, %c177] : memref<16x256xf32, #tpu.memory_space<vmem>>, vector<16x14xf32>
    tpu.vector_store %arg16[%c0_36, %c177], %55 {strides = array<i32>} : memref<16x256xf32, #tpu.memory_space<vmem>>, vector<16x14xf32>,
    %57 = vector.extract_strided_slice %32 {offsets = [0, 154], sizes = [16, 14], strides = [1, 1]} : vector<16x196xf32> to vector<16x14xf32>
    %c0_37 = arith.constant 0 : index
    %c193 = arith.constant 193 : index
    %58 = vector.load %arg16[%c0_37, %c193] : memref<16x256xf32, #tpu.memory_space<vmem>>, vector<16x14xf32>
    tpu.vector_store %arg16[%c0_37, %c193], %57 {strides = array<i32>} : memref<16x256xf32, #tpu.memory_space<vmem>>, vector<16x14xf32>,
    %59 = vector.extract_strided_slice %32 {offsets = [0, 168], sizes = [16, 14], strides = [1, 1]} : vector<16x196xf32> to vector<16x14xf32>
    %c0_38 = arith.constant 0 : index
    %c209 = arith.constant 209 : index
    %60 = vector.load %arg16[%c0_38, %c209] : memref<16x256xf32, #tpu.memory_space<vmem>>, vector<16x14xf32>
    tpu.vector_store %arg16[%c0_38, %c209], %59 {strides = array<i32>} : memref<16x256xf32, #tpu.memory_space<vmem>>, vector<16x14xf32>,
    %61 = vector.extract_strided_slice %32 {offsets = [0, 182], sizes = [16, 14], strides = [1, 1]} : vector<16x196xf32> to vector<16x14xf32>
    %c0_39 = arith.constant 0 : index
    %c225 = arith.constant 225 : index
    %62 = vector.load %arg16[%c0_39, %c225] : memref<16x256xf32, #tpu.memory_space<vmem>>, vector<16x14xf32>
    tpu.vector_store %arg16[%c0_39, %c225], %61 {strides = array<i32>} : memref<16x256xf32, #tpu.memory_space<vmem>>, vector<16x14xf32>,
    %c0_40 = arith.constant 0 : index
    %c0_41 = arith.constant 0 : index
    %63 = vector.load %arg16[%c0_40, %c0_41] : memref<16x256xf32, #tpu.memory_space<vmem>>, vector<16x256xf32>
    %64 = arith.truncf %63 : vector<16x256xf32> to vector<16x256xbf16>
    %65 = vector.extract_strided_slice %63 {offsets = [0, 17], sizes = [16, 222], strides = [1, 1]} : vector<16x256xf32> to vector<16x222xf32>
    %c0_42 = arith.constant 0 : index
    %c0_43 = arith.constant 0 : index
    %66 = vector.load %arg5[%c0_42, %c0_43] : memref<16x256xf32, #tpu.memory_space<vmem>>, vector<16x256xf32>
    %67 = vector.extract_strided_slice %66 {offsets = [0, 17], sizes = [16, 222], strides = [1, 1]} : vector<16x256xf32> to vector<16x222xf32>
    %68 = tpu.iota {dimensions = array<i32: 1>} : vector<16x222xi32>
    %c15_i32 = arith.constant 15 : i32
    %69 = vector.broadcast %c15_i32 : i32 to vector<16x222xi32>
    %70 = arith.andi %68, %69 : vector<16x222xi32>
    %c14_i32 = arith.constant 14 : i32
    %71 = vector.broadcast %c14_i32 : i32 to vector<16x222xi32>
    %72 = arith.cmpi slt, %70, %71 : vector<16x222xi32>
    %73 = vector.extract_strided_slice %64 {offsets = [0, 0], sizes = [16, 222], strides = [1, 1]} : vector<16x256xbf16> to vector<16x222xbf16>
    %c0_44 = arith.constant 0 : index
    %c0_45 = arith.constant 0 : index
    %c0_46 = arith.constant 0 : index
    %74 = vector.load %arg4[%c0_44, %c0_45, %c0_46] : memref<9x16x16xbf16, #tpu.memory_space<vmem>>, vector<1x16x16xbf16>
    %75 = vector.shape_cast %74 : vector<1x16x16xbf16> to vector<16x16xbf16>
    %cst_47 = arith.constant dense<0.000000e+00> : vector<16x222xf32>
    %76 = tpu.matmul %75, %73, %cst_47 {dimension_numbers = #tpu.dot_dimension_numbers<[1], [0], [0], [1], [0, 0, 1, 1], [], []>} : vector<16x16xbf16>, vector<16x222xbf16>, vector<16x222xf32> -> vector<16x222xf32>
    %77 = arith.addf %67, %76 : vector<16x222xf32>
    %78 = vector.extract_strided_slice %64 {offsets = [0, 1], sizes = [16, 222], strides = [1, 1]} : vector<16x256xbf16> to vector<16x222xbf16>
    %c1_48 = arith.constant 1 : index
    %c0_49 = arith.constant 0 : index
    %c0_50 = arith.constant 0 : index
    %79 = vector.load %arg4[%c1_48, %c0_49, %c0_50] : memref<9x16x16xbf16, #tpu.memory_space<vmem>>, vector<1x16x16xbf16>
    %80 = vector.shape_cast %79 : vector<1x16x16xbf16> to vector<16x16xbf16>
    %cst_51 = arith.constant dense<0.000000e+00> : vector<16x222xf32>
    %81 = tpu.matmul %80, %78, %cst_51 {dimension_numbers = #tpu.dot_dimension_numbers<[1], [0], [0], [1], [0, 0, 1, 1], [], []>} : vector<16x16xbf16>, vector<16x222xbf16>, vector<16x222xf32> -> vector<16x222xf32>
    %82 = arith.addf %77, %81 : vector<16x222xf32>
    %83 = vector.extract_strided_slice %64 {offsets = [0, 2], sizes = [16, 222], strides = [1, 1]} : vector<16x256xbf16> to vector<16x222xbf16>
    %c2_52 = arith.constant 2 : index
    %c0_53 = arith.constant 0 : index
    %c0_54 = arith.constant 0 : index
    %84 = vector.load %arg4[%c2_52, %c0_53, %c0_54] : memref<9x16x16xbf16, #tpu.memory_space<vmem>>, vector<1x16x16xbf16>
    %85 = vector.shape_cast %84 : vector<1x16x16xbf16> to vector<16x16xbf16>
    %cst_55 = arith.constant dense<0.000000e+00> : vector<16x222xf32>
    %86 = tpu.matmul %85, %83, %cst_55 {dimension_numbers = #tpu.dot_dimension_numbers<[1], [0], [0], [1], [0, 0, 1, 1], [], []>} : vector<16x16xbf16>, vector<16x222xbf16>, vector<16x222xf32> -> vector<16x222xf32>
    %87 = arith.addf %82, %86 : vector<16x222xf32>
    %88 = vector.extract_strided_slice %64 {offsets = [0, 16], sizes = [16, 222], strides = [1, 1]} : vector<16x256xbf16> to vector<16x222xbf16>
    %c3_56 = arith.constant 3 : index
    %c0_57 = arith.constant 0 : index
    %c0_58 = arith.constant 0 : index
    %89 = vector.load %arg4[%c3_56, %c0_57, %c0_58] : memref<9x16x16xbf16, #tpu.memory_space<vmem>>, vector<1x16x16xbf16>
    %90 = vector.shape_cast %89 : vector<1x16x16xbf16> to vector<16x16xbf16>
    %cst_59 = arith.constant dense<0.000000e+00> : vector<16x222xf32>
    %91 = tpu.matmul %90, %88, %cst_59 {dimension_numbers = #tpu.dot_dimension_numbers<[1], [0], [0], [1], [0, 0, 1, 1], [], []>} : vector<16x16xbf16>, vector<16x222xbf16>, vector<16x222xf32> -> vector<16x222xf32>
    %92 = arith.addf %87, %91 : vector<16x222xf32>
    %93 = vector.extract_strided_slice %64 {offsets = [0, 17], sizes = [16, 222], strides = [1, 1]} : vector<16x256xbf16> to vector<16x222xbf16>
    %c4 = arith.constant 4 : index
    %c0_60 = arith.constant 0 : index
    %c0_61 = arith.constant 0 : index
    %94 = vector.load %arg4[%c4, %c0_60, %c0_61] : memref<9x16x16xbf16, #tpu.memory_space<vmem>>, vector<1x16x16xbf16>
    %95 = vector.shape_cast %94 : vector<1x16x16xbf16> to vector<16x16xbf16>
    %cst_62 = arith.constant dense<0.000000e+00> : vector<16x222xf32>
    %96 = tpu.matmul %95, %93, %cst_62 {dimension_numbers = #tpu.dot_dimension_numbers<[1], [0], [0], [1], [0, 0, 1, 1], [], []>} : vector<16x16xbf16>, vector<16x222xbf16>, vector<16x222xf32> -> vector<16x222xf32>
    %97 = arith.addf %92, %96 : vector<16x222xf32>
    %98 = vector.extract_strided_slice %64 {offsets = [0, 18], sizes = [16, 222], strides = [1, 1]} : vector<16x256xbf16> to vector<16x222xbf16>
    %c5 = arith.constant 5 : index
    %c0_63 = arith.constant 0 : index
    %c0_64 = arith.constant 0 : index
    %99 = vector.load %arg4[%c5, %c0_63, %c0_64] : memref<9x16x16xbf16, #tpu.memory_space<vmem>>, vector<1x16x16xbf16>
    %100 = vector.shape_cast %99 : vector<1x16x16xbf16> to vector<16x16xbf16>
    %cst_65 = arith.constant dense<0.000000e+00> : vector<16x222xf32>
    %101 = tpu.matmul %100, %98, %cst_65 {dimension_numbers = #tpu.dot_dimension_numbers<[1], [0], [0], [1], [0, 0, 1, 1], [], []>} : vector<16x16xbf16>, vector<16x222xbf16>, vector<16x222xf32> -> vector<16x222xf32>
    %102 = arith.addf %97, %101 : vector<16x222xf32>
    %103 = vector.extract_strided_slice %64 {offsets = [0, 32], sizes = [16, 222], strides = [1, 1]} : vector<16x256xbf16> to vector<16x222xbf16>
    %c6 = arith.constant 6 : index
    %c0_66 = arith.constant 0 : index
    %c0_67 = arith.constant 0 : index
    %104 = vector.load %arg4[%c6, %c0_66, %c0_67] : memref<9x16x16xbf16, #tpu.memory_space<vmem>>, vector<1x16x16xbf16>
    %105 = vector.shape_cast %104 : vector<1x16x16xbf16> to vector<16x16xbf16>
    %cst_68 = arith.constant dense<0.000000e+00> : vector<16x222xf32>
    %106 = tpu.matmul %105, %103, %cst_68 {dimension_numbers = #tpu.dot_dimension_numbers<[1], [0], [0], [1], [0, 0, 1, 1], [], []>} : vector<16x16xbf16>, vector<16x222xbf16>, vector<16x222xf32> -> vector<16x222xf32>
    %107 = arith.addf %102, %106 : vector<16x222xf32>
    %108 = vector.extract_strided_slice %64 {offsets = [0, 33], sizes = [16, 222], strides = [1, 1]} : vector<16x256xbf16> to vector<16x222xbf16>
    %c7 = arith.constant 7 : index
    %c0_69 = arith.constant 0 : index
    %c0_70 = arith.constant 0 : index
    %109 = vector.load %arg4[%c7, %c0_69, %c0_70] : memref<9x16x16xbf16, #tpu.memory_space<vmem>>, vector<1x16x16xbf16>
    %110 = vector.shape_cast %109 : vector<1x16x16xbf16> to vector<16x16xbf16>
    %cst_71 = arith.constant dense<0.000000e+00> : vector<16x222xf32>
    %111 = tpu.matmul %110, %108, %cst_71 {dimension_numbers = #tpu.dot_dimension_numbers<[1], [0], [0], [1], [0, 0, 1, 1], [], []>} : vector<16x16xbf16>, vector<16x222xbf16>, vector<16x222xf32> -> vector<16x222xf32>
    %112 = arith.addf %107, %111 : vector<16x222xf32>
    %113 = vector.extract_strided_slice %64 {offsets = [0, 34], sizes = [16, 222], strides = [1, 1]} : vector<16x256xbf16> to vector<16x222xbf16>
    %c8 = arith.constant 8 : index
    %c0_72 = arith.constant 0 : index
    %c0_73 = arith.constant 0 : index
    %114 = vector.load %arg4[%c8, %c0_72, %c0_73] : memref<9x16x16xbf16, #tpu.memory_space<vmem>>, vector<1x16x16xbf16>
    %115 = vector.shape_cast %114 : vector<1x16x16xbf16> to vector<16x16xbf16>
    %cst_74 = arith.constant dense<0.000000e+00> : vector<16x222xf32>
    %116 = tpu.matmul %115, %113, %cst_74 {dimension_numbers = #tpu.dot_dimension_numbers<[1], [0], [0], [1], [0, 0, 1, 1], [], []>} : vector<16x16xbf16>, vector<16x222xbf16>, vector<16x222xf32> -> vector<16x222xf32>
    %117 = arith.addf %112, %116 : vector<16x222xf32>
    %cst_75 = arith.constant 0.000000e+00 : f32
    %118 = vector.broadcast %cst_75 : f32 to vector<16x222xf32>
    %119 = arith.maximumf %117, %118 : vector<16x222xf32>
    %cst_76 = arith.constant 0.000000e+00 : bf16
    %120 = vector.broadcast %cst_76 : bf16 to vector<16x256xbf16>
    %c0_77 = arith.constant 0 : index
    %c0_78 = arith.constant 0 : index
    %121 = vector.load %arg17[%c0_77, %c0_78] : memref<16x256xbf16, #tpu.memory_space<vmem>>, vector<16x256xbf16>
    tpu.vector_store %arg17[%c0_77, %c0_78], %120 {strides = array<i32>} : memref<16x256xbf16, #tpu.memory_space<vmem>>, vector<16x256xbf16>,
    %cst_79 = arith.constant 0.000000e+00 : f32
    %122 = vector.broadcast %cst_79 : f32 to vector<16x222xf32>
    %123 = arith.select %72, %119, %122 : vector<16x222xi1>, vector<16x222xf32>
    %124 = arith.truncf %123 : vector<16x222xf32> to vector<16x222xbf16>
    %c0_80 = arith.constant 0 : index
    %c17_81 = arith.constant 17 : index
    %125 = vector.load %arg17[%c0_80, %c17_81] : memref<16x256xbf16, #tpu.memory_space<vmem>>, vector<16x222xbf16>
    tpu.vector_store %arg17[%c0_80, %c17_81], %124 {strides = array<i32>} : memref<16x256xbf16, #tpu.memory_space<vmem>>, vector<16x222xbf16>,
    %c0_82 = arith.constant 0 : index
    %c0_83 = arith.constant 0 : index
    %126 = vector.load %arg17[%c0_82, %c0_83] : memref<16x256xbf16, #tpu.memory_space<vmem>>, vector<16x256xbf16>
    %127 = vector.extract_strided_slice %126 {offsets = [0, 0], sizes = [16, 222], strides = [1, 1]} : vector<16x256xbf16> to vector<16x222xbf16>
    %c0_84 = arith.constant 0 : index
    %c0_85 = arith.constant 0 : index
    %c0_86 = arith.constant 0 : index
    %128 = vector.load %arg4[%c0_84, %c0_85, %c0_86] : memref<9x16x16xbf16, #tpu.memory_space<vmem>>, vector<1x16x16xbf16>
    %129 = vector.shape_cast %128 : vector<1x16x16xbf16> to vector<16x16xbf16>
    %cst_87 = arith.constant dense<0.000000e+00> : vector<16x222xf32>
    %130 = tpu.matmul %129, %127, %cst_87 {dimension_numbers = #tpu.dot_dimension_numbers<[1], [0], [0], [1], [0, 0, 1, 1], [], []>} : vector<16x16xbf16>, vector<16x222xbf16>, vector<16x222xf32> -> vector<16x222xf32>
    %131 = arith.addf %67, %130 : vector<16x222xf32>
    %132 = vector.extract_strided_slice %126 {offsets = [0, 1], sizes = [16, 222], strides = [1, 1]} : vector<16x256xbf16> to vector<16x222xbf16>
    %c1_88 = arith.constant 1 : index
    %c0_89 = arith.constant 0 : index
    %c0_90 = arith.constant 0 : index
    %133 = vector.load %arg4[%c1_88, %c0_89, %c0_90] : memref<9x16x16xbf16, #tpu.memory_space<vmem>>, vector<1x16x16xbf16>
    %134 = vector.shape_cast %133 : vector<1x16x16xbf16> to vector<16x16xbf16>
    %cst_91 = arith.constant dense<0.000000e+00> : vector<16x222xf32>
    %135 = tpu.matmul %134, %132, %cst_91 {dimension_numbers = #tpu.dot_dimension_numbers<[1], [0], [0], [1], [0, 0, 1, 1], [], []>} : vector<16x16xbf16>, vector<16x222xbf16>, vector<16x222xf32> -> vector<16x222xf32>
    %136 = arith.addf %131, %135 : vector<16x222xf32>
    %137 = vector.extract_strided_slice %126 {offsets = [0, 2], sizes = [16, 222], strides = [1, 1]} : vector<16x256xbf16> to vector<16x222xbf16>
    %c2_92 = arith.constant 2 : index
    %c0_93 = arith.constant 0 : index
    %c0_94 = arith.constant 0 : index
    %138 = vector.load %arg4[%c2_92, %c0_93, %c0_94] : memref<9x16x16xbf16, #tpu.memory_space<vmem>>, vector<1x16x16xbf16>
    %139 = vector.shape_cast %138 : vector<1x16x16xbf16> to vector<16x16xbf16>
    %cst_95 = arith.constant dense<0.000000e+00> : vector<16x222xf32>
    %140 = tpu.matmul %139, %137, %cst_95 {dimension_numbers = #tpu.dot_dimension_numbers<[1], [0], [0], [1], [0, 0, 1, 1], [], []>} : vector<16x16xbf16>, vector<16x222xbf16>, vector<16x222xf32> -> vector<16x222xf32>
    %141 = arith.addf %136, %140 : vector<16x222xf32>
    %142 = vector.extract_strided_slice %126 {offsets = [0, 16], sizes = [16, 222], strides = [1, 1]} : vector<16x256xbf16> to vector<16x222xbf16>
    %c3_96 = arith.constant 3 : index
    %c0_97 = arith.constant 0 : index
    %c0_98 = arith.constant 0 : index
    %143 = vector.load %arg4[%c3_96, %c0_97, %c0_98] : memref<9x16x16xbf16, #tpu.memory_space<vmem>>, vector<1x16x16xbf16>
    %144 = vector.shape_cast %143 : vector<1x16x16xbf16> to vector<16x16xbf16>
    %cst_99 = arith.constant dense<0.000000e+00> : vector<16x222xf32>
    %145 = tpu.matmul %144, %142, %cst_99 {dimension_numbers = #tpu.dot_dimension_numbers<[1], [0], [0], [1], [0, 0, 1, 1], [], []>} : vector<16x16xbf16>, vector<16x222xbf16>, vector<16x222xf32> -> vector<16x222xf32>
    %146 = arith.addf %141, %145 : vector<16x222xf32>
    %147 = vector.extract_strided_slice %126 {offsets = [0, 17], sizes = [16, 222], strides = [1, 1]} : vector<16x256xbf16> to vector<16x222xbf16>
    %c4_100 = arith.constant 4 : index
    %c0_101 = arith.constant 0 : index
    %c0_102 = arith.constant 0 : index
    %148 = vector.load %arg4[%c4_100, %c0_101, %c0_102] : memref<9x16x16xbf16, #tpu.memory_space<vmem>>, vector<1x16x16xbf16>
    %149 = vector.shape_cast %148 : vector<1x16x16xbf16> to vector<16x16xbf16>
    %cst_103 = arith.constant dense<0.000000e+00> : vector<16x222xf32>
    %150 = tpu.matmul %149, %147, %cst_103 {dimension_numbers = #tpu.dot_dimension_numbers<[1], [0], [0], [1], [0, 0, 1, 1], [], []>} : vector<16x16xbf16>, vector<16x222xbf16>, vector<16x222xf32> -> vector<16x222xf32>
    %151 = arith.addf %146, %150 : vector<16x222xf32>
    %152 = vector.extract_strided_slice %126 {offsets = [0, 18], sizes = [16, 222], strides = [1, 1]} : vector<16x256xbf16> to vector<16x222xbf16>
    %c5_104 = arith.constant 5 : index
    %c0_105 = arith.constant 0 : index
    %c0_106 = arith.constant 0 : index
    %153 = vector.load %arg4[%c5_104, %c0_105, %c0_106] : memref<9x16x16xbf16, #tpu.memory_space<vmem>>, vector<1x16x16xbf16>
    %154 = vector.shape_cast %153 : vector<1x16x16xbf16> to vector<16x16xbf16>
    %cst_107 = arith.constant dense<0.000000e+00> : vector<16x222xf32>
    %155 = tpu.matmul %154, %152, %cst_107 {dimension_numbers = #tpu.dot_dimension_numbers<[1], [0], [0], [1], [0, 0, 1, 1], [], []>} : vector<16x16xbf16>, vector<16x222xbf16>, vector<16x222xf32> -> vector<16x222xf32>
    %156 = arith.addf %151, %155 : vector<16x222xf32>
    %157 = vector.extract_strided_slice %126 {offsets = [0, 32], sizes = [16, 222], strides = [1, 1]} : vector<16x256xbf16> to vector<16x222xbf16>
    %c6_108 = arith.constant 6 : index
    %c0_109 = arith.constant 0 : index
    %c0_110 = arith.constant 0 : index
    %158 = vector.load %arg4[%c6_108, %c0_109, %c0_110] : memref<9x16x16xbf16, #tpu.memory_space<vmem>>, vector<1x16x16xbf16>
    %159 = vector.shape_cast %158 : vector<1x16x16xbf16> to vector<16x16xbf16>
    %cst_111 = arith.constant dense<0.000000e+00> : vector<16x222xf32>
    %160 = tpu.matmul %159, %157, %cst_111 {dimension_numbers = #tpu.dot_dimension_numbers<[1], [0], [0], [1], [0, 0, 1, 1], [], []>} : vector<16x16xbf16>, vector<16x222xbf16>, vector<16x222xf32> -> vector<16x222xf32>
    %161 = arith.addf %156, %160 : vector<16x222xf32>
    %162 = vector.extract_strided_slice %126 {offsets = [0, 33], sizes = [16, 222], strides = [1, 1]} : vector<16x256xbf16> to vector<16x222xbf16>
    %c7_112 = arith.constant 7 : index
    %c0_113 = arith.constant 0 : index
    %c0_114 = arith.constant 0 : index
    %163 = vector.load %arg4[%c7_112, %c0_113, %c0_114] : memref<9x16x16xbf16, #tpu.memory_space<vmem>>, vector<1x16x16xbf16>
    %164 = vector.shape_cast %163 : vector<1x16x16xbf16> to vector<16x16xbf16>
    %cst_115 = arith.constant dense<0.000000e+00> : vector<16x222xf32>
    %165 = tpu.matmul %164, %162, %cst_115 {dimension_numbers = #tpu.dot_dimension_numbers<[1], [0], [0], [1], [0, 0, 1, 1], [], []>} : vector<16x16xbf16>, vector<16x222xbf16>, vector<16x222xf32> -> vector<16x222xf32>
    %166 = arith.addf %161, %165 : vector<16x222xf32>
    %167 = vector.extract_strided_slice %126 {offsets = [0, 34], sizes = [16, 222], strides = [1, 1]} : vector<16x256xbf16> to vector<16x222xbf16>
    %c8_116 = arith.constant 8 : index
    %c0_117 = arith.constant 0 : index
    %c0_118 = arith.constant 0 : index
    %168 = vector.load %arg4[%c8_116, %c0_117, %c0_118] : memref<9x16x16xbf16, #tpu.memory_space<vmem>>, vector<1x16x16xbf16>
    %169 = vector.shape_cast %168 : vector<1x16x16xbf16> to vector<16x16xbf16>
    %cst_119 = arith.constant dense<0.000000e+00> : vector<16x222xf32>
    %170 = tpu.matmul %169, %167, %cst_119 {dimension_numbers = #tpu.dot_dimension_numbers<[1], [0], [0], [1], [0, 0, 1, 1], [], []>} : vector<16x16xbf16>, vector<16x222xbf16>, vector<16x222xf32> -> vector<16x222xf32>
    %171 = arith.addf %166, %170 : vector<16x222xf32>
    %172 = arith.addf %171, %65 : vector<16x222xf32>
    %cst_120 = arith.constant 0.000000e+00 : f32
    %173 = vector.broadcast %cst_120 : f32 to vector<16x222xf32>
    %174 = arith.maximumf %172, %173 : vector<16x222xf32>
    %cst_121 = arith.constant 0.000000e+00 : bf16
    %175 = vector.broadcast %cst_121 : bf16 to vector<16x256xbf16>
    %c0_122 = arith.constant 0 : index
    %c0_123 = arith.constant 0 : index
    %176 = vector.load %arg17[%c0_122, %c0_123] : memref<16x256xbf16, #tpu.memory_space<vmem>>, vector<16x256xbf16>
    tpu.vector_store %arg17[%c0_122, %c0_123], %175 {strides = array<i32>} : memref<16x256xbf16, #tpu.memory_space<vmem>>, vector<16x256xbf16>,
    %cst_124 = arith.constant 0.000000e+00 : f32
    %177 = vector.broadcast %cst_124 : f32 to vector<16x222xf32>
    %178 = arith.select %72, %174, %177 : vector<16x222xi1>, vector<16x222xf32>
    %179 = arith.truncf %178 : vector<16x222xf32> to vector<16x222xbf16>
    %c0_125 = arith.constant 0 : index
    %c17_126 = arith.constant 17 : index
    %180 = vector.load %arg17[%c0_125, %c17_126] : memref<16x256xbf16, #tpu.memory_space<vmem>>, vector<16x222xbf16>
    tpu.vector_store %arg17[%c0_125, %c17_126], %179 {strides = array<i32>} : memref<16x256xbf16, #tpu.memory_space<vmem>>, vector<16x222xbf16>,
    %c0_127 = arith.constant 0 : index
    %c0_128 = arith.constant 0 : index
    %181 = vector.load %arg17[%c0_127, %c0_128] : memref<16x256xbf16, #tpu.memory_space<vmem>>, vector<16x256xbf16>
    %cst_129 = arith.constant 0.000000e+00 : f32
    %182 = vector.broadcast %cst_129 : f32 to vector<16x160xf32>
    %c0_130 = arith.constant 0 : index
    %c0_131 = arith.constant 0 : index
    %183 = vector.load %arg7[%c0_130, %c0_131] : memref<16x1xf32, #tpu.memory_space<vmem>>, vector<16x1xf32>
    %184 = vector.broadcast %183 : vector<16x1xf32> to vector<16x160xf32>
    %185 = arith.addf %182, %184 : vector<16x160xf32>
    %c0_132 = arith.constant 0 : index
    %c0_133 = arith.constant 0 : index
    %c0_134 = arith.constant 0 : index
    %186 = vector.load %arg6[%c0_132, %c0_133, %c0_134] : memref<25x16x16xbf16, #tpu.memory_space<vmem>>, vector<1x16x16xbf16>
    %187 = vector.shape_cast %186 : vector<1x16x16xbf16> to vector<16x16xbf16>
    %188 = vector.extract_strided_slice %181 {offsets = [0, 17], sizes = [16, 160], strides = [1, 1]} : vector<16x256xbf16> to vector<16x160xbf16>
    %cst_135 = arith.constant dense<0.000000e+00> : vector<16x160xf32>
    %189 = tpu.matmul %187, %188, %cst_135 {dimension_numbers = #tpu.dot_dimension_numbers<[1], [0], [0], [1], [0, 0, 1, 1], [], []>} : vector<16x16xbf16>, vector<16x160xbf16>, vector<16x160xf32> -> vector<16x160xf32>
    %190 = arith.addf %185, %189 : vector<16x160xf32>
    %c1_136 = arith.constant 1 : index
    %c0_137 = arith.constant 0 : index
    %c0_138 = arith.constant 0 : index
    %191 = vector.load %arg6[%c1_136, %c0_137, %c0_138] : memref<25x16x16xbf16, #tpu.memory_space<vmem>>, vector<1x16x16xbf16>
    %192 = vector.shape_cast %191 : vector<1x16x16xbf16> to vector<16x16xbf16>
    %193 = vector.extract_strided_slice %181 {offsets = [0, 18], sizes = [16, 160], strides = [1, 1]} : vector<16x256xbf16> to vector<16x160xbf16>
    %cst_139 = arith.constant dense<0.000000e+00> : vector<16x160xf32>
    %194 = tpu.matmul %192, %193, %cst_139 {dimension_numbers = #tpu.dot_dimension_numbers<[1], [0], [0], [1], [0, 0, 1, 1], [], []>} : vector<16x16xbf16>, vector<16x160xbf16>, vector<16x160xf32> -> vector<16x160xf32>
    %195 = arith.addf %190, %194 : vector<16x160xf32>
    %c2_140 = arith.constant 2 : index
    %c0_141 = arith.constant 0 : index
    %c0_142 = arith.constant 0 : index
    %196 = vector.load %arg6[%c2_140, %c0_141, %c0_142] : memref<25x16x16xbf16, #tpu.memory_space<vmem>>, vector<1x16x16xbf16>
    %197 = vector.shape_cast %196 : vector<1x16x16xbf16> to vector<16x16xbf16>
    %198 = vector.extract_strided_slice %181 {offsets = [0, 19], sizes = [16, 160], strides = [1, 1]} : vector<16x256xbf16> to vector<16x160xbf16>
    %cst_143 = arith.constant dense<0.000000e+00> : vector<16x160xf32>
    %199 = tpu.matmul %197, %198, %cst_143 {dimension_numbers = #tpu.dot_dimension_numbers<[1], [0], [0], [1], [0, 0, 1, 1], [], []>} : vector<16x16xbf16>, vector<16x160xbf16>, vector<16x160xf32> -> vector<16x160xf32>
    %200 = arith.addf %195, %199 : vector<16x160xf32>
    %c3_144 = arith.constant 3 : index
    %c0_145 = arith.constant 0 : index
    %c0_146 = arith.constant 0 : index
    %201 = vector.load %arg6[%c3_144, %c0_145, %c0_146] : memref<25x16x16xbf16, #tpu.memory_space<vmem>>, vector<1x16x16xbf16>
    %202 = vector.shape_cast %201 : vector<1x16x16xbf16> to vector<16x16xbf16>
    %203 = vector.extract_strided_slice %181 {offsets = [0, 20], sizes = [16, 160], strides = [1, 1]} : vector<16x256xbf16> to vector<16x160xbf16>
    %cst_147 = arith.constant dense<0.000000e+00> : vector<16x160xf32>
    %204 = tpu.matmul %202, %203, %cst_147 {dimension_numbers = #tpu.dot_dimension_numbers<[1], [0], [0], [1], [0, 0, 1, 1], [], []>} : vector<16x16xbf16>, vector<16x160xbf16>, vector<16x160xf32> -> vector<16x160xf32>
    %205 = arith.addf %200, %204 : vector<16x160xf32>
    %c4_148 = arith.constant 4 : index
    %c0_149 = arith.constant 0 : index
    %c0_150 = arith.constant 0 : index
    %206 = vector.load %arg6[%c4_148, %c0_149, %c0_150] : memref<25x16x16xbf16, #tpu.memory_space<vmem>>, vector<1x16x16xbf16>
    %207 = vector.shape_cast %206 : vector<1x16x16xbf16> to vector<16x16xbf16>
    %208 = vector.extract_strided_slice %181 {offsets = [0, 21], sizes = [16, 160], strides = [1, 1]} : vector<16x256xbf16> to vector<16x160xbf16>
    %cst_151 = arith.constant dense<0.000000e+00> : vector<16x160xf32>
    %209 = tpu.matmul %207, %208, %cst_151 {dimension_numbers = #tpu.dot_dimension_numbers<[1], [0], [0], [1], [0, 0, 1, 1], [], []>} : vector<16x16xbf16>, vector<16x160xbf16>, vector<16x160xf32> -> vector<16x160xf32>
    %210 = arith.addf %205, %209 : vector<16x160xf32>
    %c5_152 = arith.constant 5 : index
    %c0_153 = arith.constant 0 : index
    %c0_154 = arith.constant 0 : index
    %211 = vector.load %arg6[%c5_152, %c0_153, %c0_154] : memref<25x16x16xbf16, #tpu.memory_space<vmem>>, vector<1x16x16xbf16>
    %212 = vector.shape_cast %211 : vector<1x16x16xbf16> to vector<16x16xbf16>
    %213 = vector.extract_strided_slice %181 {offsets = [0, 33], sizes = [16, 160], strides = [1, 1]} : vector<16x256xbf16> to vector<16x160xbf16>
    %cst_155 = arith.constant dense<0.000000e+00> : vector<16x160xf32>
    %214 = tpu.matmul %212, %213, %cst_155 {dimension_numbers = #tpu.dot_dimension_numbers<[1], [0], [0], [1], [0, 0, 1, 1], [], []>} : vector<16x16xbf16>, vector<16x160xbf16>, vector<16x160xf32> -> vector<16x160xf32>
    %215 = arith.addf %210, %214 : vector<16x160xf32>
    %c6_156 = arith.constant 6 : index
    %c0_157 = arith.constant 0 : index
    %c0_158 = arith.constant 0 : index
    %216 = vector.load %arg6[%c6_156, %c0_157, %c0_158] : memref<25x16x16xbf16, #tpu.memory_space<vmem>>, vector<1x16x16xbf16>
    %217 = vector.shape_cast %216 : vector<1x16x16xbf16> to vector<16x16xbf16>
    %218 = vector.extract_strided_slice %181 {offsets = [0, 34], sizes = [16, 160], strides = [1, 1]} : vector<16x256xbf16> to vector<16x160xbf16>
    %cst_159 = arith.constant dense<0.000000e+00> : vector<16x160xf32>
    %219 = tpu.matmul %217, %218, %cst_159 {dimension_numbers = #tpu.dot_dimension_numbers<[1], [0], [0], [1], [0, 0, 1, 1], [], []>} : vector<16x16xbf16>, vector<16x160xbf16>, vector<16x160xf32> -> vector<16x160xf32>
    %220 = arith.addf %215, %219 : vector<16x160xf32>
    %c7_160 = arith.constant 7 : index
    %c0_161 = arith.constant 0 : index
    %c0_162 = arith.constant 0 : index
    %221 = vector.load %arg6[%c7_160, %c0_161, %c0_162] : memref<25x16x16xbf16, #tpu.memory_space<vmem>>, vector<1x16x16xbf16>
    %222 = vector.shape_cast %221 : vector<1x16x16xbf16> to vector<16x16xbf16>
    %223 = vector.extract_strided_slice %181 {offsets = [0, 35], sizes = [16, 160], strides = [1, 1]} : vector<16x256xbf16> to vector<16x160xbf16>
    %cst_163 = arith.constant dense<0.000000e+00> : vector<16x160xf32>
    %224 = tpu.matmul %222, %223, %cst_163 {dimension_numbers = #tpu.dot_dimension_numbers<[1], [0], [0], [1], [0, 0, 1, 1], [], []>} : vector<16x16xbf16>, vector<16x160xbf16>, vector<16x160xf32> -> vector<16x160xf32>
    %225 = arith.addf %220, %224 : vector<16x160xf32>
    %c8_164 = arith.constant 8 : index
    %c0_165 = arith.constant 0 : index
    %c0_166 = arith.constant 0 : index
    %226 = vector.load %arg6[%c8_164, %c0_165, %c0_166] : memref<25x16x16xbf16, #tpu.memory_space<vmem>>, vector<1x16x16xbf16>
    %227 = vector.shape_cast %226 : vector<1x16x16xbf16> to vector<16x16xbf16>
    %228 = vector.extract_strided_slice %181 {offsets = [0, 36], sizes = [16, 160], strides = [1, 1]} : vector<16x256xbf16> to vector<16x160xbf16>
    %cst_167 = arith.constant dense<0.000000e+00> : vector<16x160xf32>
    %229 = tpu.matmul %227, %228, %cst_167 {dimension_numbers = #tpu.dot_dimension_numbers<[1], [0], [0], [1], [0, 0, 1, 1], [], []>} : vector<16x16xbf16>, vector<16x160xbf16>, vector<16x160xf32> -> vector<16x160xf32>
    %230 = arith.addf %225, %229 : vector<16x160xf32>
    %c9 = arith.constant 9 : index
    %c0_168 = arith.constant 0 : index
    %c0_169 = arith.constant 0 : index
    %231 = vector.load %arg6[%c9, %c0_168, %c0_169] : memref<25x16x16xbf16, #tpu.memory_space<vmem>>, vector<1x16x16xbf16>
    %232 = vector.shape_cast %231 : vector<1x16x16xbf16> to vector<16x16xbf16>
    %233 = vector.extract_strided_slice %181 {offsets = [0, 37], sizes = [16, 160], strides = [1, 1]} : vector<16x256xbf16> to vector<16x160xbf16>
    %cst_170 = arith.constant dense<0.000000e+00> : vector<16x160xf32>
    %234 = tpu.matmul %232, %233, %cst_170 {dimension_numbers = #tpu.dot_dimension_numbers<[1], [0], [0], [1], [0, 0, 1, 1], [], []>} : vector<16x16xbf16>, vector<16x160xbf16>, vector<16x160xf32> -> vector<16x160xf32>
    %235 = arith.addf %230, %234 : vector<16x160xf32>
    %c10 = arith.constant 10 : index
    %c0_171 = arith.constant 0 : index
    %c0_172 = arith.constant 0 : index
    %236 = vector.load %arg6[%c10, %c0_171, %c0_172] : memref<25x16x16xbf16, #tpu.memory_space<vmem>>, vector<1x16x16xbf16>
    %237 = vector.shape_cast %236 : vector<1x16x16xbf16> to vector<16x16xbf16>
    %238 = vector.extract_strided_slice %181 {offsets = [0, 49], sizes = [16, 160], strides = [1, 1]} : vector<16x256xbf16> to vector<16x160xbf16>
    %cst_173 = arith.constant dense<0.000000e+00> : vector<16x160xf32>
    %239 = tpu.matmul %237, %238, %cst_173 {dimension_numbers = #tpu.dot_dimension_numbers<[1], [0], [0], [1], [0, 0, 1, 1], [], []>} : vector<16x16xbf16>, vector<16x160xbf16>, vector<16x160xf32> -> vector<16x160xf32>
    %240 = arith.addf %235, %239 : vector<16x160xf32>
    %c11 = arith.constant 11 : index
    %c0_174 = arith.constant 0 : index
    %c0_175 = arith.constant 0 : index
    %241 = vector.load %arg6[%c11, %c0_174, %c0_175] : memref<25x16x16xbf16, #tpu.memory_space<vmem>>, vector<1x16x16xbf16>
    %242 = vector.shape_cast %241 : vector<1x16x16xbf16> to vector<16x16xbf16>
    %243 = vector.extract_strided_slice %181 {offsets = [0, 50], sizes = [16, 160], strides = [1, 1]} : vector<16x256xbf16> to vector<16x160xbf16>
    %cst_176 = arith.constant dense<0.000000e+00> : vector<16x160xf32>
    %244 = tpu.matmul %242, %243, %cst_176 {dimension_numbers = #tpu.dot_dimension_numbers<[1], [0], [0], [1], [0, 0, 1, 1], [], []>} : vector<16x16xbf16>, vector<16x160xbf16>, vector<16x160xf32> -> vector<16x160xf32>
    %245 = arith.addf %240, %244 : vector<16x160xf32>
    %c12 = arith.constant 12 : index
    %c0_177 = arith.constant 0 : index
    %c0_178 = arith.constant 0 : index
    %246 = vector.load %arg6[%c12, %c0_177, %c0_178] : memref<25x16x16xbf16, #tpu.memory_space<vmem>>, vector<1x16x16xbf16>
    %247 = vector.shape_cast %246 : vector<1x16x16xbf16> to vector<16x16xbf16>
    %248 = vector.extract_strided_slice %181 {offsets = [0, 51], sizes = [16, 160], strides = [1, 1]} : vector<16x256xbf16> to vector<16x160xbf16>
    %cst_179 = arith.constant dense<0.000000e+00> : vector<16x160xf32>
    %249 = tpu.matmul %247, %248, %cst_179 {dimension_numbers = #tpu.dot_dimension_numbers<[1], [0], [0], [1], [0, 0, 1, 1], [], []>} : vector<16x16xbf16>, vector<16x160xbf16>, vector<16x160xf32> -> vector<16x160xf32>
    %250 = arith.addf %245, %249 : vector<16x160xf32>
    %c13 = arith.constant 13 : index
    %c0_180 = arith.constant 0 : index
    %c0_181 = arith.constant 0 : index
    %251 = vector.load %arg6[%c13, %c0_180, %c0_181] : memref<25x16x16xbf16, #tpu.memory_space<vmem>>, vector<1x16x16xbf16>
    %252 = vector.shape_cast %251 : vector<1x16x16xbf16> to vector<16x16xbf16>
    %253 = vector.extract_strided_slice %181 {offsets = [0, 52], sizes = [16, 160], strides = [1, 1]} : vector<16x256xbf16> to vector<16x160xbf16>
    %cst_182 = arith.constant dense<0.000000e+00> : vector<16x160xf32>
    %254 = tpu.matmul %252, %253, %cst_182 {dimension_numbers = #tpu.dot_dimension_numbers<[1], [0], [0], [1], [0, 0, 1, 1], [], []>} : vector<16x16xbf16>, vector<16x160xbf16>, vector<16x160xf32> -> vector<16x160xf32>
    %255 = arith.addf %250, %254 : vector<16x160xf32>
    %c14 = arith.constant 14 : index
    %c0_183 = arith.constant 0 : index
    %c0_184 = arith.constant 0 : index
    %256 = vector.load %arg6[%c14, %c0_183, %c0_184] : memref<25x16x16xbf16, #tpu.memory_space<vmem>>, vector<1x16x16xbf16>
    %257 = vector.shape_cast %256 : vector<1x16x16xbf16> to vector<16x16xbf16>
    %258 = vector.extract_strided_slice %181 {offsets = [0, 53], sizes = [16, 160], strides = [1, 1]} : vector<16x256xbf16> to vector<16x160xbf16>
    %cst_185 = arith.constant dense<0.000000e+00> : vector<16x160xf32>
    %259 = tpu.matmul %257, %258, %cst_185 {dimension_numbers = #tpu.dot_dimension_numbers<[1], [0], [0], [1], [0, 0, 1, 1], [], []>} : vector<16x16xbf16>, vector<16x160xbf16>, vector<16x160xf32> -> vector<16x160xf32>
    %260 = arith.addf %255, %259 : vector<16x160xf32>
    %c15 = arith.constant 15 : index
    %c0_186 = arith.constant 0 : index
    %c0_187 = arith.constant 0 : index
    %261 = vector.load %arg6[%c15, %c0_186, %c0_187] : memref<25x16x16xbf16, #tpu.memory_space<vmem>>, vector<1x16x16xbf16>
    %262 = vector.shape_cast %261 : vector<1x16x16xbf16> to vector<16x16xbf16>
    %263 = vector.extract_strided_slice %181 {offsets = [0, 65], sizes = [16, 160], strides = [1, 1]} : vector<16x256xbf16> to vector<16x160xbf16>
    %cst_188 = arith.constant dense<0.000000e+00> : vector<16x160xf32>
    %264 = tpu.matmul %262, %263, %cst_188 {dimension_numbers = #tpu.dot_dimension_numbers<[1], [0], [0], [1], [0, 0, 1, 1], [], []>} : vector<16x16xbf16>, vector<16x160xbf16>, vector<16x160xf32> -> vector<16x160xf32>
    %265 = arith.addf %260, %264 : vector<16x160xf32>
    %c16 = arith.constant 16 : index
    %c0_189 = arith.constant 0 : index
    %c0_190 = arith.constant 0 : index
    %266 = vector.load %arg6[%c16, %c0_189, %c0_190] : memref<25x16x16xbf16, #tpu.memory_space<vmem>>, vector<1x16x16xbf16>
    %267 = vector.shape_cast %266 : vector<1x16x16xbf16> to vector<16x16xbf16>
    %268 = vector.extract_strided_slice %181 {offsets = [0, 66], sizes = [16, 160], strides = [1, 1]} : vector<16x256xbf16> to vector<16x160xbf16>
    %cst_191 = arith.constant dense<0.000000e+00> : vector<16x160xf32>
    %269 = tpu.matmul %267, %268, %cst_191 {dimension_numbers = #tpu.dot_dimension_numbers<[1], [0], [0], [1], [0, 0, 1, 1], [], []>} : vector<16x16xbf16>, vector<16x160xbf16>, vector<16x160xf32> -> vector<16x160xf32>
    %270 = arith.addf %265, %269 : vector<16x160xf32>
    %c17_192 = arith.constant 17 : index
    %c0_193 = arith.constant 0 : index
    %c0_194 = arith.constant 0 : index
    %271 = vector.load %arg6[%c17_192, %c0_193, %c0_194] : memref<25x16x16xbf16, #tpu.memory_space<vmem>>, vector<1x16x16xbf16>
    %272 = vector.shape_cast %271 : vector<1x16x16xbf16> to vector<16x16xbf16>
    %273 = vector.extract_strided_slice %181 {offsets = [0, 67], sizes = [16, 160], strides = [1, 1]} : vector<16x256xbf16> to vector<16x160xbf16>
    %cst_195 = arith.constant dense<0.000000e+00> : vector<16x160xf32>
    %274 = tpu.matmul %272, %273, %cst_195 {dimension_numbers = #tpu.dot_dimension_numbers<[1], [0], [0], [1], [0, 0, 1, 1], [], []>} : vector<16x16xbf16>, vector<16x160xbf16>, vector<16x160xf32> -> vector<16x160xf32>
    %275 = arith.addf %270, %274 : vector<16x160xf32>
    %c18 = arith.constant 18 : index
    %c0_196 = arith.constant 0 : index
    %c0_197 = arith.constant 0 : index
    %276 = vector.load %arg6[%c18, %c0_196, %c0_197] : memref<25x16x16xbf16, #tpu.memory_space<vmem>>, vector<1x16x16xbf16>
    %277 = vector.shape_cast %276 : vector<1x16x16xbf16> to vector<16x16xbf16>
    %278 = vector.extract_strided_slice %181 {offsets = [0, 68], sizes = [16, 160], strides = [1, 1]} : vector<16x256xbf16> to vector<16x160xbf16>
    %cst_198 = arith.constant dense<0.000000e+00> : vector<16x160xf32>
    %279 = tpu.matmul %277, %278, %cst_198 {dimension_numbers = #tpu.dot_dimension_numbers<[1], [0], [0], [1], [0, 0, 1, 1], [], []>} : vector<16x16xbf16>, vector<16x160xbf16>, vector<16x160xf32> -> vector<16x160xf32>
    %280 = arith.addf %275, %279 : vector<16x160xf32>
    %c19 = arith.constant 19 : index
    %c0_199 = arith.constant 0 : index
    %c0_200 = arith.constant 0 : index
    %281 = vector.load %arg6[%c19, %c0_199, %c0_200] : memref<25x16x16xbf16, #tpu.memory_space<vmem>>, vector<1x16x16xbf16>
    %282 = vector.shape_cast %281 : vector<1x16x16xbf16> to vector<16x16xbf16>
    %283 = vector.extract_strided_slice %181 {offsets = [0, 69], sizes = [16, 160], strides = [1, 1]} : vector<16x256xbf16> to vector<16x160xbf16>
    %cst_201 = arith.constant dense<0.000000e+00> : vector<16x160xf32>
    %284 = tpu.matmul %282, %283, %cst_201 {dimension_numbers = #tpu.dot_dimension_numbers<[1], [0], [0], [1], [0, 0, 1, 1], [], []>} : vector<16x16xbf16>, vector<16x160xbf16>, vector<16x160xf32> -> vector<16x160xf32>
    %285 = arith.addf %280, %284 : vector<16x160xf32>
    %c20 = arith.constant 20 : index
    %c0_202 = arith.constant 0 : index
    %c0_203 = arith.constant 0 : index
    %286 = vector.load %arg6[%c20, %c0_202, %c0_203] : memref<25x16x16xbf16, #tpu.memory_space<vmem>>, vector<1x16x16xbf16>
    %287 = vector.shape_cast %286 : vector<1x16x16xbf16> to vector<16x16xbf16>
    %288 = vector.extract_strided_slice %181 {offsets = [0, 81], sizes = [16, 160], strides = [1, 1]} : vector<16x256xbf16> to vector<16x160xbf16>
    %cst_204 = arith.constant dense<0.000000e+00> : vector<16x160xf32>
    %289 = tpu.matmul %287, %288, %cst_204 {dimension_numbers = #tpu.dot_dimension_numbers<[1], [0], [0], [1], [0, 0, 1, 1], [], []>} : vector<16x16xbf16>, vector<16x160xbf16>, vector<16x160xf32> -> vector<16x160xf32>
    %290 = arith.addf %285, %289 : vector<16x160xf32>
    %c21 = arith.constant 21 : index
    %c0_205 = arith.constant 0 : index
    %c0_206 = arith.constant 0 : index
    %291 = vector.load %arg6[%c21, %c0_205, %c0_206] : memref<25x16x16xbf16, #tpu.memory_space<vmem>>, vector<1x16x16xbf16>
    %292 = vector.shape_cast %291 : vector<1x16x16xbf16> to vector<16x16xbf16>
    %293 = vector.extract_strided_slice %181 {offsets = [0, 82], sizes = [16, 160], strides = [1, 1]} : vector<16x256xbf16> to vector<16x160xbf16>
    %cst_207 = arith.constant dense<0.000000e+00> : vector<16x160xf32>
    %294 = tpu.matmul %292, %293, %cst_207 {dimension_numbers = #tpu.dot_dimension_numbers<[1], [0], [0], [1], [0, 0, 1, 1], [], []>} : vector<16x16xbf16>, vector<16x160xbf16>, vector<16x160xf32> -> vector<16x160xf32>
    %295 = arith.addf %290, %294 : vector<16x160xf32>
    %c22 = arith.constant 22 : index
    %c0_208 = arith.constant 0 : index
    %c0_209 = arith.constant 0 : index
    %296 = vector.load %arg6[%c22, %c0_208, %c0_209] : memref<25x16x16xbf16, #tpu.memory_space<vmem>>, vector<1x16x16xbf16>
    %297 = vector.shape_cast %296 : vector<1x16x16xbf16> to vector<16x16xbf16>
    %298 = vector.extract_strided_slice %181 {offsets = [0, 83], sizes = [16, 160], strides = [1, 1]} : vector<16x256xbf16> to vector<16x160xbf16>
    %cst_210 = arith.constant dense<0.000000e+00> : vector<16x160xf32>
    %299 = tpu.matmul %297, %298, %cst_210 {dimension_numbers = #tpu.dot_dimension_numbers<[1], [0], [0], [1], [0, 0, 1, 1], [], []>} : vector<16x16xbf16>, vector<16x160xbf16>, vector<16x160xf32> -> vector<16x160xf32>
    %300 = arith.addf %295, %299 : vector<16x160xf32>
    %c23 = arith.constant 23 : index
    %c0_211 = arith.constant 0 : index
    %c0_212 = arith.constant 0 : index
    %301 = vector.load %arg6[%c23, %c0_211, %c0_212] : memref<25x16x16xbf16, #tpu.memory_space<vmem>>, vector<1x16x16xbf16>
    %302 = vector.shape_cast %301 : vector<1x16x16xbf16> to vector<16x16xbf16>
    %303 = vector.extract_strided_slice %181 {offsets = [0, 84], sizes = [16, 160], strides = [1, 1]} : vector<16x256xbf16> to vector<16x160xbf16>
    %cst_213 = arith.constant dense<0.000000e+00> : vector<16x160xf32>
    %304 = tpu.matmul %302, %303, %cst_213 {dimension_numbers = #tpu.dot_dimension_numbers<[1], [0], [0], [1], [0, 0, 1, 1], [], []>} : vector<16x16xbf16>, vector<16x160xbf16>, vector<16x160xf32> -> vector<16x160xf32>
    %305 = arith.addf %300, %304 : vector<16x160xf32>
    %c24 = arith.constant 24 : index
    %c0_214 = arith.constant 0 : index
    %c0_215 = arith.constant 0 : index
    %306 = vector.load %arg6[%c24, %c0_214, %c0_215] : memref<25x16x16xbf16, #tpu.memory_space<vmem>>, vector<1x16x16xbf16>
    %307 = vector.shape_cast %306 : vector<1x16x16xbf16> to vector<16x16xbf16>
    %308 = vector.extract_strided_slice %181 {offsets = [0, 85], sizes = [16, 160], strides = [1, 1]} : vector<16x256xbf16> to vector<16x160xbf16>
    %cst_216 = arith.constant dense<0.000000e+00> : vector<16x160xf32>
    %309 = tpu.matmul %307, %308, %cst_216 {dimension_numbers = #tpu.dot_dimension_numbers<[1], [0], [0], [1], [0, 0, 1, 1], [], []>} : vector<16x16xbf16>, vector<16x160xbf16>, vector<16x160xf32> -> vector<16x160xf32>
    %310 = arith.addf %305, %309 : vector<16x160xf32>
    %311 = vector.extract_strided_slice %310 {offsets = [0, 0], sizes = [16, 144], strides = [1, 1]} : vector<16x160xf32> to vector<16x144xf32>
    %312 = vector.extract_strided_slice %310 {offsets = [0, 16], sizes = [16, 144], strides = [1, 1]} : vector<16x160xf32> to vector<16x144xf32>
    %313 = arith.maximumf %311, %312 : vector<16x144xf32>
    %314 = vector.extract_strided_slice %313 {offsets = [0, 0], sizes = [16, 143], strides = [1, 1]} : vector<16x144xf32> to vector<16x143xf32>
    %315 = vector.extract_strided_slice %313 {offsets = [0, 1], sizes = [16, 143], strides = [1, 1]} : vector<16x144xf32> to vector<16x143xf32>
    %316 = arith.maximumf %314, %315 : vector<16x143xf32>
    %317 = arith.truncf %316 : vector<16x143xf32> to vector<16x143xbf16>
    %c0_217 = arith.constant 0 : index
    %c0_218 = arith.constant 0 : index
    %318 = vector.load %arg8[%c0_217, %c0_218] : memref<143x32xbf16, #tpu.memory_space<vmem>>, vector<143x32xbf16>
    %cst_219 = arith.constant dense<0.000000e+00> : vector<16x32xf32>
    %319 = tpu.matmul %317, %318, %cst_219 {dimension_numbers = #tpu.dot_dimension_numbers<[1], [0], [0], [1], [0, 0, 1, 1], [], []>} : vector<16x143xbf16>, vector<143x32xbf16>, vector<16x32xf32> -> vector<16x32xf32>
    %c0_220 = arith.constant 0 : index
    %c0_221 = arith.constant 0 : index
    %320 = vector.load %arg10[%c0_220, %c0_221] : memref<1x120xf32, #tpu.memory_space<vmem>>, vector<1x120xf32>
    %321 = vector.extract_strided_slice %319 {offsets = [0, 0], sizes = [1, 32], strides = [1, 1]} : vector<16x32xf32> to vector<1x32xf32>
    %322 = arith.truncf %321 : vector<1x32xf32> to vector<1x32xbf16>
    %c0_222 = arith.constant 0 : index
    %c0_223 = arith.constant 0 : index
    %c0_224 = arith.constant 0 : index
    %323 = vector.load %arg9[%c0_222, %c0_223, %c0_224] : memref<16x32x120xbf16, #tpu.memory_space<vmem>>, vector<1x32x120xbf16>
    %324 = vector.shape_cast %323 : vector<1x32x120xbf16> to vector<32x120xbf16>
    %cst_225 = arith.constant dense<0.000000e+00> : vector<1x120xf32>
    %325 = tpu.matmul %322, %324, %cst_225 {dimension_numbers = #tpu.dot_dimension_numbers<[1], [0], [0], [1], [0, 0, 1, 1], [], []>} : vector<1x32xbf16>, vector<32x120xbf16>, vector<1x120xf32> -> vector<1x120xf32>
    %326 = arith.addf %320, %325 : vector<1x120xf32>
    %327 = vector.extract_strided_slice %319 {offsets = [1, 0], sizes = [1, 32], strides = [1, 1]} : vector<16x32xf32> to vector<1x32xf32>
    %328 = arith.truncf %327 : vector<1x32xf32> to vector<1x32xbf16>
    %c1_226 = arith.constant 1 : index
    %c0_227 = arith.constant 0 : index
    %c0_228 = arith.constant 0 : index
    %329 = vector.load %arg9[%c1_226, %c0_227, %c0_228] : memref<16x32x120xbf16, #tpu.memory_space<vmem>>, vector<1x32x120xbf16>
    %330 = vector.shape_cast %329 : vector<1x32x120xbf16> to vector<32x120xbf16>
    %cst_229 = arith.constant dense<0.000000e+00> : vector<1x120xf32>
    %331 = tpu.matmul %328, %330, %cst_229 {dimension_numbers = #tpu.dot_dimension_numbers<[1], [0], [0], [1], [0, 0, 1, 1], [], []>} : vector<1x32xbf16>, vector<32x120xbf16>, vector<1x120xf32> -> vector<1x120xf32>
    %332 = arith.addf %326, %331 : vector<1x120xf32>
    %333 = vector.extract_strided_slice %319 {offsets = [2, 0], sizes = [1, 32], strides = [1, 1]} : vector<16x32xf32> to vector<1x32xf32>
    %334 = arith.truncf %333 : vector<1x32xf32> to vector<1x32xbf16>
    %c2_230 = arith.constant 2 : index
    %c0_231 = arith.constant 0 : index
    %c0_232 = arith.constant 0 : index
    %335 = vector.load %arg9[%c2_230, %c0_231, %c0_232] : memref<16x32x120xbf16, #tpu.memory_space<vmem>>, vector<1x32x120xbf16>
    %336 = vector.shape_cast %335 : vector<1x32x120xbf16> to vector<32x120xbf16>
    %cst_233 = arith.constant dense<0.000000e+00> : vector<1x120xf32>
    %337 = tpu.matmul %334, %336, %cst_233 {dimension_numbers = #tpu.dot_dimension_numbers<[1], [0], [0], [1], [0, 0, 1, 1], [], []>} : vector<1x32xbf16>, vector<32x120xbf16>, vector<1x120xf32> -> vector<1x120xf32>
    %338 = arith.addf %332, %337 : vector<1x120xf32>
    %339 = vector.extract_strided_slice %319 {offsets = [3, 0], sizes = [1, 32], strides = [1, 1]} : vector<16x32xf32> to vector<1x32xf32>
    %340 = arith.truncf %339 : vector<1x32xf32> to vector<1x32xbf16>
    %c3_234 = arith.constant 3 : index
    %c0_235 = arith.constant 0 : index
    %c0_236 = arith.constant 0 : index
    %341 = vector.load %arg9[%c3_234, %c0_235, %c0_236] : memref<16x32x120xbf16, #tpu.memory_space<vmem>>, vector<1x32x120xbf16>
    %342 = vector.shape_cast %341 : vector<1x32x120xbf16> to vector<32x120xbf16>
    %cst_237 = arith.constant dense<0.000000e+00> : vector<1x120xf32>
    %343 = tpu.matmul %340, %342, %cst_237 {dimension_numbers = #tpu.dot_dimension_numbers<[1], [0], [0], [1], [0, 0, 1, 1], [], []>} : vector<1x32xbf16>, vector<32x120xbf16>, vector<1x120xf32> -> vector<1x120xf32>
    %344 = arith.addf %338, %343 : vector<1x120xf32>
    %345 = vector.extract_strided_slice %319 {offsets = [4, 0], sizes = [1, 32], strides = [1, 1]} : vector<16x32xf32> to vector<1x32xf32>
    %346 = arith.truncf %345 : vector<1x32xf32> to vector<1x32xbf16>
    %c4_238 = arith.constant 4 : index
    %c0_239 = arith.constant 0 : index
    %c0_240 = arith.constant 0 : index
    %347 = vector.load %arg9[%c4_238, %c0_239, %c0_240] : memref<16x32x120xbf16, #tpu.memory_space<vmem>>, vector<1x32x120xbf16>
    %348 = vector.shape_cast %347 : vector<1x32x120xbf16> to vector<32x120xbf16>
    %cst_241 = arith.constant dense<0.000000e+00> : vector<1x120xf32>
    %349 = tpu.matmul %346, %348, %cst_241 {dimension_numbers = #tpu.dot_dimension_numbers<[1], [0], [0], [1], [0, 0, 1, 1], [], []>} : vector<1x32xbf16>, vector<32x120xbf16>, vector<1x120xf32> -> vector<1x120xf32>
    %350 = arith.addf %344, %349 : vector<1x120xf32>
    %351 = vector.extract_strided_slice %319 {offsets = [5, 0], sizes = [1, 32], strides = [1, 1]} : vector<16x32xf32> to vector<1x32xf32>
    %352 = arith.truncf %351 : vector<1x32xf32> to vector<1x32xbf16>
    %c5_242 = arith.constant 5 : index
    %c0_243 = arith.constant 0 : index
    %c0_244 = arith.constant 0 : index
    %353 = vector.load %arg9[%c5_242, %c0_243, %c0_244] : memref<16x32x120xbf16, #tpu.memory_space<vmem>>, vector<1x32x120xbf16>
    %354 = vector.shape_cast %353 : vector<1x32x120xbf16> to vector<32x120xbf16>
    %cst_245 = arith.constant dense<0.000000e+00> : vector<1x120xf32>
    %355 = tpu.matmul %352, %354, %cst_245 {dimension_numbers = #tpu.dot_dimension_numbers<[1], [0], [0], [1], [0, 0, 1, 1], [], []>} : vector<1x32xbf16>, vector<32x120xbf16>, vector<1x120xf32> -> vector<1x120xf32>
    %356 = arith.addf %350, %355 : vector<1x120xf32>
    %357 = vector.extract_strided_slice %319 {offsets = [6, 0], sizes = [1, 32], strides = [1, 1]} : vector<16x32xf32> to vector<1x32xf32>
    %358 = arith.truncf %357 : vector<1x32xf32> to vector<1x32xbf16>
    %c6_246 = arith.constant 6 : index
    %c0_247 = arith.constant 0 : index
    %c0_248 = arith.constant 0 : index
    %359 = vector.load %arg9[%c6_246, %c0_247, %c0_248] : memref<16x32x120xbf16, #tpu.memory_space<vmem>>, vector<1x32x120xbf16>
    %360 = vector.shape_cast %359 : vector<1x32x120xbf16> to vector<32x120xbf16>
    %cst_249 = arith.constant dense<0.000000e+00> : vector<1x120xf32>
    %361 = tpu.matmul %358, %360, %cst_249 {dimension_numbers = #tpu.dot_dimension_numbers<[1], [0], [0], [1], [0, 0, 1, 1], [], []>} : vector<1x32xbf16>, vector<32x120xbf16>, vector<1x120xf32> -> vector<1x120xf32>
    %362 = arith.addf %356, %361 : vector<1x120xf32>
    %363 = vector.extract_strided_slice %319 {offsets = [7, 0], sizes = [1, 32], strides = [1, 1]} : vector<16x32xf32> to vector<1x32xf32>
    %364 = arith.truncf %363 : vector<1x32xf32> to vector<1x32xbf16>
    %c7_250 = arith.constant 7 : index
    %c0_251 = arith.constant 0 : index
    %c0_252 = arith.constant 0 : index
    %365 = vector.load %arg9[%c7_250, %c0_251, %c0_252] : memref<16x32x120xbf16, #tpu.memory_space<vmem>>, vector<1x32x120xbf16>
    %366 = vector.shape_cast %365 : vector<1x32x120xbf16> to vector<32x120xbf16>
    %cst_253 = arith.constant dense<0.000000e+00> : vector<1x120xf32>
    %367 = tpu.matmul %364, %366, %cst_253 {dimension_numbers = #tpu.dot_dimension_numbers<[1], [0], [0], [1], [0, 0, 1, 1], [], []>} : vector<1x32xbf16>, vector<32x120xbf16>, vector<1x120xf32> -> vector<1x120xf32>
    %368 = arith.addf %362, %367 : vector<1x120xf32>
    %369 = vector.extract_strided_slice %319 {offsets = [8, 0], sizes = [1, 32], strides = [1, 1]} : vector<16x32xf32> to vector<1x32xf32>
    %370 = arith.truncf %369 : vector<1x32xf32> to vector<1x32xbf16>
    %c8_254 = arith.constant 8 : index
    %c0_255 = arith.constant 0 : index
    %c0_256 = arith.constant 0 : index
    %371 = vector.load %arg9[%c8_254, %c0_255, %c0_256] : memref<16x32x120xbf16, #tpu.memory_space<vmem>>, vector<1x32x120xbf16>
    %372 = vector.shape_cast %371 : vector<1x32x120xbf16> to vector<32x120xbf16>
    %cst_257 = arith.constant dense<0.000000e+00> : vector<1x120xf32>
    %373 = tpu.matmul %370, %372, %cst_257 {dimension_numbers = #tpu.dot_dimension_numbers<[1], [0], [0], [1], [0, 0, 1, 1], [], []>} : vector<1x32xbf16>, vector<32x120xbf16>, vector<1x120xf32> -> vector<1x120xf32>
    %374 = arith.addf %368, %373 : vector<1x120xf32>
    %375 = vector.extract_strided_slice %319 {offsets = [9, 0], sizes = [1, 32], strides = [1, 1]} : vector<16x32xf32> to vector<1x32xf32>
    %376 = arith.truncf %375 : vector<1x32xf32> to vector<1x32xbf16>
    %c9_258 = arith.constant 9 : index
    %c0_259 = arith.constant 0 : index
    %c0_260 = arith.constant 0 : index
    %377 = vector.load %arg9[%c9_258, %c0_259, %c0_260] : memref<16x32x120xbf16, #tpu.memory_space<vmem>>, vector<1x32x120xbf16>
    %378 = vector.shape_cast %377 : vector<1x32x120xbf16> to vector<32x120xbf16>
    %cst_261 = arith.constant dense<0.000000e+00> : vector<1x120xf32>
    %379 = tpu.matmul %376, %378, %cst_261 {dimension_numbers = #tpu.dot_dimension_numbers<[1], [0], [0], [1], [0, 0, 1, 1], [], []>} : vector<1x32xbf16>, vector<32x120xbf16>, vector<1x120xf32> -> vector<1x120xf32>
    %380 = arith.addf %374, %379 : vector<1x120xf32>
    %381 = vector.extract_strided_slice %319 {offsets = [10, 0], sizes = [1, 32], strides = [1, 1]} : vector<16x32xf32> to vector<1x32xf32>
    %382 = arith.truncf %381 : vector<1x32xf32> to vector<1x32xbf16>
    %c10_262 = arith.constant 10 : index
    %c0_263 = arith.constant 0 : index
    %c0_264 = arith.constant 0 : index
    %383 = vector.load %arg9[%c10_262, %c0_263, %c0_264] : memref<16x32x120xbf16, #tpu.memory_space<vmem>>, vector<1x32x120xbf16>
    %384 = vector.shape_cast %383 : vector<1x32x120xbf16> to vector<32x120xbf16>
    %cst_265 = arith.constant dense<0.000000e+00> : vector<1x120xf32>
    %385 = tpu.matmul %382, %384, %cst_265 {dimension_numbers = #tpu.dot_dimension_numbers<[1], [0], [0], [1], [0, 0, 1, 1], [], []>} : vector<1x32xbf16>, vector<32x120xbf16>, vector<1x120xf32> -> vector<1x120xf32>
    %386 = arith.addf %380, %385 : vector<1x120xf32>
    %387 = vector.extract_strided_slice %319 {offsets = [11, 0], sizes = [1, 32], strides = [1, 1]} : vector<16x32xf32> to vector<1x32xf32>
    %388 = arith.truncf %387 : vector<1x32xf32> to vector<1x32xbf16>
    %c11_266 = arith.constant 11 : index
    %c0_267 = arith.constant 0 : index
    %c0_268 = arith.constant 0 : index
    %389 = vector.load %arg9[%c11_266, %c0_267, %c0_268] : memref<16x32x120xbf16, #tpu.memory_space<vmem>>, vector<1x32x120xbf16>
    %390 = vector.shape_cast %389 : vector<1x32x120xbf16> to vector<32x120xbf16>
    %cst_269 = arith.constant dense<0.000000e+00> : vector<1x120xf32>
    %391 = tpu.matmul %388, %390, %cst_269 {dimension_numbers = #tpu.dot_dimension_numbers<[1], [0], [0], [1], [0, 0, 1, 1], [], []>} : vector<1x32xbf16>, vector<32x120xbf16>, vector<1x120xf32> -> vector<1x120xf32>
    %392 = arith.addf %386, %391 : vector<1x120xf32>
    %393 = vector.extract_strided_slice %319 {offsets = [12, 0], sizes = [1, 32], strides = [1, 1]} : vector<16x32xf32> to vector<1x32xf32>
    %394 = arith.truncf %393 : vector<1x32xf32> to vector<1x32xbf16>
    %c12_270 = arith.constant 12 : index
    %c0_271 = arith.constant 0 : index
    %c0_272 = arith.constant 0 : index
    %395 = vector.load %arg9[%c12_270, %c0_271, %c0_272] : memref<16x32x120xbf16, #tpu.memory_space<vmem>>, vector<1x32x120xbf16>
    %396 = vector.shape_cast %395 : vector<1x32x120xbf16> to vector<32x120xbf16>
    %cst_273 = arith.constant dense<0.000000e+00> : vector<1x120xf32>
    %397 = tpu.matmul %394, %396, %cst_273 {dimension_numbers = #tpu.dot_dimension_numbers<[1], [0], [0], [1], [0, 0, 1, 1], [], []>} : vector<1x32xbf16>, vector<32x120xbf16>, vector<1x120xf32> -> vector<1x120xf32>
    %398 = arith.addf %392, %397 : vector<1x120xf32>
    %399 = vector.extract_strided_slice %319 {offsets = [13, 0], sizes = [1, 32], strides = [1, 1]} : vector<16x32xf32> to vector<1x32xf32>
    %400 = arith.truncf %399 : vector<1x32xf32> to vector<1x32xbf16>
    %c13_274 = arith.constant 13 : index
    %c0_275 = arith.constant 0 : index
    %c0_276 = arith.constant 0 : index
    %401 = vector.load %arg9[%c13_274, %c0_275, %c0_276] : memref<16x32x120xbf16, #tpu.memory_space<vmem>>, vector<1x32x120xbf16>
    %402 = vector.shape_cast %401 : vector<1x32x120xbf16> to vector<32x120xbf16>
    %cst_277 = arith.constant dense<0.000000e+00> : vector<1x120xf32>
    %403 = tpu.matmul %400, %402, %cst_277 {dimension_numbers = #tpu.dot_dimension_numbers<[1], [0], [0], [1], [0, 0, 1, 1], [], []>} : vector<1x32xbf16>, vector<32x120xbf16>, vector<1x120xf32> -> vector<1x120xf32>
    %404 = arith.addf %398, %403 : vector<1x120xf32>
    %405 = vector.extract_strided_slice %319 {offsets = [14, 0], sizes = [1, 32], strides = [1, 1]} : vector<16x32xf32> to vector<1x32xf32>
    %406 = arith.truncf %405 : vector<1x32xf32> to vector<1x32xbf16>
    %c14_278 = arith.constant 14 : index
    %c0_279 = arith.constant 0 : index
    %c0_280 = arith.constant 0 : index
    %407 = vector.load %arg9[%c14_278, %c0_279, %c0_280] : memref<16x32x120xbf16, #tpu.memory_space<vmem>>, vector<1x32x120xbf16>
    %408 = vector.shape_cast %407 : vector<1x32x120xbf16> to vector<32x120xbf16>
    %cst_281 = arith.constant dense<0.000000e+00> : vector<1x120xf32>
    %409 = tpu.matmul %406, %408, %cst_281 {dimension_numbers = #tpu.dot_dimension_numbers<[1], [0], [0], [1], [0, 0, 1, 1], [], []>} : vector<1x32xbf16>, vector<32x120xbf16>, vector<1x120xf32> -> vector<1x120xf32>
    %410 = arith.addf %404, %409 : vector<1x120xf32>
    %411 = vector.extract_strided_slice %319 {offsets = [15, 0], sizes = [1, 32], strides = [1, 1]} : vector<16x32xf32> to vector<1x32xf32>
    %412 = arith.truncf %411 : vector<1x32xf32> to vector<1x32xbf16>
    %c15_282 = arith.constant 15 : index
    %c0_283 = arith.constant 0 : index
    %c0_284 = arith.constant 0 : index
    %413 = vector.load %arg9[%c15_282, %c0_283, %c0_284] : memref<16x32x120xbf16, #tpu.memory_space<vmem>>, vector<1x32x120xbf16>
    %414 = vector.shape_cast %413 : vector<1x32x120xbf16> to vector<32x120xbf16>
    %cst_285 = arith.constant dense<0.000000e+00> : vector<1x120xf32>
    %415 = tpu.matmul %412, %414, %cst_285 {dimension_numbers = #tpu.dot_dimension_numbers<[1], [0], [0], [1], [0, 0, 1, 1], [], []>} : vector<1x32xbf16>, vector<32x120xbf16>, vector<1x120xf32> -> vector<1x120xf32>
    %416 = arith.addf %410, %415 : vector<1x120xf32>
    %cst_286 = arith.constant 0.000000e+00 : f32
    %417 = vector.broadcast %cst_286 : f32 to vector<1x120xf32>
    %418 = arith.maximumf %416, %417 : vector<1x120xf32>
    %419 = arith.truncf %418 : vector<1x120xf32> to vector<1x120xbf16>
    %c0_287 = arith.constant 0 : index
    %c0_288 = arith.constant 0 : index
    %420 = vector.load %arg11[%c0_287, %c0_288] : memref<120x84xbf16, #tpu.memory_space<vmem>>, vector<120x84xbf16>
    %cst_289 = arith.constant dense<0.000000e+00> : vector<1x84xf32>
    %421 = tpu.matmul %419, %420, %cst_289 {dimension_numbers = #tpu.dot_dimension_numbers<[1], [0], [0], [1], [0, 0, 1, 1], [], []>} : vector<1x120xbf16>, vector<120x84xbf16>, vector<1x84xf32> -> vector<1x84xf32>
    %c0_290 = arith.constant 0 : index
    %c0_291 = arith.constant 0 : index
    %422 = vector.load %arg12[%c0_290, %c0_291] : memref<1x84xf32, #tpu.memory_space<vmem>>, vector<1x84xf32>
    %423 = arith.addf %421, %422 : vector<1x84xf32>
    %cst_292 = arith.constant 0.000000e+00 : f32
    %424 = vector.broadcast %cst_292 : f32 to vector<1x84xf32>
    %425 = arith.maximumf %423, %424 : vector<1x84xf32>
    %426 = arith.truncf %425 : vector<1x84xf32> to vector<1x84xbf16>
    %c0_293 = arith.constant 0 : index
    %c0_294 = arith.constant 0 : index
    %427 = vector.load %arg13[%c0_293, %c0_294] : memref<84x10xbf16, #tpu.memory_space<vmem>>, vector<84x10xbf16>
    %cst_295 = arith.constant dense<0.000000e+00> : vector<1x10xf32>
    %428 = tpu.matmul %426, %427, %cst_295 {dimension_numbers = #tpu.dot_dimension_numbers<[1], [0], [0], [1], [0, 0, 1, 1], [], []>} : vector<1x84xbf16>, vector<84x10xbf16>, vector<1x10xf32> -> vector<1x10xf32>
    %c0_296 = arith.constant 0 : index
    %c0_297 = arith.constant 0 : index
    %429 = vector.load %arg14[%c0_296, %c0_297] : memref<1x10xf32, #tpu.memory_space<vmem>>, vector<1x10xf32>
    %430 = arith.addf %428, %429 : vector<1x10xf32>
    %c0_298 = arith.constant 0 : index
    %c0_299 = arith.constant 0 : index
    %c0_300 = arith.constant 0 : index
    %431 = vector.load %arg15[%c0_298, %c0_299, %c0_300] : memref<1x1x10xf32, #tpu.memory_space<vmem>>, vector<1x1x10xf32>
    %432 = vector.shape_cast %431 : vector<1x1x10xf32> to vector<1x10xf32>
    %433 = vector.shape_cast %430 : vector<1x10xf32> to vector<1x1x10xf32>
    tpu.vector_store %arg15[%c0_298, %c0_299, %c0_300], %433 {strides = array<i32>} : memref<1x1x10xf32, #tpu.memory_space<vmem>>, vector<1x1x10xf32>,
    return
  }
  func.func @transform_0(%arg0: i32) -> (i32, i32, i32, i32) {
    %c0_i32 = arith.constant 0 : i32
    %c0_i32_0 = arith.constant 0 : i32
    %c0_i32_1 = arith.constant 0 : i32
    %c0_i32_2 = arith.constant 0 : i32
    return %arg0, %c0_i32, %c0_i32_0, %c0_i32_1 : i32, i32, i32, i32
  }
  func.func @transform_1(%arg0: i32) -> (i32, i32) {
    %c0_i32 = arith.constant 0 : i32
    %c0_i32_0 = arith.constant 0 : i32
    %c0_i32_1 = arith.constant 0 : i32
    return %c0_i32, %c0_i32_0 : i32, i32
  }
  func.func @transform_2(%arg0: i32) -> (i32, i32) {
    %c0_i32 = arith.constant 0 : i32
    %c0_i32_0 = arith.constant 0 : i32
    %c0_i32_1 = arith.constant 0 : i32
    return %c0_i32, %c0_i32_0 : i32, i32
  }
  func.func @transform_3(%arg0: i32) -> (i32, i32, i32) {
    %c0_i32 = arith.constant 0 : i32
    %c0_i32_0 = arith.constant 0 : i32
    %c0_i32_1 = arith.constant 0 : i32
    %c0_i32_2 = arith.constant 0 : i32
    return %c0_i32, %c0_i32_0, %c0_i32_1 : i32, i32, i32
  }
  func.func @transform_4(%arg0: i32) -> (i32, i32) {
    %c0_i32 = arith.constant 0 : i32
    %c0_i32_0 = arith.constant 0 : i32
    %c0_i32_1 = arith.constant 0 : i32
    return %c0_i32, %c0_i32_0 : i32, i32
  }
  func.func @transform_5(%arg0: i32) -> (i32, i32, i32) {
    %c0_i32 = arith.constant 0 : i32
    %c0_i32_0 = arith.constant 0 : i32
    %c0_i32_1 = arith.constant 0 : i32
    %c0_i32_2 = arith.constant 0 : i32
    return %c0_i32, %c0_i32_0, %c0_i32_1 : i32, i32, i32
  }
  func.func @transform_6(%arg0: i32) -> (i32, i32) {
    %c0_i32 = arith.constant 0 : i32
    %c0_i32_0 = arith.constant 0 : i32
    %c0_i32_1 = arith.constant 0 : i32
    return %c0_i32, %c0_i32_0 : i32, i32
  }
  func.func @transform_7(%arg0: i32) -> (i32, i32) {
    %c0_i32 = arith.constant 0 : i32
    %c0_i32_0 = arith.constant 0 : i32
    %c0_i32_1 = arith.constant 0 : i32
    return %c0_i32, %c0_i32_0 : i32, i32
  }
  func.func @transform_8(%arg0: i32) -> (i32, i32, i32) {
    %c0_i32 = arith.constant 0 : i32
    %c0_i32_0 = arith.constant 0 : i32
    %c0_i32_1 = arith.constant 0 : i32
    %c0_i32_2 = arith.constant 0 : i32
    return %c0_i32, %c0_i32_0, %c0_i32_1 : i32, i32, i32
  }
  func.func @transform_9(%arg0: i32) -> (i32, i32) {
    %c0_i32 = arith.constant 0 : i32
    %c0_i32_0 = arith.constant 0 : i32
    %c0_i32_1 = arith.constant 0 : i32
    return %c0_i32, %c0_i32_0 : i32, i32
  }
  func.func @transform_10(%arg0: i32) -> (i32, i32) {
    %c0_i32 = arith.constant 0 : i32
    %c0_i32_0 = arith.constant 0 : i32
    %c0_i32_1 = arith.constant 0 : i32
    return %c0_i32, %c0_i32_0 : i32, i32
  }
  func.func @transform_11(%arg0: i32) -> (i32, i32) {
    %c0_i32 = arith.constant 0 : i32
    %c0_i32_0 = arith.constant 0 : i32
    %c0_i32_1 = arith.constant 0 : i32
    return %c0_i32, %c0_i32_0 : i32, i32
  }
  func.func @transform_12(%arg0: i32) -> (i32, i32) {
    %c0_i32 = arith.constant 0 : i32
    %c0_i32_0 = arith.constant 0 : i32
    %c0_i32_1 = arith.constant 0 : i32
    return %c0_i32, %c0_i32_0 : i32, i32
  }
  func.func @transform_13(%arg0: i32) -> (i32, i32) {
    %c0_i32 = arith.constant 0 : i32
    %c0_i32_0 = arith.constant 0 : i32
    %c0_i32_1 = arith.constant 0 : i32
    return %c0_i32, %c0_i32_0 : i32, i32
  }
  func.func @transform_14(%arg0: i32) -> (i32, i32, i32) {
    %c0_i32 = arith.constant 0 : i32
    %c0_i32_0 = arith.constant 0 : i32
    %c0_i32_1 = arith.constant 0 : i32
    return %arg0, %c0_i32, %c0_i32_0 : i32, i32, i32
  }
}

</mosaic_0001>

<bundles_post_ra>
// kernel: mynet_forward.1
= control target key start
LH: loop header
LB: loop body
LE: loop exit
PB: predicated region body
PF: predicated region fallthrough
CT: control target
= control target key end

     0   :  { %s8101_s0 = inlined_call_operand.vmem [shape: bf16[2,4,75,196], index: 0, kind: input, shape index: {}]   ;;  %s8102_s1 = inlined_call_operand.vmem [shape: bf16[16,75], index: 1, kind: input, shape index: {}]   ;;  %s8103_s2 = inlined_call_operand.vmem [shape: f32[16,1], index: 2, kind: input, shape index: {}]   ;;  %s8104_s3 = inlined_call_operand.vmem [shape: bf16[9,16,16], index: 3, kind: input, shape index: {}]   ;;  %s8105_s4 = inlined_call_operand.vmem [shape: f32[16,256], index: 4, kind: input, shape index: {}]   ;;  %s8106_s5 = inlined_call_operand.vmem [shape: bf16[25,16,16], index: 5, kind: input, shape index: {}]   ;;  %s8107_s6 = inlined_call_operand.vmem [shape: f32[16,1], index: 6, kind: input, shape index: {}]   ;;  %s8108_s7 = inlined_call_operand.vmem [shape: bf16[143,32], index: 7, kind: input, shape index: {}]   ;;  %s8109_s8 = inlined_call_operand.vmem [shape: bf16[16,32,120], index: 8, kind: input, shape index: {}]   ;;  %s8110_s9 = inlined_call_operand.vmem [shape: f32[1,120], index: 9, kind: input, shape index: {}]   ;;  %s8111_s10 = inlined_call_operand.vmem [shape: bf16[120,84], index: 10, kind: input, shape index: {}]   ;;  %s8112_s11 = inlined_call_operand.vmem [shape: f32[1,84], index: 11, kind: input, shape index: {}]   ;;  %s8113_s12 = inlined_call_operand.vmem [shape: bf16[84,10], index: 12, kind: input, shape index: {}]   ;;  %s8114_s13 = inlined_call_operand.vmem [shape: f32[1,10], index: 13, kind: input, shape index: {}]   ;;  %s8115_s14 = inlined_call_operand.hbm [shape: f32[2,1,10], index: 14, kind: output, shape index: {}]  }
   0x1   :  { %8136 = sst [smem:[#allocation15_spill]] %s8101_s0 }
   0x2   :  { %8137 = sst [smem:[#allocation16_spill]] %s8102_s1 }
   0x3   :  { %19 = vsyncpa [#allocation5], 0 }
   0x4   :  { %21 = vsyncpa [#allocation5 + $0x1], 0  ;;  %s6919_s29 = smov 0   ;;  %s6921_s30 = smov 0  }
   0x5   :  { %s6923_s15 = smov 0   ;;  %s6925_s16 = smov 0  }
   0x6 LB: > { %8138 = sst [smem:[#allocation7_spill]] %s6791_s15  ;;  %s6940_s17 = sadd.s32 4294967295, %s6795_s16   ;;  %s6795_s16 = sphi %s6925_s16, %s8175_s16   ;;  %s6791_s15 = sphi %s6923_s15, %s8172_s15   ;;  %s6787_s30 = sphi %s6921_s30, %s8174_s30   ;;  %s6783_s29 = sphi %s6919_s29, %s8173_s29  }
   0x7   : > { %s5820_s18 = sadd.s32 4294967294, %s6795_s16   ;;  %s6944_s19 = sadd.s32 1, %s6795_s16  }
   0x8   : > { %s333_s20 = sadd.s32 1, %s6791_s15  ;;  %s330_s21 = ssub.s32 %s6795_s16, %s6944_s19 }
   0x9   : > { %p343_p0 = scmp.ne.s32.totalorder %s6791_s15, %s6787_s30  ;;  %p331_p1 = scmp.eq.s32.totalorder %s330_s21, 0 }
   0xa   : > { %p344_p2 = scmp.eq.s32.totalorder %s6940_s17, 1  ;;  %p349_p3 = scmp.ne.s32.totalorder %s6787_s30, %s6783_s29 }
   0xb   : > { %p350_p4 = scmp.eq.s32.totalorder %s5820_s18, 1  ;;  %p5823_p7 = scmp.ge.s32.totalorder %s6795_s16, 1 }
   0xc   : > { %s6955_s22 = scalar_select %p331_p1, %s6791_s15, %s333_s20  }
   0xd   : > { %p6957_p5 = por %p344_p2, %p343_p0  ;;  %p6961_p6 = por %p350_p4, %p349_p3 }
   0xe   : > { %8139 = sst [smem:[#allocation8_spill]] %s6955_s22  ;;  %p415_p8 = scmp.lt.s32.totalorder %s6795_s16, 3 }
  0x10   : > { %p416_p9 = pnand %p5823_p7, %p415_p8 }
  0x12   : > { %419 = sbr.rel (%p416_p9) target bundleno = 3489 (0xda1), region = 76 }
  0x17   : > { %p460_p10 = scmp.lt.s32.totalorder %s6940_s17, 1  ;;  %vm547_vm0 = vcmask 1044480   ;;  %vm548_vm1 = vcmask 1045504   ;;  %v8133_v0 = vmov 65535   ;;  %v6798_v2 = vmov 0   ;;  %v468_v4 = vld [vmem:[%s8103_s2] sm:$0xff] }
  0x18   : > { %v549_v1 = vsel %vm547_vm0, 4294967295, %v8133_v0  ;;  %589 = vmatprep.mubr.bf16.mxu0 %v6798_v2  ;;  %1859 = vst [vmem:[#allocation3] sm:$0xff] %v6798_v2  ;;  %1860 = vst [vmem:[#allocation3 + $0x8] sm:$0xff] %v6798_v2  ;;  %701 = vmatprep.mubr.bf16.mxu1 %v6798_v2  ;;  %v469_v5 = vld [vmem:[%s8103_s2 + $0x8] sm:$0xff]  ;;  %s8142_s0 = sld [smem:[#allocation15_spill]]  ;;  %vm543_vm2 = vcmask 613376  }
  0x19   : > { %s461_s25 = scalar_select %p460_p10, %s6940_s17, 1  ;;  %v6974_v3 = vsel %vm548_vm1, %v549_v1, 0  ;;  %6529 = vset.pattern.permute.xlu0 %v6798_v2  ;;  %6550 = vset.pattern.permute.xlu1 %v6798_v2  ;;  %v8131_v55 = vmov 0.0   ;;  %vm1027_vm3 = vcmask 121864   ;;  %vm964_vm4 = vcmask 253064  }
  0x1a   : > { %482 = vperm.xlu0 %6529, %v468_v4   ;;  %s8143_s1 = sld [smem:[#allocation16_spill]]  ;;  %953 = vst [vmem:[#allocation2 + $0x8] sm:$0xff] %v8131_v55  ;;  %952 = vst [vmem:[#allocation2] sm:$0xff] %v8131_v55  ;;  %s6801_s26 = smov 17   ;;  %vm973_vm5 = vcmask 384264   ;;  %vm1048_vm6 = vcmask 285696  }
  0x1b   : > { %s6443_s28 = smul.u32 320, %s461_s25  ;;  %954 = vst [vmem:[#allocation2 + $0x10] sm:$0xff] %v8131_v55  ;;  %955 = vst [vmem:[#allocation2 + $0x18] sm:$0xff] %v8131_v55  ;;  %s6802_s27 = smov 19   ;;  %vm982_vm7 = vcmask 515464   ;;  %vm991_vm8 = vcmask 646664  }
  0x1c   : > { %s6804_s18 = smov 33   ;;  %s6805_s20 = smov 21   ;;  %vm1000_vm9 = vcmask 777864   ;;  %vm1009_vm10 = vcmask 909064   ;;  %vm1018_vm11 = vcmask 1040264   ;;  %vm1111_vm12 = vcmask 130048  }
  0x1d   : > { %s6806_s21 = smov 23   ;;  %s6807_s22 = smov 25   ;;  %vm1195_vm13 = vcmask 1039360   ;;  %vm1279_vm14 = vcmask 1031168   ;;  %vm1363_vm15 = vcmask 916480   ;;  %vm1447_vm0 = vcmask 908288  }
  0x1e   : > { %s6987_s15 = scalar_lea.vmem %s8142_s0, %s6443_s28  ;;  %487 = vperm.xlu0 %6529, %v469_v5   ;;  %s6803_s28 = smov 35   ;;  %vm1531_vm1 = vcmask 900096  }
  0x1f   : > { %v6571_v6 = vld [vmem:[%s6987_s15 + $0x44] ss:$8 sps:$4 sm:$0x3f]   ;;  %v6573_v7 = vld [vmem:[%s6987_s15 + $0x94] ss:$8 sps:$4 sm:$0x3f]  }
  0x20   : > { %v555_v8 = vand.u32 %v6571_v6, %v6974_v3  ;;  %v6575_v9 = vld [vmem:[%s6987_s15 + $0x40] ss:$8 sps:$4 sm:$0x3f]   ;;  %v6576_v10 = vld [vmem:[%s6987_s15 + $0x90] ss:$8 sps:$4 sm:$0x3f]   ;;  %v667_v11 = vand.u32 %v6573_v7, %v6974_v3 }
  0x21   : > { %v6577_v12 = vld [vmem:[%s6987_s15 + $0x34] ss:$8 sps:$4 sm:$0xff]   ;;  %v552_v13 = vand.u32 %v6575_v9, %v6974_v3  ;;  %v664_v14 = vand.u32 %v6576_v10, %v6974_v3  ;;  %v6579_v15 = vld [vmem:[%s6987_s15 + $0x84] ss:$8 sps:$4 sm:$0xff]   ;;  %v6581_v16 = vld [vmem:[%s6987_s15 + $0x30] ss:$8 sps:$4 sm:$0xff]  }
  0x22   : > { %563 = vmatprep.subr.bf16.mxu0 %v555_v8  ;;  %675 = vmatprep.subr.bf16.mxu1 %v667_v11  ;;  %v6582_v17 = vld [vmem:[%s6987_s15 + $0x80] ss:$8 sps:$4 sm:$0xff]   ;;  %v6583_v18 = vld [vmem:[%s6987_s15 + $0x24] ss:$8 sps:$4 sm:$0xff]   ;;  %v6585_v19 = vld [vmem:[%s6987_s15 + $0x74] ss:$8 sps:$4 sm:$0xff]  }
  0x23   : > { %564 = vmatpush1.bf16.msra.mxu0 %v552_v13  ;;  %676 = vmatpush1.bf16.msra.mxu1 %v664_v14  ;;  %v6587_v20 = vld [vmem:[%s6987_s15 + $0x20] ss:$8 sps:$4 sm:$0xff]   ;;  %v6588_v21 = vld [vmem:[%s6987_s15 + $0x70] ss:$8 sps:$4 sm:$0xff]   ;;  %v6589_v22 = vld [vmem:[%s6987_s15 + $0x14] ss:$8 sps:$4 sm:$0xff]  }
  0x24   : > { %565 = vmatprep.subr.bf16.mxu0 %v6577_v12  ;;  %677 = vmatprep.subr.bf16.mxu1 %v6579_v15  ;;  %v6591_v23 = vld [vmem:[%s6987_s15 + $0x64] ss:$8 sps:$4 sm:$0xff]   ;;  %v6593_v24 = vld [vmem:[%s6987_s15 + $0x10] ss:$8 sps:$4 sm:$0xff]   ;;  %v6594_v25 = vld [vmem:[%s6987_s15 + $0x60] ss:$8 sps:$4 sm:$0xff]  }
  0x25   : > { %v6595_v26 = vld [vmem:[%s6987_s15 + $0x4] ss:$8 sps:$4 sm:$0xff]   ;;  %v6597_v27 = vld [vmem:[%s6987_s15 + $0x54] ss:$8 sps:$4 sm:$0xff]   ;;  %v6599_v29 = vld [vmem:[%s6987_s15] ss:$8 sps:$4 sm:$0xff]  }
  0x26   : > { %v6604_v28 = vld [vmem:[%s6987_s15 + $0xe4] ss:$8 sps:$4 sm:$0x3f]   ;;  %v6607_v30 = vld [vmem:[%s6987_s15 + $0x134] ss:$8 sps:$4 sm:$0x3f]  }
  0x27   : > { %566 = vmatpush1.bf16.msra.mxu0 %v6581_v16  ;;  %678 = vmatpush1.bf16.msra.mxu1 %v6582_v17  ;;  %v6600_v31 = vld [vmem:[%s6987_s15 + $0x50] ss:$8 sps:$4 sm:$0xff]   ;;  %v6602_v32 = vld [vmem:[%s6987_s15 + $0xe0] ss:$8 sps:$4 sm:$0x3f]   ;;  %v783_v34 = vand.u32 %v6604_v28, %v6974_v3  ;;  %v899_v35 = vand.u32 %v6607_v30, %v6974_v3  ;;  %s6808_s25 = smov 27  }
  0x28   : > { %567 = vmatprep.subr.bf16.mxu0 %v6583_v18  ;;  %679 = vmatprep.subr.bf16.mxu1 %v6585_v19  ;;  %v6605_v33 = vld [vmem:[%s6987_s15 + $0x130] ss:$8 sps:$4 sm:$0x3f]   ;;  %v6601_v36 = vld [vmem:[%s8143_s1] sm:$0xff]   ;;  %v780_v37 = vand.u32 %v6602_v32, %v6974_v3  ;;  %v6610_v39 = vld [vmem:[%s6987_s15 + $0xd4] ss:$8 sps:$4 sm:$0xff]  }
  0x29   : > { %v896_v38 = vand.u32 %v6605_v33, %v6974_v3  ;;  %v6613_v40 = vld [vmem:[%s6987_s15 + $0x124] ss:$8 sps:$4 sm:$0xff]   ;;  %v6608_v41 = vld [vmem:[%s6987_s15 + $0xd0] ss:$8 sps:$4 sm:$0xff]   ;;  %v6611_v42 = vld [vmem:[%s6987_s15 + $0x120] ss:$8 sps:$4 sm:$0xff]  }
  0x2a   : > { %v6616_v43 = vld [vmem:[%s6987_s15 + $0xc4] ss:$8 sps:$4 sm:$0xff]   ;;  %v6619_v44 = vld [vmem:[%s6987_s15 + $0x114] ss:$8 sps:$4 sm:$0xff]   ;;  %v6614_v45 = vld [vmem:[%s6987_s15 + $0xc0] ss:$8 sps:$4 sm:$0xff]  }
  0x2b   : > { %568 = vmatpush1.bf16.msra.mxu0 %v6587_v20  ;;  %680 = vmatpush1.bf16.msra.mxu1 %v6588_v21  ;;  %v6617_v46 = vld [vmem:[%s6987_s15 + $0x110] ss:$8 sps:$4 sm:$0xff]   ;;  %v6622_v47 = vld [vmem:[%s6987_s15 + $0xb4] ss:$8 sps:$4 sm:$0xff]   ;;  %v6625_v48 = vld [vmem:[%s6987_s15 + $0x104] ss:$8 sps:$4 sm:$0xff]  }
  0x2c   : > { %569 = vmatprep.subr.bf16.mxu0 %v6589_v22  ;;  %681 = vmatprep.subr.bf16.mxu1 %v6591_v23  ;;  %v6620_v49 = vld [vmem:[%s6987_s15 + $0xb0] ss:$8 sps:$4 sm:$0xff]   ;;  %v6623_v50 = vld [vmem:[%s6987_s15 + $0x100] ss:$8 sps:$4 sm:$0xff]   ;;  %v6628_v51 = vld [vmem:[%s6987_s15 + $0xa4] ss:$8 sps:$4 sm:$0xff]  }
  0x2d   : > { %v6631_v52 = vld [vmem:[%s6987_s15 + $0xf4] ss:$8 sps:$4 sm:$0xff]   ;;  %v6626_v53 = vld [vmem:[%s6987_s15 + $0xa0] ss:$8 sps:$4 sm:$0xff]   ;;  %v6629_v54 = vld [vmem:[%s6987_s15 + $0xf0] ss:$8 sps:$4 sm:$0xff]  }
  0x2e   : > { %s6800_s15 = smov 31  }
  0x2f   : > { %570 = vmatpush1.bf16.msra.mxu0 %v6593_v24  ;;  %682 = vmatpush1.bf16.msra.mxu1 %v6594_v25 }
  0x30   : > { %571 = vmatprep.subr.bf16.mxu0 %v6595_v26  ;;  %683 = vmatprep.subr.bf16.mxu1 %v6597_v27 }
  0x33   : > { %572 = vmatpush1.bf16.msra.mxu0 %v6599_v29  ;;  %684 = vmatpush1.bf16.msra.mxu1 %v6600_v31 }
  0x34   : > { %791 = vmatprep.subr.bf16.mxu0 %v783_v34  ;;  %907 = vmatprep.subr.bf16.mxu1 %v899_v35 }
  0x36   : > { %5836 = vmatmul.mubr.msk.bf16.vlgmr.msra.gmra.mxu0 %vm543_vm2, %v6601_v36  ;;  %5857 = vmatmul.mubr.msk.bf16.vlgmr.msra.gmra.mxu1 %vm543_vm2, %v6601_v36 }
  0x37   : > { %792 = vmatpush1.bf16.msra.mxu0 %v780_v37  ;;  %908 = vmatpush1.bf16.msra.mxu1 %v896_v38 }
  0x38   : > { %793 = vmatprep.subr.bf16.mxu0 %v6610_v39  ;;  %909 = vmatprep.subr.bf16.mxu1 %v6613_v40 }
  0x39   : > { %817 = vmatprep.mubr.bf16.mxu0 %v6798_v2  ;;  %933 = vmatprep.mubr.bf16.mxu1 %v6798_v2 }
  0x3b   : > { %794 = vmatpush1.bf16.msra.mxu0 %v6608_v41  ;;  %910 = vmatpush1.bf16.msra.mxu1 %v6611_v42 }
  0x3c   : > { %795 = vmatprep.subr.bf16.mxu0 %v6616_v43  ;;  %911 = vmatprep.subr.bf16.mxu1 %v6619_v44 }
  0x3f   : > { %796 = vmatpush1.bf16.msra.mxu0 %v6614_v45  ;;  %912 = vmatpush1.bf16.msra.mxu1 %v6617_v46 }
  0x40   : > { %797 = vmatprep.subr.bf16.mxu0 %v6622_v47  ;;  %913 = vmatprep.subr.bf16.mxu1 %v6625_v48 }
  0x43   : > { %798 = vmatpush1.bf16.msra.mxu0 %v6620_v49  ;;  %914 = vmatpush1.bf16.msra.mxu1 %v6623_v50 }
  0x44   : > { %799 = vmatprep.subr.bf16.mxu0 %v6628_v51  ;;  %915 = vmatprep.subr.bf16.mxu1 %v6631_v52 }
  0x47   : > { %800 = vmatpush1.bf16.msra.mxu0 %v6626_v53  ;;  %916 = vmatpush1.bf16.msra.mxu1 %v6629_v54 }
  0x4a   : > { %5878 = vmatmul.mubr.msk.bf16.vlgmr.msra.gmra.mxu0 %vm543_vm2, %v6601_v36  ;;  %5899 = vmatmul.mubr.msk.bf16.vlgmr.msra.gmra.mxu1 %vm543_vm2, %v6601_v36 }
  0x4b   : > { %1147 = vmatprep.mubr.bf16.mxu0 %v6798_v2  ;;  %1234 = vmatprep.mubr.bf16.mxu1 %v6798_v2 }
  0x95   : > { %v483_v60 = vpop.permute.xlu0 %482 }
  0x99   : > { %v7052_v4 = vpop.permute.xlu0 %487 }
  0xf6   : > { %v591_v56 = vpop.f32.mrf.mxu0  ;;  %v703_v57 = vpop.f32.mrf.mxu1 }
  0xf7   : > { %v592_v63 = vadd.f32 %v591_v56, %v483_v60  ;;  %v704_v1 = vadd.f32 %v703_v57, %v483_v60 }
  0xf8   : > { %v593_v58 = vpop.f32.mrf.mxu0  ;;  %v705_v59 = vpop.f32.mrf.mxu1 }
  0xf9   : > { %v594_v3 = vadd.f32 %v593_v58, %v483_v60  ;;  %v706_v2 = vadd.f32 %v705_v59, %v483_v60  ;;  %v600_v7 = vmax.f32 %v592_v63, 0.0  ;;  %v712_v8 = vmax.f32 %v704_v1, 0.0 }
  0xfa   : > { %v595_v61 = vpop.f32.mrf.mxu0  ;;  %v707_v62 = vpop.f32.mrf.mxu1 }
  0xfb   : > { %v601_v9 = vmax.f32 %v594_v3, 0.0  ;;  %v713_v10 = vmax.f32 %v706_v2, 0.0  ;;  %v596_v11 = vadd.f32 %v595_v61, %v7052_v4  ;;  %v708_v12 = vadd.f32 %v707_v62, %v7052_v4 }
  0xfc   : > { %v597_v5 = vpop.f32.mrf.mxu0  ;;  %v709_v6 = vpop.f32.mrf.mxu1  ;;  %v716_v19 = vmax.f32 %v600_v7, %v712_v8 }
  0xfd   : > { %v717_v22 = vmax.f32 %v601_v9, %v713_v10  ;;  %v602_v23 = vmax.f32 %v596_v11, 0.0  ;;  %v714_v24 = vmax.f32 %v708_v12, 0.0  ;;  %v598_v43 = vadd.f32 %v597_v5, %v7052_v4 }
  0xfe   : > { %v710_v44 = vadd.f32 %v709_v6, %v7052_v4 }
  0xff   : > { %v718_v35 = vmax.f32 %v602_v23, %v714_v24  ;;  %v603_v46 = vmax.f32 %v598_v43, 0.0 }
 0x100   : > { %v715_v47 = vmax.f32 %v710_v44, 0.0 }
 0x102   : > { %v719_v50 = vmax.f32 %v603_v46, %v715_v47 }
 0x10a   : > { %v819_v13 = vpop.f32.mrf.mxu0  ;;  %v935_v14 = vpop.f32.mrf.mxu1 }
 0x10b   : > { %v820_v15 = vadd.f32 %v819_v13, %v483_v60  ;;  %v936_v16 = vadd.f32 %v935_v14, %v483_v60 }
 0x10c   : > { %v821_v17 = vpop.f32.mrf.mxu0  ;;  %v937_v18 = vpop.f32.mrf.mxu1 }
 0x10d   : > { %v828_v20 = vmax.f32 %v820_v15, 0.0  ;;  %v822_v21 = vadd.f32 %v821_v17, %v483_v60  ;;  %v944_v25 = vmax.f32 %v936_v16, 0.0  ;;  %v938_v29 = vadd.f32 %v937_v18, %v483_v60 }
 0x10e   : > { %v823_v26 = vpop.f32.mrf.mxu0  ;;  %v939_v31 = vpop.f32.mrf.mxu1 }
 0x10f   : > { %v832_v27 = vmax.f32 %v716_v19, %v828_v20  ;;  %v829_v28 = vmax.f32 %v822_v21, 0.0  ;;  %v824_v30 = vadd.f32 %v823_v26, %v7052_v4  ;;  %v945_v36 = vmax.f32 %v938_v29, 0.0 }
 0x110   : > { %v940_v37 = vadd.f32 %v939_v31, %v7052_v4  ;;  %v825_v42 = vpop.f32.mrf.mxu0  ;;  %v941_v48 = vpop.f32.mrf.mxu1  ;;  %v6632_v31 = vld [vmem:[%s8104_s3] sm:$0xff]  }
 0x111   : > { %v948_v32 = vmax.f32 %v832_v27, %v944_v25  ;;  %v833_v33 = vmax.f32 %v717_v22, %v829_v28  ;;  %v830_v34 = vmax.f32 %v824_v30, 0.0  ;;  %v826_v45 = vadd.f32 %v825_v42, %v7052_v4  ;;  %v6634_v42 = vld [vmem:[%s8104_s3 + $0x10] sm:$0xff]  }
 0x112   : > { %v946_v40 = vmax.f32 %v940_v37, 0.0  ;;  %v942_v51 = vadd.f32 %v941_v48, %v7052_v4 }
 0x113   : > { %1021 = vrot.lane.b32.xlu0 %v948_v32, %s6800_s15  ;;  %958 = vrot.lane.b32.xlu1 %v948_v32, %s6801_s26  ;;  %v949_v38 = vmax.f32 %v833_v33, %v945_v36  ;;  %v834_v39 = vmax.f32 %v718_v35, %v830_v34  ;;  %v831_v49 = vmax.f32 %v826_v45, 0.0  ;;  %v6635_v45 = vld [vmem:[%s8104_s3 + $0x18] sm:$0xff]  }
 0x114   : > { %v947_v53 = vmax.f32 %v942_v51, 0.0 }
 0x115   : > { %v950_v41 = vmax.f32 %v834_v39, %v946_v40  ;;  %v835_v52 = vmax.f32 %v719_v50, %v831_v49  ;;  %v6636_v49 = vld [vmem:[%s8104_s3 + $0x20] sm:$0xff]  }
 0x117   : > { %967 = vrot.lane.b32.xlu0 %v948_v32, %s6802_s27  ;;  %1042 = vrot.lane.b32.xlu1 %v949_v38, %s6803_s28  ;;  %v951_v54 = vmax.f32 %v835_v52, %v947_v53  ;;  %v6637_v53 = vld [vmem:[%s8104_s3 + $0x28] sm:$0xff]  }
 0x11b   : > { %1030 = vrot.lane.b32.xlu0 %v948_v32, %s6804_s18  ;;  %960 = vrot.lane.b32.xlu1 %v950_v41, %s6801_s26 }
 0x11f   : > { %1040 = vrot.lane.b32.xlu0 %v948_v32, %s6803_s28  ;;  %1023 = vrot.lane.b32.xlu1 %v950_v41, %s6800_s15  ;;  %s6809_s15 = smov 37  }
 0x123   : > { %976 = vrot.lane.b32.xlu0 %v948_v32, %s6805_s20  ;;  %969 = vrot.lane.b32.xlu1 %v950_v41, %s6802_s27  ;;  %s6810_s27 = smov 39  }
 0x127   : > { %985 = vrot.lane.b32.xlu0 %v948_v32, %s6806_s21  ;;  %1032 = vrot.lane.b32.xlu1 %v950_v41, %s6804_s18  ;;  %s6811_s18 = smov 41  }
 0x12b   : > { %994 = vrot.lane.b32.xlu0 %v948_v32, %s6807_s22  ;;  %978 = vrot.lane.b32.xlu1 %v950_v41, %s6805_s20  ;;  %s6812_s20 = smov 29  }
 0x12f   : > { %1003 = vrot.lane.b32.xlu0 %v948_v32, %s6808_s25  ;;  %987 = vrot.lane.b32.xlu1 %v950_v41, %s6806_s21  ;;  %s8117_s21 = smov 43  }
 0x133   : > { %1055 = vrot.lane.b32.xlu0 %v949_v38, %s6809_s15  ;;  %996 = vrot.lane.b32.xlu1 %v950_v41, %s6807_s22  ;;  %s8121_s22 = smov 126  }
 0x137   : > { %1063 = vrot.lane.b32.xlu0 %v949_v38, %s6810_s27  ;;  %1005 = vrot.lane.b32.xlu1 %v950_v41, %s6808_s25  ;;  %s8119_s25 = smov 112  }
 0x13b   : > { %1071 = vrot.lane.b32.xlu0 %v949_v38, %s6811_s18  ;;  %1014 = vrot.lane.b32.xlu1 %v950_v41, %s6812_s20 }
 0x13f   : > { %1044 = vrot.lane.b32.xlu0 %v950_v41, %s6803_s28  ;;  %1046 = vrot.lane.b32.xlu1 %v951_v54, %s6803_s28  ;;  %s8127_s28 = smov 127  }
 0x143   : > { %1012 = vrot.lane.b32.xlu0 %v948_v32, %s6812_s20  ;;  %1057 = vrot.lane.b32.xlu1 %v951_v54, %s6809_s15  ;;  %s6817_s15 = smov 111   ;;  %s8129_s20 = smov 110   ;;  %v7109_v32 = vld [vmem:[#allocation3] sm:$0xff] }
 0x144   : > { %8144 = vst [vmem:[#allocation9_spill] sm:$0xff] %v7109_v32 }
 0x147   : > { %1079 = vrot.lane.b32.xlu0 %v949_v38, %s8117_s21  ;;  %1065 = vrot.lane.b32.xlu1 %v951_v54, %s6810_s27  ;;  %s8125_s27 = smov 95   ;;  %v6633_v38 = vld [vmem:[%s8104_s3 + $0x8] sm:$0xff]  }
 0x14b   : > { %1073 = vrot.lane.b32.xlu1 %v951_v54, %s6811_s18  ;;  %s8123_s18 = smov 94  }
 0x14f   : > { %1081 = vrot.lane.b32.xlu1 %v951_v54, %s8117_s21  ;;  %s6819_s21 = smov 96  }
 0x185   : > { %v1022_v56 = vpop.permute.xlu0 %1021  ;;  %v959_v57 = vpop.permute.xlu1 %958 }
 0x186   : > { %1028 = vst.msk [vmem:[#allocation2 + $0x8] sm:$0xff] %vm1027_vm3, %v1022_v56 }
 0x187   : > { %965 = vst.msk [vmem:[#allocation2] sm:$0xff] %vm964_vm4, %v959_v57  ;;  %v6638_v57 = vld [vmem:[%s8104_s3 + $0x30] sm:$0xff]  }
 0x189   : > { %v968_v58 = vpop.permute.xlu0 %967  ;;  %v1043_v59 = vpop.permute.xlu1 %1042 }
 0x18a   : > { %974 = vst.msk [vmem:[#allocation2] sm:$0xff] %vm973_vm5, %v968_v58 }
 0x18d   : > { %v1031_v60 = vpop.permute.xlu0 %1030  ;;  %v961_v61 = vpop.permute.xlu1 %960 }
 0x18e   : > { %1036 = vst.msk [vmem:[#allocation2 + $0x8] sm:$0xff] %vm964_vm4, %v1031_v60  ;;  %966 = vst.msk [vmem:[#allocation2 + $0x10] sm:$0xff] %vm964_vm4, %v961_v61  ;;  %v6639_v61 = vld [vmem:[%s8104_s3 + $0x38] sm:$0xff]  }
 0x191   : > { %v1041_v62 = vpop.permute.xlu0 %1040  ;;  %v1024_v63 = vpop.permute.xlu1 %1023 }
 0x192   : > { %v1049_v1 = vsel %vm1048_vm6, %v1041_v62, %v1043_v59  ;;  %1029 = vst.msk [vmem:[#allocation2 + $0x18] sm:$0xff] %vm1027_vm3, %v1024_v63  ;;  %vm1615_vm3 = vcmask 785408  }
 0x193   : > { %1053 = vst.msk [vmem:[#allocation2 + $0x8] sm:$0xff] %vm973_vm5, %v1049_v1 }
 0x195   : > { %v977_v3 = vpop.permute.xlu0 %976  ;;  %v970_v2 = vpop.permute.xlu1 %969 }
 0x196   : > { %983 = vst.msk [vmem:[#allocation2] sm:$0xff] %vm982_vm7, %v977_v3  ;;  %v6640_v3 = vld [vmem:[%s8104_s3 + $0x40] sm:$0xff]  }
 0x197   : > { %975 = vst.msk [vmem:[#allocation2 + $0x10] sm:$0xff] %vm973_vm5, %v970_v2 }
 0x199   : > { %v986_v4 = vpop.permute.xlu0 %985  ;;  %v1033_v5 = vpop.permute.xlu1 %1032 }
 0x19a   : > { %992 = vst.msk [vmem:[#allocation2] sm:$0xff] %vm991_vm8, %v986_v4 }
 0x19b   : > { %1037 = vst.msk [vmem:[#allocation2 + $0x18] sm:$0xff] %vm964_vm4, %v1033_v5  ;;  %vm1699_vm4 = vcmask 777216  }
 0x19d   : > { %v995_v6 = vpop.permute.xlu0 %994  ;;  %v979_v7 = vpop.permute.xlu1 %978 }
 0x19e   : > { %1001 = vst.msk [vmem:[#allocation2] sm:$0xff] %vm1000_vm9, %v995_v6 }
 0x19f   : > { %984 = vst.msk [vmem:[#allocation2 + $0x10] sm:$0xff] %vm982_vm7, %v979_v7 }
 0x1a1   : > { %v1004_v8 = vpop.permute.xlu0 %1003  ;;  %v988_v9 = vpop.permute.xlu1 %987 }
 0x1a2   : > { %1010 = vst.msk [vmem:[#allocation2] sm:$0xff] %vm1009_vm10, %v1004_v8 }
 0x1a3   : > { %993 = vst.msk [vmem:[#allocation2 + $0x10] sm:$0xff] %vm991_vm8, %v988_v9 }
 0x1a5   : > { %v1056_v10 = vpop.permute.xlu0 %1055  ;;  %v997_v11 = vpop.permute.xlu1 %996 }
 0x1a6   : > { %1061 = vst.msk [vmem:[#allocation2 + $0x8] sm:$0xff] %vm982_vm7, %v1056_v10 }
 0x1a7   : > { %1002 = vst.msk [vmem:[#allocation2 + $0x10] sm:$0xff] %vm1000_vm9, %v997_v11 }
 0x1a9   : > { %v1064_v12 = vpop.permute.xlu0 %1063  ;;  %v1006_v13 = vpop.permute.xlu1 %1005 }
 0x1aa   : > { %1069 = vst.msk [vmem:[#allocation2 + $0x8] sm:$0xff] %vm991_vm8, %v1064_v12 }
 0x1ab   : > { %1011 = vst.msk [vmem:[#allocation2 + $0x10] sm:$0xff] %vm1009_vm10, %v1006_v13 }
 0x1ad   : > { %v1072_v14 = vpop.permute.xlu0 %1071  ;;  %v1015_v15 = vpop.permute.xlu1 %1014 }
 0x1ae   : > { %1077 = vst.msk [vmem:[#allocation2 + $0x8] sm:$0xff] %vm1000_vm9, %v1072_v14 }
 0x1af   : > { %1020 = vst.msk [vmem:[#allocation2 + $0x10] sm:$0xff] %vm1018_vm11, %v1015_v15 }
 0x1b1   : > { %v1045_v16 = vpop.permute.xlu0 %1044  ;;  %v1047_v17 = vpop.permute.xlu1 %1046 }
 0x1b2   : > { %v1050_v18 = vsel %vm1048_vm6, %v1045_v16, %v1047_v17  ;;  %vm1170_vm6 = vcmask 138240  }
 0x1b3   : > { %1054 = vst.msk [vmem:[#allocation2 + $0x18] sm:$0xff] %vm973_vm5, %v1050_v18  ;;  %vm1783_vm5 = vcmask 769024  }
 0x1b5   : > { %v1013_v19 = vpop.permute.xlu0 %1012  ;;  %v1058_v20 = vpop.permute.xlu1 %1057 }
 0x1b6   : > { %1019 = vst.msk [vmem:[#allocation2] sm:$0xff] %vm1018_vm11, %v1013_v19  ;;  %v1089_v23 = vld [vmem:[#allocation2 + $0x10] sm:$0xff] }
 0x1b7   : > { %1062 = vst.msk [vmem:[#allocation2 + $0x18] sm:$0xff] %vm982_vm7, %v1058_v20 }
 0x1b9   : > { %v1080_v21 = vpop.permute.xlu0 %1079  ;;  %v1066_v22 = vpop.permute.xlu1 %1065 }
 0x1ba   : > { %1085 = vst.msk [vmem:[#allocation2 + $0x8] sm:$0xff] %vm1009_vm10, %v1080_v21 }
 0x1bb   : > { %1070 = vst.msk [vmem:[#allocation2 + $0x18] sm:$0xff] %vm991_vm8, %v1066_v22 }
 0x1bd   : > { %v1087_v24 = vld [vmem:[#allocation2] sm:$0xff]  ;;  %v1074_v25 = vpop.permute.xlu1 %1073 }
 0x1be   : > { %v1091_v26 = vpack.c.bf16 %v1089_v23, %v1087_v24  ;;  %1078 = vst.msk [vmem:[#allocation2 + $0x18] sm:$0xff] %vm1000_vm9, %v1074_v25  ;;  %vm1905_vm9 = vcmask 1043592  }
 0x1c0   : > { %1191 = vrot.lane.b32.xlu0 %v1091_v26, %s8127_s28 }
 0x1c1   : > { %v1082_v27 = vpop.permute.xlu1 %1081  ;;  %v1088_v28 = vld [vmem:[#allocation2 + $0x8] sm:$0xff] }
 0x1c2   : > { %1086 = vst.msk [vmem:[#allocation2 + $0x18] sm:$0xff] %vm1009_vm10, %v1082_v27  ;;  %vm1906_vm10 = vcmask 908292  }
 0x1c3   : > { %vm7269_vm11 = vmor %vm1906_vm10, %vm1905_vm9  ;;  %vm3596_vm9 = vcmask 621568   ;;  %vm3728_vm10 = vcmask 515072  }
 0x1c4   : > { %1275 = vrot.lane.b32.xlu0 %v1091_v26, %s8121_s22 }
 0x1c8   : > { %1359 = vrot.lane.b32.xlu0 %v1091_v26, %s8119_s25 }
 0x1c9   : > { %v1090_v29 = vld [vmem:[#allocation2 + $0x18] sm:$0xff] }
 0x1ca   : > { %v1092_v30 = vpack.c.bf16 %v1090_v29, %v1088_v28 }
 0x1cc   : > { %1443 = vrot.lane.b32.xlu0 %v1091_v26, %s6817_s15  ;;  %1193 = vrot.lane.b32.xlu1 %v1092_v30, %s8127_s28 }
 0x1cd   : > { %1129 = vmatprep.subr.bf16.mxu0 %v1092_v30 }
 0x1ce   : > { %1130 = vmatpush1.bf16.msra.mxu0 %v1091_v26 }
 0x1d0   : > { %1527 = vrot.lane.b32.xlu0 %v1091_v26, %s8129_s20  ;;  %1277 = vrot.lane.b32.xlu1 %v1092_v30, %s8121_s22  ;;  %s8153_s22 = smov 95  }
 0x1d1   : > { %5901 = vmatmul.mubr.msk.bf16.vlgmr.msra.gmra.mxu0 %vm1111_vm12, %v6632_v31 }
 0x1d2   : > { %1318 = vmatprep.mubr.bf16.mxu0 %v7109_v32 }
 0x1d4   : > { %1611 = vrot.lane.b32.xlu0 %v1091_v26, %s6819_s21  ;;  %1361 = vrot.lane.b32.xlu1 %v1092_v30, %s8119_s25  ;;  %s8154_s25 = smov 94  }
 0x1d8   : > { %1695 = vrot.lane.b32.xlu0 %v1091_v26, %s8125_s27  ;;  %1445 = vrot.lane.b32.xlu1 %v1092_v30, %s6817_s15 }
 0x1dc   : > { %1779 = vrot.lane.b32.xlu0 %v1091_v26, %s8123_s18  ;;  %1529 = vrot.lane.b32.xlu1 %v1092_v30, %s8129_s20 }
 0x1e0   : > { %1613 = vrot.lane.b32.xlu1 %v1092_v30, %s6819_s21 }
 0x1e4   : > { %1697 = vrot.lane.b32.xlu1 %v1092_v30, %s8125_s27  ;;  %s8151_s27 = smov 126  }
 0x1e8   : > { %1781 = vrot.lane.b32.xlu1 %v1092_v30, %s8123_s18  ;;  %s8152_s18 = smov 112  }
 0x232   : > { %v1192_v33 = vpop.permute.xlu0 %1191 }
 0x236   : > { %v1276_v34 = vpop.permute.xlu0 %1275 }
 0x23a   : > { %v1360_v35 = vpop.permute.xlu0 %1359 }
 0x23e   : > { %v1194_v36 = vpop.permute.xlu1 %1193  ;;  %v1444_v39 = vpop.permute.xlu0 %1443 }
 0x23f   : > { %1216 = vmatprep.subr.bf16.mxu1 %v1194_v36  ;;  %v1196_v37 = vsel %vm1195_vm13, %v1192_v33, %v1194_v36 }
 0x240   : > { %1217 = vmatpush1.bf16.msra.mxu1 %v1196_v37 }
 0x242   : > { %v1278_v40 = vpop.permute.xlu1 %1277  ;;  %v1528_v46 = vpop.permute.xlu0 %1527 }
 0x243   : > { %5905 = vmatmul.mubr.msk.bf16.vlgmr.msra.gmra.mxu1 %vm1111_vm12, %v6633_v38  ;;  %1300 = vmatprep.subr.bf16.mxu0 %v1278_v40  ;;  %v1280_v41 = vsel %vm1279_vm14, %v1276_v34, %v1278_v40 }
 0x244   : > { %1301 = vmatpush1.bf16.msra.mxu0 %v1280_v41  ;;  %1402 = vmatprep.mubr.bf16.mxu1 %v7109_v32 }
 0x246   : > { %v1362_v43 = vpop.permute.xlu1 %1361  ;;  %v1612_v50 = vpop.permute.xlu0 %1611 }
 0x247   : > { %5909 = vmatmul.mubr.msk.bf16.vlgmr.msra.gmra.mxu0 %vm1111_vm12, %v6634_v42  ;;  %1384 = vmatprep.subr.bf16.mxu1 %v1362_v43  ;;  %v1364_v44 = vsel %vm1363_vm15, %v1360_v35, %v1362_v43 }
 0x248   : > { %1385 = vmatpush1.bf16.msra.mxu1 %v1364_v44  ;;  %1486 = vmatprep.mubr.bf16.mxu0 %v7109_v32 }
 0x24a   : > { %v1446_v47 = vpop.permute.xlu1 %1445  ;;  %v1696_v58 = vpop.permute.xlu0 %1695 }
 0x24b   : > { %1468 = vmatprep.subr.bf16.mxu0 %v1446_v47  ;;  %v1448_v48 = vsel %vm1447_vm0, %v1444_v39, %v1446_v47  ;;  %5913 = vmatmul.mubr.msk.bf16.vlgmr.msra.gmra.mxu1 %vm1111_vm12, %v6635_v45 }
 0x24c   : > { %1469 = vmatpush1.bf16.msra.mxu0 %v1448_v48  ;;  %1570 = vmatprep.mubr.bf16.mxu1 %v7109_v32 }
 0x24e   : > { %v1530_v51 = vpop.permute.xlu1 %1529  ;;  %v1780_v62 = vpop.permute.xlu0 %1779 }
 0x24f   : > { %1552 = vmatprep.subr.bf16.mxu1 %v1530_v51  ;;  %v1532_v52 = vsel %vm1531_vm1, %v1528_v46, %v1530_v51  ;;  %5917 = vmatmul.mubr.msk.bf16.vlgmr.msra.gmra.mxu0 %vm1111_vm12, %v6636_v49 }
 0x250   : > { %1553 = vmatpush1.bf16.msra.mxu1 %v1532_v52  ;;  %1654 = vmatprep.mubr.bf16.mxu0 %v7109_v32 }
 0x252   : > { %v1614_v54 = vpop.permute.xlu1 %1613 }
 0x253   : > { %1636 = vmatprep.subr.bf16.mxu0 %v1614_v54  ;;  %v1616_v56 = vsel %vm1615_vm3, %v1612_v50, %v1614_v54  ;;  %5921 = vmatmul.mubr.msk.bf16.vlgmr.msra.gmra.mxu1 %vm1111_vm12, %v6637_v53 }
 0x254   : > { %1637 = vmatpush1.bf16.msra.mxu0 %v1616_v56  ;;  %1738 = vmatprep.mubr.bf16.mxu1 %v7109_v32 }
 0x256   : > { %v1698_v59 = vpop.permute.xlu1 %1697 }
 0x257   : > { %1720 = vmatprep.subr.bf16.mxu1 %v1698_v59  ;;  %v1700_v60 = vsel %vm1699_vm4, %v1696_v58, %v1698_v59  ;;  %5925 = vmatmul.mubr.msk.bf16.vlgmr.msra.gmra.mxu0 %vm1111_vm12, %v6638_v57 }
 0x258   : > { %1721 = vmatpush1.bf16.msra.mxu1 %v1700_v60  ;;  %1822 = vmatprep.mubr.bf16.mxu0 %v7109_v32 }
 0x25a   : > { %v1782_v63 = vpop.permute.xlu1 %1781 }
 0x25b   : > { %1804 = vmatprep.subr.bf16.mxu0 %v1782_v63  ;;  %v1784_v1 = vsel %vm1783_vm5, %v1780_v62, %v1782_v63  ;;  %5929 = vmatmul.mubr.msk.bf16.vlgmr.msra.gmra.mxu1 %vm1111_vm12, %v6639_v61  ;;  %v7208_v63 = vld [vmem:[%s8105_s4] sm:$0xff] }
 0x25c   : > { %1805 = vmatpush1.bf16.msra.mxu0 %v1784_v1  ;;  %1964 = vmatprep.mubr.bf16.mxu1 %v7109_v32 }
 0x25f   : > { %5933 = vmatmul.mubr.msk.bf16.vlgmr.msra.gmra.mxu0 %vm1111_vm12, %v6640_v3  ;;  %v7213_v3 = vld [vmem:[%s8105_s4 + $0x8] sm:$0xff] }
 0x260   : > { %2046 = vmatprep.mubr.bf16.mxu0 %v7109_v32 }
 0x291   : > { %v1149_v2 = vpop.f32.mrf.mxu0 }
 0x292   : > { %1162 = vrot.lane.b32.xlu0 %v1149_v2, %s6801_s26 }
 0x293   : > { %v1151_v4 = vpop.f32.mrf.mxu0 }
 0x294   : > { %1164 = vrot.lane.b32.xlu1 %v1151_v4, %s6801_s26 }
 0x295   : > { %v1153_v5 = vpop.f32.mrf.mxu0 }
 0x296   : > { %1166 = vrot.lane.b32.xlu0 %v1153_v5, %s6801_s26 }
 0x297   : > { %v1155_v6 = vpop.f32.mrf.mxu0 }
 0x298   : > { %1168 = vrot.lane.b32.xlu1 %v1155_v6, %s6801_s26 }
 0x303   : > { %v1236_v7 = vpop.f32.mrf.mxu1 }
 0x304   : > { %1249 = vrot.lane.b32.xlu0 %v1236_v7, %s6801_s26  ;;  %v1163_v40 = vpop.permute.xlu0 %1162 }
 0x305   : > { %v1238_v8 = vpop.f32.mrf.mxu1  ;;  %v1177_v4 = vadd.f32 %v1163_v40, %v7208_v63 }
 0x306   : > { %1251 = vrot.lane.b32.xlu1 %v1238_v8, %s6801_s26  ;;  %v1165_v41 = vpop.permute.xlu1 %1164 }
 0x307   : > { %v1320_v9 = vpop.f32.mrf.mxu0  ;;  %v1240_v10 = vpop.f32.mrf.mxu1  ;;  %v1171_v2 = vsel %vm1170_vm6, %v1163_v40, %v1165_v41 }
 0x308   : > { %1333 = vrot.lane.b32.xlu0 %v1320_v9, %s6801_s26  ;;  %v1167_v42 = vpop.permute.xlu0 %1166  ;;  %v1178_v7 = vadd.f32 %v1171_v2, %v7213_v3 }
 0x309   : > { %v1322_v11 = vpop.f32.mrf.mxu0  ;;  %v1242_v12 = vpop.f32.mrf.mxu1 }
 0x30a   : > { %1335 = vrot.lane.b32.xlu1 %v1322_v11, %s6801_s26  ;;  %v1169_v43 = vpop.permute.xlu1 %1168 }
 0x30b   : > { %v1324_v13 = vpop.f32.mrf.mxu0  ;;  %v1404_v15 = vpop.f32.mrf.mxu1 }
 0x30c   : > { %1253 = vrot.lane.b32.xlu0 %v1240_v10, %s6801_s26 }
 0x30d   : > { %v1326_v14 = vpop.f32.mrf.mxu0  ;;  %v1406_v16 = vpop.f32.mrf.mxu1 }
 0x30e   : > { %1255 = vrot.lane.b32.xlu1 %v1242_v12, %s6801_s26 }
 0x30f   : > { %v1488_v17 = vpop.f32.mrf.mxu0  ;;  %v1408_v18 = vpop.f32.mrf.mxu1 }
 0x310   : > { %1337 = vrot.lane.b32.xlu0 %v1324_v13, %s6801_s26 }
 0x311   : > { %v1490_v19 = vpop.f32.mrf.mxu0  ;;  %v1410_v20 = vpop.f32.mrf.mxu1 }
 0x312   : > { %1339 = vrot.lane.b32.xlu1 %v1326_v14, %s6801_s26  ;;  %v7223_v14 = vld [vmem:[%s8105_s4 + $0x10] sm:$0xff] }
 0x313   : > { %v1492_v21 = vpop.f32.mrf.mxu0  ;;  %v1572_v23 = vpop.f32.mrf.mxu1 }
 0x314   : > { %1417 = vrot.lane.b32.xlu0 %v1404_v15, %s6801_s26 }
 0x315   : > { %v1494_v22 = vpop.f32.mrf.mxu0  ;;  %v1574_v24 = vpop.f32.mrf.mxu1 }
 0x316   : > { %1419 = vrot.lane.b32.xlu1 %v1406_v16, %s6801_s26 }
 0x317   : > { %v1656_v25 = vpop.f32.mrf.mxu0  ;;  %v1576_v26 = vpop.f32.mrf.mxu1 }
 0x318   : > { %1501 = vrot.lane.b32.xlu0 %v1488_v17, %s6801_s26 }
 0x319   : > { %v1658_v27 = vpop.f32.mrf.mxu0  ;;  %v1578_v28 = vpop.f32.mrf.mxu1 }
 0x31a   : > { %1503 = vrot.lane.b32.xlu1 %v1490_v19, %s6801_s26  ;;  %v7229_v19 = vld [vmem:[%s8105_s4 + $0x18] sm:$0xff] }
 0x31b   : > { %v1660_v29 = vpop.f32.mrf.mxu0  ;;  %v1740_v31 = vpop.f32.mrf.mxu1 }
 0x31c   : > { %1421 = vrot.lane.b32.xlu0 %v1408_v18, %s6801_s26 }
 0x31d   : > { %v1662_v30 = vpop.f32.mrf.mxu0  ;;  %v1742_v33 = vpop.f32.mrf.mxu1 }
 0x31e   : > { %1423 = vrot.lane.b32.xlu1 %v1410_v20, %s6801_s26  ;;  %v1172_v20 = vsel %vm1170_vm6, %v1167_v42, %v1169_v43 }
 0x31f   : > { %v1824_v34 = vpop.f32.mrf.mxu0  ;;  %v1744_v35 = vpop.f32.mrf.mxu1 }
 0x320   : > { %1505 = vrot.lane.b32.xlu0 %v1492_v21, %s6801_s26 }
 0x321   : > { %v1826_v36 = vpop.f32.mrf.mxu0  ;;  %v1746_v37 = vpop.f32.mrf.mxu1 }
 0x322   : > { %1507 = vrot.lane.b32.xlu1 %v1494_v22, %s6801_s26  ;;  %v1179_v22 = vadd.f32 %v1167_v42, %v7223_v14 }
 0x323   : > { %v1828_v38 = vpop.f32.mrf.mxu0 }
 0x324   : > { %1585 = vrot.lane.b32.xlu0 %v1572_v23, %s6801_s26 }
 0x325   : > { %v1830_v39 = vpop.f32.mrf.mxu0 }
 0x326   : > { %1587 = vrot.lane.b32.xlu1 %v1574_v24, %s6801_s26 }
 0x328   : > { %1669 = vrot.lane.b32.xlu0 %v1656_v25, %s6801_s26 }
 0x32a   : > { %1671 = vrot.lane.b32.xlu1 %v1658_v27, %s6801_s26 }
 0x32c   : > { %1589 = vrot.lane.b32.xlu0 %v1576_v26, %s6801_s26 }
 0x32e   : > { %1591 = vrot.lane.b32.xlu1 %v1578_v28, %s6801_s26  ;;  %v1180_v28 = vadd.f32 %v1172_v20, %v7229_v19 }
 0x330   : > { %1673 = vrot.lane.b32.xlu0 %v1660_v29, %s6801_s26 }
 0x332   : > { %1675 = vrot.lane.b32.xlu1 %v1662_v30, %s6801_s26 }
 0x334   : > { %1753 = vrot.lane.b32.xlu0 %v1740_v31, %s6801_s26 }
 0x336   : > { %1755 = vrot.lane.b32.xlu1 %v1742_v33, %s6801_s26 }
 0x338   : > { %1837 = vrot.lane.b32.xlu0 %v1824_v34, %s6801_s26 }
 0x33a   : > { %1839 = vrot.lane.b32.xlu1 %v1826_v36, %s6801_s26 }
 0x33c   : > { %1757 = vrot.lane.b32.xlu0 %v1744_v35, %s6801_s26 }
 0x33e   : > { %1759 = vrot.lane.b32.xlu1 %v1746_v37, %s6801_s26 }
 0x340   : > { %1841 = vrot.lane.b32.xlu0 %v1828_v38, %s6801_s26 }
 0x342   : > { %1843 = vrot.lane.b32.xlu1 %v1830_v39, %s6801_s26 }
 0x376   : > { %v1250_v44 = vpop.permute.xlu0 %1249 }
 0x377   : > { %v1263_v8 = vadd.f32 %v1250_v44, %v1177_v4 }
 0x378   : > { %v1252_v45 = vpop.permute.xlu1 %1251 }
 0x379   : > { %v1257_v6 = vsel %vm1170_vm6, %v1250_v44, %v1252_v45 }
 0x37a   : > { %v1334_v46 = vpop.permute.xlu0 %1333  ;;  %v1264_v11 = vadd.f32 %v1257_v6, %v1178_v7 }
 0x37b   : > { %v1347_v12 = vadd.f32 %v1334_v46, %v1263_v8 }
 0x37c   : > { %v1336_v47 = vpop.permute.xlu1 %1335 }
 0x37d   : > { %v1341_v10 = vsel %vm1170_vm6, %v1334_v46, %v1336_v47 }
 0x37e   : > { %v1254_v48 = vpop.permute.xlu0 %1253  ;;  %v1348_v16 = vadd.f32 %v1341_v10, %v1264_v11 }
 0x37f   : > { %v1265_v29 = vadd.f32 %v1254_v48, %v1179_v22 }
 0x380   : > { %v1256_v49 = vpop.permute.xlu1 %1255 }
 0x381   : > { %v1258_v26 = vsel %vm1170_vm6, %v1254_v48, %v1256_v49 }
 0x382   : > { %v1338_v50 = vpop.permute.xlu0 %1337  ;;  %v1266_v36 = vadd.f32 %v1258_v26, %v1180_v28 }
 0x383   : > { %v1349_v37 = vadd.f32 %v1338_v50, %v1265_v29 }
 0x384   : > { %v1340_v51 = vpop.permute.xlu1 %1339 }
 0x385   : > { %v1342_v34 = vsel %vm1170_vm6, %v1338_v50, %v1340_v51 }
 0x386   : > { %v1418_v52 = vpop.permute.xlu0 %1417  ;;  %v1350_v43 = vadd.f32 %v1342_v34, %v1266_v36 }
 0x387   : > { %v1431_v17 = vadd.f32 %v1418_v52, %v1347_v12 }
 0x388   : > { %v1420_v53 = vpop.permute.xlu1 %1419 }
 0x389   : > { %v1425_v15 = vsel %vm1170_vm6, %v1418_v52, %v1420_v53 }
 0x38a   : > { %v1502_v54 = vpop.permute.xlu0 %1501  ;;  %v1432_v23 = vadd.f32 %v1425_v15, %v1348_v16 }
 0x38b   : > { %v1515_v24 = vadd.f32 %v1502_v54, %v1431_v17 }
 0x38c   : > { %v1504_v56 = vpop.permute.xlu1 %1503 }
 0x38d   : > { %v1509_v21 = vsel %vm1170_vm6, %v1502_v54, %v1504_v56 }
 0x38e   : > { %v1422_v57 = vpop.permute.xlu0 %1421  ;;  %v1516_v30 = vadd.f32 %v1509_v21, %v1432_v23  ;;  %v1097_v21 = vlaneseq }
 0x38f   : > { %v1433_v44 = vadd.f32 %v1422_v57, %v1349_v37 }
 0x390   : > { %v1424_v58 = vpop.permute.xlu1 %1423  ;;  %v1098_v22 = vand.u32 127, %v1097_v21 }
 0x391   : > { %v1426_v41 = vsel %vm1170_vm6, %v1422_v57, %v1424_v58 }
 0x392   : > { %v1506_v59 = vpop.permute.xlu0 %1505  ;;  %v1434_v49 = vadd.f32 %v1426_v41, %v1350_v43  ;;  %v1099_v23 = vadd.s32 128, %v1098_v22 }
 0x393   : > { %v1517_v51 = vadd.f32 %v1506_v59, %v1433_v44  ;;  %v2709_v44 = vld [vmem:[%s8107_s6] sm:$0xff] }
 0x394   : > { %v1508_v60 = vpop.permute.xlu1 %1507 }
 0x395   : > { %v1510_v48 = vsel %vm1170_vm6, %v1506_v59, %v1508_v60 }
 0x396   : > { %v1586_v61 = vpop.permute.xlu0 %1585 }
 0x397   : > { %v1599_v31 = vadd.f32 %v1586_v61, %v1515_v24  ;;  %v1101_v24 = vand.u32 15, %v1099_v23 }
 0x398   : > { %v1588_v62 = vpop.permute.xlu1 %1587 }
 0x399   : > { %v1593_v27 = vsel %vm1170_vm6, %v1586_v61, %v1588_v62  ;;  %v1518_v61 = vadd.f32 %v1510_v48, %v1434_v49  ;;  %vm7249_vm7 = vcmp.lt.s32.totalorder %v1101_v24, 14  ;;  %v6648_v24 = vld [vmem:[%s8104_s3 + $0x38] sm:$0xff]  }
 0x39a   : > { %v1670_v1 = vpop.permute.xlu0 %1669  ;;  %v1600_v38 = vadd.f32 %v1593_v27, %v1516_v30 }
 0x39b   : > { %v1683_v39 = vadd.f32 %v1670_v1, %v1599_v31 }
 0x39c   : > { %v1672_v5 = vpop.permute.xlu1 %1671 }
 0x39d   : > { %v1677_v35 = vsel %vm1170_vm6, %v1670_v1, %v1672_v5 }
 0x39e   : > { %v1590_v9 = vpop.permute.xlu0 %1589  ;;  %v1684_v45 = vadd.f32 %v1677_v35, %v1600_v38 }
 0x39f   : > { %v1601_v58 = vadd.f32 %v1590_v9, %v1517_v51 }
 0x3a0   : > { %v1592_v13 = vpop.permute.xlu1 %1591 }
 0x3a1   : > { %v1594_v50 = vsel %vm1170_vm6, %v1590_v9, %v1592_v13 }
 0x3a2   : > { %v1674_v18 = vpop.permute.xlu0 %1673  ;;  %v1602_v2 = vadd.f32 %v1594_v50, %v1518_v61  ;;  %v6641_v50 = vld [vmem:[%s8104_s3] sm:$0xff]  }
 0x3a3   : > { %v1685_v4 = vadd.f32 %v1674_v18, %v1601_v58 }
 0x3a4   : > { %v1676_v25 = vpop.permute.xlu1 %1675 }
 0x3a5   : > { %v1678_v57 = vsel %vm1170_vm6, %v1674_v18, %v1676_v25  ;;  %v1100_v25 = vand.u32 15, %v1098_v22 }
 0x3a6   : > { %v1754_v33 = vpop.permute.xlu0 %1753  ;;  %v1686_v7 = vadd.f32 %v1678_v57, %v1602_v2 }
 0x3a7   : > { %v1767_v46 = vadd.f32 %v1754_v33, %v1683_v39  ;;  %vm7253_vm8 = vcmp.lt.s32.totalorder %v1100_v25, 14 }
 0x3a8   : > { %v1756_v40 = vpop.permute.xlu1 %1755 }
 0x3a9   : > { %v1761_v42 = vsel %vm1170_vm6, %v1754_v33, %v1756_v40 }
 0x3aa   : > { %v1838_v47 = vpop.permute.xlu0 %1837  ;;  %v1768_v52 = vadd.f32 %v1761_v42, %v1684_v45 }
 0x3ab   : > { %v1851_v53 = vadd.f32 %v1838_v47, %v1767_v46 }
 0x3ac   : > { %v1840_v54 = vpop.permute.xlu1 %1839 }
 0x3ad   : > { %v1845_v56 = vsel %vm1170_vm6, %v1838_v47, %v1840_v54  ;;  %v1855_v5 = vmax.f32 %v1851_v53, 0.0 }
 0x3ae   : > { %v1852_v62 = vadd.f32 %v1845_v56, %v1768_v52  ;;  %v1758_v1 = vpop.permute.xlu0 %1757 }
 0x3af   : > { %v1769_v8 = vadd.f32 %v1758_v1, %v1685_v4  ;;  %v6643_v4 = vld [vmem:[%s8104_s3 + $0x10] sm:$0xff]  }
 0x3b0   : > { %v1856_v6 = vmax.f32 %v1852_v62, 0.0  ;;  %v1760_v60 = vpop.permute.xlu1 %1759  ;;  %v6642_v62 = vld [vmem:[%s8104_s3 + $0x8] sm:$0xff]  }
 0x3b1   : > { %v1762_v59 = vsel %vm1170_vm6, %v1758_v1, %v1760_v60 }
 0x3b2   : > { %v1842_v10 = vpop.permute.xlu0 %1841  ;;  %v6530_v11 = vpack.i.bf16 %v1856_v6, %v1855_v5  ;;  %v1770_v12 = vadd.f32 %v1762_v59, %v1686_v7  ;;  %v6644_v59 = vld [vmem:[%s8104_s3 + $0x18] sm:$0xff]  }
 0x3b3   : > { %v1853_v13 = vadd.f32 %v1842_v10, %v1769_v8 }
 0x3b4   : > { %6531 = vrot.lane.b32.xlu0 %v6530_v11, %s6817_s15  ;;  %v1844_v9 = vpop.permute.xlu1 %1843  ;;  %v6645_v11 = vld [vmem:[%s8104_s3 + $0x20] sm:$0xff]  }
 0x3b5   : > { %v1846_v15 = vsel %vm1170_vm6, %v1842_v10, %v1844_v9  ;;  %v1857_v17 = vmax.f32 %v1853_v13, 0.0 }
 0x3b6   : > { %v1854_v16 = vadd.f32 %v1846_v15, %v1770_v12  ;;  %v6646_v15 = vld [vmem:[%s8104_s3 + $0x28] sm:$0xff]  }
 0x3b8   : > { %v1858_v20 = vmax.f32 %v1854_v16, 0.0 }
 0x3ba   : > { %v6535_v18 = vpack.i.bf16 %v1858_v20, %v1857_v17 }
 0x3bc   : > { %6536 = vrot.lane.b32.xlu1 %v6535_v18, %s6817_s15  ;;  %v6647_v18 = vld [vmem:[%s8104_s3 + $0x30] sm:$0xff]  }
 0x426   : > { %v6532_v26 = vpop.permute.xlu0 %6531 }
 0x427   : > { %v6534_v28 = vunpack.i.h.bf16 %v6532_v26  ;;  %v6533_v29 = vunpack.i.l.bf16 %v6532_v26 }
 0x429   : > { %v1874_v31 = vsel %vm1447_vm0, %v6533_v29, %v6534_v28  ;;  %v1881_v33 = vsel %vm7249_vm7, %v6534_v28, 0.0  ;;  %v6649_v29 = vld [vmem:[%s8104_s3 + $0x40] sm:$0xff]  }
 0x42a   : > { %v1880_v34 = vsel %vm7253_vm8, %v1874_v31, 0.0 }
 0x42b   : > { %v6211_v35 = vpack.c.bf16 %v1881_v33, %v1880_v34 }
 0x42d   : > { %1894 = vrot.lane.b32.xlu0 %v6211_v35, %s6801_s26 }
 0x42e   : > { %v6537_v36 = vpop.permute.xlu1 %6536 }
 0x42f   : > { %v6539_v37 = vunpack.i.h.bf16 %v6537_v36  ;;  %v6538_v38 = vunpack.i.l.bf16 %v6537_v36 }
 0x431   : > { %v1875_v39 = vsel %vm1447_vm0, %v6538_v38, %v6539_v37  ;;  %v1883_v40 = vsel %vm7249_vm7, %v6539_v37, 0.0 }
 0x432   : > { %v1882_v41 = vsel %vm7253_vm8, %v1875_v39, 0.0 }
 0x433   : > { %v6212_v42 = vpack.c.bf16 %v1883_v40, %v1882_v41 }
 0x435   : > { %1896 = vrot.lane.b32.xlu1 %v6212_v42, %s6801_s26 }
 0x49f   : > { %v1895_v43 = vpop.permute.xlu0 %1894 }
 0x4a0   : > { %v1898_v45 = vrot.slane %v1895_v43, 4 }
 0x4a2   : > { %v1901_v46 = vsel %vm1170_vm6, %v1898_v45, %v1895_v43 }
 0x4a3   : > { %1908 = vst.msk [vmem:[#allocation3] sm:$0xff] %vm7269_vm11, %v1901_v46 }
 0x4a7   : > { %v1897_v47 = vpop.permute.xlu1 %1896 }
 0x4a8   : > { %v1899_v48 = vrot.slane %v1897_v47, 4 }
 0x4aa   : > { %v1910_v49 = vld [vmem:[#allocation3] sm:$0xff]  ;;  %v1902_v51 = vsel %vm1170_vm6, %v1899_v48, %v1897_v47 }
 0x4ab   : > { %2661 = vst [vmem:[#allocation3] sm:$0xff] %v7109_v32  ;;  %1909 = vst.msk [vmem:[#allocation3 + $0x8] sm:$0xff] %vm7269_vm11, %v1902_v51 }
 0x4b2   : > { %v1911_v52 = vld [vmem:[#allocation3 + $0x8] sm:$0xff] }
 0x4b3   : > { %2662 = vst [vmem:[#allocation3 + $0x8] sm:$0xff] %v7109_v32  ;;  %v5938_v53 = vcombine.high %v1910_v49, %v1911_v52  ;;  %v5937_v54 = vcombine.low %v1910_v49, %v1911_v52 }
 0x4b5   : > { %2006 = vrot.lane.b32.xlu1 %v5938_v53, %s8127_s28  ;;  %1946 = vmatprep.subr.bf16.mxu1 %v5938_v53 }
 0x4b6   : > { %2004 = vrot.lane.b32.xlu0 %v5937_v54, %s8127_s28  ;;  %1947 = vmatpush1.bf16.msra.mxu1 %v5937_v54  ;;  %s6822_s28 = smov 109  }
 0x4b9   : > { %2088 = vrot.lane.b32.xlu1 %v5938_v53, %s8151_s27  ;;  %5939 = vmatmul.mubr.msk.bf16.vlgmr.msra.gmra.mxu1 %vm1111_vm12, %v6641_v50 }
 0x4ba   : > { %2086 = vrot.lane.b32.xlu0 %v5937_v54, %s8151_s27  ;;  %2128 = vmatprep.mubr.bf16.mxu1 %v7109_v32  ;;  %s6823_s27 = smov 108  }
 0x4bd   : > { %2170 = vrot.lane.b32.xlu1 %v5938_v53, %s8152_s18 }
 0x4be   : > { %2168 = vrot.lane.b32.xlu0 %v5937_v54, %s8152_s18 }
 0x4c1   : > { %2252 = vrot.lane.b32.xlu1 %v5938_v53, %s6817_s15 }
 0x4c2   : > { %2250 = vrot.lane.b32.xlu0 %v5937_v54, %s6817_s15 }
 0x4c5   : > { %2334 = vrot.lane.b32.xlu1 %v5938_v53, %s8129_s20 }
 0x4c6   : > { %2332 = vrot.lane.b32.xlu0 %v5937_v54, %s8129_s20  ;;  %s6824_s20 = smov 107  }
 0x4c9   : > { %2416 = vrot.lane.b32.xlu1 %v5938_v53, %s6819_s21 }
 0x4ca   : > { %2414 = vrot.lane.b32.xlu0 %v5937_v54, %s6819_s21  ;;  %s6826_s21 = smov 92  }
 0x4cd   : > { %2498 = vrot.lane.b32.xlu1 %v5938_v53, %s8153_s22 }
 0x4ce   : > { %2496 = vrot.lane.b32.xlu0 %v5937_v54, %s8153_s22 }
 0x4d1   : > { %2580 = vrot.lane.b32.xlu1 %v5938_v53, %s8154_s25 }
 0x4d2   : > { %2578 = vrot.lane.b32.xlu0 %v5937_v54, %s8154_s25 }
 0x527   : > { %v2007_v56 = vpop.permute.xlu1 %2006 }
 0x528   : > { %v2005_v61 = vpop.permute.xlu0 %2004  ;;  %2028 = vmatprep.subr.bf16.mxu0 %v2007_v56 }
 0x529   : > { %v2008_v58 = vsel %vm1195_vm13, %v2005_v61, %v2007_v56 }
 0x52a   : > { %2029 = vmatpush1.bf16.msra.mxu0 %v2008_v58 }
 0x52b   : > { %v2089_v1 = vpop.permute.xlu1 %2088 }
 0x52c   : > { %v2087_v57 = vpop.permute.xlu0 %2086  ;;  %2110 = vmatprep.subr.bf16.mxu1 %v2089_v1 }
 0x52d   : > { %v2090_v2 = vsel %vm1279_vm14, %v2087_v57, %v2089_v1  ;;  %5943 = vmatmul.mubr.msk.bf16.vlgmr.msra.gmra.mxu0 %vm1111_vm12, %v6642_v62  ;;  %vm2872_vm14 = vcmask 891904  }
 0x52e   : > { %2111 = vmatpush1.bf16.msra.mxu1 %v2090_v2  ;;  %2210 = vmatprep.mubr.bf16.mxu0 %v7109_v32 }
 0x52f   : > { %v2171_v5 = vpop.permute.xlu1 %2170 }
 0x530   : > { %v2169_v6 = vpop.permute.xlu0 %2168  ;;  %2192 = vmatprep.subr.bf16.mxu0 %v2171_v5 }
 0x531   : > { %v2172_v60 = vsel %vm1363_vm15, %v2169_v6, %v2171_v5  ;;  %5947 = vmatmul.mubr.msk.bf16.vlgmr.msra.gmra.mxu1 %vm1111_vm12, %v6643_v4 }
 0x532   : > { %2193 = vmatpush1.bf16.msra.mxu0 %v2172_v60  ;;  %2292 = vmatprep.mubr.bf16.mxu1 %v7109_v32 }
 0x533   : > { %v2253_v7 = vpop.permute.xlu1 %2252 }
 0x534   : > { %v2251_v8 = vpop.permute.xlu0 %2250  ;;  %2274 = vmatprep.subr.bf16.mxu1 %v2253_v7 }
 0x535   : > { %v2254_v10 = vsel %vm1447_vm0, %v2251_v8, %v2253_v7  ;;  %5951 = vmatmul.mubr.msk.bf16.vlgmr.msra.gmra.mxu0 %vm1111_vm12, %v6644_v59 }
 0x536   : > { %2275 = vmatpush1.bf16.msra.mxu1 %v2254_v10  ;;  %2374 = vmatprep.mubr.bf16.mxu0 %v7109_v32 }
 0x537   : > { %v2335_v12 = vpop.permute.xlu1 %2334 }
 0x538   : > { %v2333_v13 = vpop.permute.xlu0 %2332  ;;  %2356 = vmatprep.subr.bf16.mxu0 %v2335_v12 }
 0x539   : > { %v2336_v9 = vsel %vm1531_vm1, %v2333_v13, %v2335_v12  ;;  %5955 = vmatmul.mubr.msk.bf16.vlgmr.msra.gmra.mxu1 %vm1111_vm12, %v6645_v11 }
 0x53a   : > { %2357 = vmatpush1.bf16.msra.mxu0 %v2336_v9  ;;  %2456 = vmatprep.mubr.bf16.mxu1 %v7109_v32 }
 0x53b   : > { %v2417_v16 = vpop.permute.xlu1 %2416 }
 0x53c   : > { %v2415_v17 = vpop.permute.xlu0 %2414  ;;  %2438 = vmatprep.subr.bf16.mxu1 %v2417_v16 }
 0x53d   : > { %v2418_v20 = vsel %vm1615_vm3, %v2415_v17, %v2417_v16  ;;  %5959 = vmatmul.mubr.msk.bf16.vlgmr.msra.gmra.mxu0 %vm1111_vm12, %v6646_v15  ;;  %vm3200_vm3 = vcmask 760832  }
 0x53e   : > { %2439 = vmatpush1.bf16.msra.mxu1 %v2418_v20  ;;  %2538 = vmatprep.mubr.bf16.mxu0 %v7109_v32 }
 0x53f   : > { %v2499_v21 = vpop.permute.xlu1 %2498 }
 0x540   : > { %v2497_v22 = vpop.permute.xlu0 %2496  ;;  %2520 = vmatprep.subr.bf16.mxu0 %v2499_v21 }
 0x541   : > { %v2500_v23 = vsel %vm1699_vm4, %v2497_v22, %v2499_v21  ;;  %5963 = vmatmul.mubr.msk.bf16.vlgmr.msra.gmra.mxu1 %vm1111_vm12, %v6647_v18 }
 0x542   : > { %2521 = vmatpush1.bf16.msra.mxu0 %v2500_v23  ;;  %2620 = vmatprep.mubr.bf16.mxu1 %v7109_v32 }
 0x543   : > { %v2581_v25 = vpop.permute.xlu1 %2580 }
 0x544   : > { %v2579_v26 = vpop.permute.xlu0 %2578  ;;  %2602 = vmatprep.subr.bf16.mxu1 %v2581_v25 }
 0x545   : > { %v2582_v28 = vsel %vm1783_vm5, %v2579_v26, %v2581_v25  ;;  %5967 = vmatmul.mubr.msk.bf16.vlgmr.msra.gmra.mxu0 %vm1111_vm12, %v6648_v24 }
 0x546   : > { %2603 = vmatpush1.bf16.msra.mxu1 %v2582_v28  ;;  %2780 = vmatprep.mubr.bf16.mxu0 %v7109_v32 }
 0x549   : > { %5971 = vmatmul.mubr.msk.bf16.vlgmr.msra.gmra.mxu1 %vm1111_vm12, %v6649_v29 }
 0x54a   : > { %2845 = vmatprep.mubr.bf16.mxu1 %v7109_v32 }
 0x579   : > { %v1966_v31 = vpop.f32.mrf.mxu1 }
 0x57a   : > { %1979 = vrot.lane.b32.xlu0 %v1966_v31, %s6801_s26 }
 0x57b   : > { %v1968_v33 = vpop.f32.mrf.mxu1 }
 0x57c   : > { %1981 = vrot.lane.b32.xlu1 %v1968_v33, %s6801_s26 }
 0x57d   : > { %v1970_v34 = vpop.f32.mrf.mxu1 }
 0x57e   : > { %1983 = vrot.lane.b32.xlu0 %v1970_v34, %s6801_s26 }
 0x57f   : > { %v1972_v35 = vpop.f32.mrf.mxu1 }
 0x580   : > { %1985 = vrot.lane.b32.xlu1 %v1972_v35, %s6801_s26 }
 0x5ec   : > { %v1980_v10 = vpop.permute.xlu0 %1979 }
 0x5ed   : > { %v2048_v36 = vpop.f32.mrf.mxu0 }
 0x5ee   : > { %2061 = vrot.lane.b32.xlu0 %v2048_v36, %s6801_s26  ;;  %v1982_v11 = vpop.permute.xlu1 %1981 }
 0x5ef   : > { %v2050_v37 = vpop.f32.mrf.mxu0 }
 0x5f0   : > { %2063 = vrot.lane.b32.xlu1 %v2050_v37, %s6801_s26  ;;  %v1984_v12 = vpop.permute.xlu0 %1983  ;;  %v1993_v37 = vadd.f32 %v1980_v10, %v7208_v63 }
 0x5f1   : > { %v2130_v38 = vpop.f32.mrf.mxu1  ;;  %v2052_v39 = vpop.f32.mrf.mxu0  ;;  %v1995_v63 = vadd.f32 %v1984_v12, %v7223_v14 }
 0x5f2   : > { %2143 = vrot.lane.b32.xlu0 %v2130_v38, %s6801_s26  ;;  %v1986_v13 = vpop.permute.xlu1 %1985  ;;  %v1987_v38 = vsel %vm1170_vm6, %v1980_v10, %v1982_v11 }
 0x5f3   : > { %v2132_v40 = vpop.f32.mrf.mxu1  ;;  %v2054_v41 = vpop.f32.mrf.mxu0 }
 0x5f4   : > { %2145 = vrot.lane.b32.xlu1 %v2132_v40, %s6801_s26 }
 0x5f5   : > { %v2134_v42 = vpop.f32.mrf.mxu1  ;;  %v2212_v45 = vpop.f32.mrf.mxu0 }
 0x5f6   : > { %2065 = vrot.lane.b32.xlu0 %v2052_v39, %s6801_s26 }
 0x5f7   : > { %v2136_v43 = vpop.f32.mrf.mxu1  ;;  %v2214_v46 = vpop.f32.mrf.mxu0 }
 0x5f8   : > { %2067 = vrot.lane.b32.xlu1 %v2054_v41, %s6801_s26 }
 0x5f9   : > { %v2294_v47 = vpop.f32.mrf.mxu1  ;;  %v2216_v48 = vpop.f32.mrf.mxu0 }
 0x5fa   : > { %2147 = vrot.lane.b32.xlu0 %v2134_v42, %s6801_s26  ;;  %v1994_v42 = vadd.f32 %v1987_v38, %v7213_v3 }
 0x5fb   : > { %v2296_v49 = vpop.f32.mrf.mxu1  ;;  %v2218_v51 = vpop.f32.mrf.mxu0 }
 0x5fc   : > { %2149 = vrot.lane.b32.xlu1 %v2136_v43, %s6801_s26 }
 0x5fd   : > { %v2298_v52 = vpop.f32.mrf.mxu1  ;;  %v2376_v54 = vpop.f32.mrf.mxu0 }
 0x5fe   : > { %2225 = vrot.lane.b32.xlu0 %v2212_v45, %s6801_s26 }
 0x5ff   : > { %v2300_v53 = vpop.f32.mrf.mxu1  ;;  %v2378_v50 = vpop.f32.mrf.mxu0 }
 0x600   : > { %2227 = vrot.lane.b32.xlu1 %v2214_v46, %s6801_s26 }
 0x601   : > { %v2458_v56 = vpop.f32.mrf.mxu1  ;;  %v2380_v61 = vpop.f32.mrf.mxu0 }
 0x602   : > { %2307 = vrot.lane.b32.xlu0 %v2294_v47, %s6801_s26 }
 0x603   : > { %v2460_v58 = vpop.f32.mrf.mxu1  ;;  %v2382_v62 = vpop.f32.mrf.mxu0 }
 0x604   : > { %2309 = vrot.lane.b32.xlu1 %v2296_v49, %s6801_s26 }
 0x605   : > { %v2462_v1 = vpop.f32.mrf.mxu1  ;;  %v2540_v2 = vpop.f32.mrf.mxu0 }
 0x606   : > { %2229 = vrot.lane.b32.xlu0 %v2216_v48, %s6801_s26 }
 0x607   : > { %v2464_v57 = vpop.f32.mrf.mxu1  ;;  %v2542_v4 = vpop.f32.mrf.mxu0 }
 0x608   : > { %2231 = vrot.lane.b32.xlu1 %v2218_v51, %s6801_s26 }
 0x609   : > { %v2622_v5 = vpop.f32.mrf.mxu1  ;;  %v2544_v6 = vpop.f32.mrf.mxu0 }
 0x60a   : > { %2311 = vrot.lane.b32.xlu0 %v2298_v52, %s6801_s26 }
 0x60b   : > { %v2624_v60 = vpop.f32.mrf.mxu1  ;;  %v2546_v59 = vpop.f32.mrf.mxu0 }
 0x60c   : > { %2313 = vrot.lane.b32.xlu1 %v2300_v53, %s6801_s26 }
 0x60d   : > { %v2626_v7 = vpop.f32.mrf.mxu1 }
 0x60e   : > { %2389 = vrot.lane.b32.xlu0 %v2376_v54, %s6801_s26  ;;  %v1988_v54 = vsel %vm1170_vm6, %v1984_v12, %v1986_v13 }
 0x60f   : > { %v2628_v8 = vpop.f32.mrf.mxu1 }
 0x610   : > { %2391 = vrot.lane.b32.xlu1 %v2378_v50, %s6801_s26 }
 0x612   : > { %2471 = vrot.lane.b32.xlu0 %v2458_v56, %s6801_s26 }
 0x614   : > { %2473 = vrot.lane.b32.xlu1 %v2460_v58, %s6801_s26 }
 0x616   : > { %2393 = vrot.lane.b32.xlu0 %v2380_v61, %s6801_s26 }
 0x618   : > { %2395 = vrot.lane.b32.xlu1 %v2382_v62, %s6801_s26 }
 0x61a   : > { %2475 = vrot.lane.b32.xlu0 %v2462_v1, %s6801_s26 }
 0x61c   : > { %2477 = vrot.lane.b32.xlu1 %v2464_v57, %s6801_s26 }
 0x61e   : > { %2553 = vrot.lane.b32.xlu0 %v2540_v2, %s6801_s26  ;;  %v1996_v2 = vadd.f32 %v1988_v54, %v7229_v19  ;;  %v6733_v54 = vld [vmem:[#allocation2 + $0x10] sm:$0xff] }
 0x620   : > { %2555 = vrot.lane.b32.xlu1 %v2542_v4, %s6801_s26 }
 0x622   : > { %2635 = vrot.lane.b32.xlu0 %v2622_v5, %s6801_s26 }
 0x624   : > { %2637 = vrot.lane.b32.xlu1 %v2624_v60, %s6801_s26 }
 0x626   : > { %2557 = vrot.lane.b32.xlu0 %v2544_v6, %s6801_s26 }
 0x628   : > { %2559 = vrot.lane.b32.xlu1 %v2546_v59, %s6801_s26 }
 0x62a   : > { %2639 = vrot.lane.b32.xlu0 %v2626_v7, %s6801_s26 }
 0x62c   : > { %2641 = vrot.lane.b32.xlu1 %v2628_v8, %s6801_s26 }
 0x660   : > { %v2062_v9 = vpop.permute.xlu0 %2061 }
 0x661   : > { %v2075_v40 = vadd.f32 %v2062_v9, %v1993_v37 }
 0x662   : > { %v2064_v15 = vpop.permute.xlu1 %2063 }
 0x663   : > { %v2069_v41 = vsel %vm1170_vm6, %v2062_v9, %v2064_v15 }
 0x664   : > { %v2144_v16 = vpop.permute.xlu0 %2143  ;;  %v2076_v47 = vadd.f32 %v2069_v41, %v1994_v42 }
 0x665   : > { %v2157_v45 = vadd.f32 %v2144_v16, %v2075_v40  ;;  %v6732_v40 = vld [vmem:[#allocation2 + $0x8] sm:$0xff] }
 0x666   : > { %v2146_v17 = vpop.permute.xlu1 %2145 }
 0x667   : > { %v2151_v46 = vsel %vm1170_vm6, %v2144_v16, %v2146_v17 }
 0x668   : > { %v2066_v20 = vpop.permute.xlu0 %2065  ;;  %v2158_v52 = vadd.f32 %v2151_v46, %v2076_v47 }
 0x669   : > { %v2077_v58 = vadd.f32 %v2066_v20, %v1995_v63 }
 0x66a   : > { %v2068_v18 = vpop.permute.xlu1 %2067 }
 0x66b   : > { %v2070_v62 = vsel %vm1170_vm6, %v2066_v20, %v2068_v18 }
 0x66c   : > { %v2148_v21 = vpop.permute.xlu0 %2147  ;;  %v2078_v7 = vadd.f32 %v2070_v62, %v1996_v2 }
 0x66d   : > { %v2159_v6 = vadd.f32 %v2148_v21, %v2077_v58 }
 0x66e   : > { %v2150_v22 = vpop.permute.xlu1 %2149 }
 0x66f   : > { %v2152_v14 = vsel %vm1170_vm6, %v2148_v21, %v2150_v22 }
 0x670   : > { %v2226_v23 = vpop.permute.xlu0 %2225  ;;  %v2160_v15 = vadd.f32 %v2152_v14, %v2078_v7 }
 0x671   : > { %v2239_v49 = vadd.f32 %v2226_v23, %v2157_v45 }
 0x672   : > { %v2228_v24 = vpop.permute.xlu1 %2227 }
 0x673   : > { %v2233_v51 = vsel %vm1170_vm6, %v2226_v23, %v2228_v24 }
 0x674   : > { %v2308_v25 = vpop.permute.xlu0 %2307  ;;  %v2240_v61 = vadd.f32 %v2233_v51, %v2158_v52 }
 0x675   : > { %v2321_v50 = vadd.f32 %v2308_v25, %v2239_v49 }
 0x676   : > { %v2310_v26 = vpop.permute.xlu1 %2309 }
 0x677   : > { %v2315_v56 = vsel %vm1170_vm6, %v2308_v25, %v2310_v26 }
 0x678   : > { %v2230_v28 = vpop.permute.xlu0 %2229  ;;  %v2322_v4 = vadd.f32 %v2315_v56, %v2240_v61  ;;  %v6734_v56 = vld [vmem:[#allocation2 + $0x18] sm:$0xff] }
 0x679   : > { %v2241_v11 = vadd.f32 %v2230_v28, %v2159_v6 }
 0x67a   : > { %v2232_v29 = vpop.permute.xlu1 %2231 }
 0x67b   : > { %v2234_v12 = vsel %vm1170_vm6, %v2230_v28, %v2232_v29  ;;  %v6731_v28 = vld [vmem:[#allocation2] sm:$0xff] }
 0x67c   : > { %v2312_v31 = vpop.permute.xlu0 %2311  ;;  %v2242_v21 = vadd.f32 %v2234_v12, %v2160_v15 }
 0x67d   : > { %v2323_v17 = vadd.f32 %v2312_v31, %v2241_v11 }
 0x67e   : > { %v2314_v33 = vpop.permute.xlu1 %2313 }
 0x67f   : > { %v2316_v20 = vsel %vm1170_vm6, %v2312_v31, %v2314_v33 }
 0x680   : > { %v2390_v34 = vpop.permute.xlu0 %2389 }
 0x681   : > { %v2403_v1 = vadd.f32 %v2390_v34, %v2321_v50 }
 0x682   : > { %v2392_v35 = vpop.permute.xlu1 %2391 }
 0x683   : > { %v2397_v57 = vsel %vm1170_vm6, %v2390_v34, %v2392_v35  ;;  %v2324_v34 = vadd.f32 %v2316_v20, %v2242_v21  ;;  %v2710_v21 = vld [vmem:[%s8107_s6 + $0x8] sm:$0xff] }
 0x684   : > { %v2472_v36 = vpop.permute.xlu0 %2471  ;;  %v2404_v8 = vadd.f32 %v2397_v57, %v2322_v4 }
 0x685   : > { %v2485_v60 = vadd.f32 %v2472_v36, %v2403_v1 }
 0x686   : > { %v2474_v39 = vpop.permute.xlu1 %2473 }
 0x687   : > { %v2479_v59 = vsel %vm1170_vm6, %v2472_v36, %v2474_v39 }
 0x688   : > { %v2394_v43 = vpop.permute.xlu0 %2393  ;;  %v2486_v16 = vadd.f32 %v2479_v59, %v2404_v8 }
 0x689   : > { %v2405_v24 = vadd.f32 %v2394_v43, %v2323_v17 }
 0x68a   : > { %v2396_v48 = vpop.permute.xlu1 %2395 }
 0x68b   : > { %v2398_v25 = vsel %vm1170_vm6, %v2394_v43, %v2396_v48 }
 0x68c   : > { %v2476_v53 = vpop.permute.xlu0 %2475  ;;  %v2406_v39 = vadd.f32 %v2398_v25, %v2324_v34  ;;  %v6650_v25 = vld [vmem:[%s8106_s5] sm:$0xff]  }
 0x68d   : > { %v2487_v37 = vadd.f32 %v2476_v53, %v2405_v24 }
 0x68e   : > { %v2478_v3 = vpop.permute.xlu1 %2477 }
 0x68f   : > { %v2480_v38 = vsel %vm1170_vm6, %v2476_v53, %v2478_v3 }
 0x690   : > { %v2554_v5 = vpop.permute.xlu0 %2553  ;;  %v2488_v45 = vadd.f32 %v2480_v38, %v2406_v39  ;;  %v6652_v38 = vld [vmem:[%s8106_s5 + $0x10] sm:$0xff]  }
 0x691   : > { %v2567_v13 = vadd.f32 %v2554_v5, %v2485_v60 }
 0x692   : > { %v2556_v10 = vpop.permute.xlu1 %2555 }
 0x693   : > { %v2561_v9 = vsel %vm1170_vm6, %v2554_v5, %v2556_v10 }
 0x694   : > { %v2636_v19 = vpop.permute.xlu0 %2635  ;;  %v2568_v22 = vadd.f32 %v2561_v9, %v2486_v16 }
 0x695   : > { %v2649_v18 = vadd.f32 %v2636_v19, %v2567_v13 }
 0x696   : > { %v2638_v23 = vpop.permute.xlu1 %2637 }
 0x697   : > { %v2643_v26 = vsel %vm1170_vm6, %v2636_v19, %v2638_v23  ;;  %v2653_v29 = vadd.f32 %v6731_v28, %v2649_v18 }
 0x698   : > { %v2650_v35 = vadd.f32 %v2643_v26, %v2568_v22  ;;  %v2558_v36 = vpop.permute.xlu0 %2557 }
 0x699   : > { %v2569_v41 = vadd.f32 %v2558_v36, %v2487_v37  ;;  %v2657_v46 = vmax.f32 %v2653_v29, 0.0  ;;  %v6651_v29 = vld [vmem:[%s8106_s5 + $0x8] sm:$0xff]  }
 0x69a   : > { %v2654_v31 = vadd.f32 %v6732_v40, %v2650_v35  ;;  %v2560_v33 = vpop.permute.xlu1 %2559 }
 0x69b   : > { %v2562_v42 = vsel %vm1170_vm6, %v2558_v36, %v2560_v33  ;;  %v6653_v33 = vld [vmem:[%s8106_s5 + $0x18] sm:$0xff]  }
 0x69c   : > { %v2658_v43 = vmax.f32 %v2654_v31, 0.0  ;;  %v2640_v47 = vpop.permute.xlu0 %2639  ;;  %v2570_v51 = vadd.f32 %v2562_v42, %v2488_v45 }
 0x69d   : > { %v2651_v48 = vadd.f32 %v2640_v47, %v2569_v41 }
 0x69e   : > { %v6540_v49 = vpack.i.bf16 %v2658_v43, %v2657_v46  ;;  %v2642_v52 = vpop.permute.xlu1 %2641  ;;  %v6654_v46 = vld [vmem:[%s8106_s5 + $0x20] sm:$0xff]  }
 0x69f   : > { %v2644_v63 = vsel %vm1170_vm6, %v2640_v47, %v2642_v52  ;;  %v2655_v50 = vadd.f32 %v6733_v54, %v2651_v48  ;;  %v6656_v54 = vld [vmem:[%s8106_s5 + $0x30] sm:$0xff]  }
 0x6a0   : > { %v2652_v53 = vadd.f32 %v2644_v63, %v2570_v51  ;;  %6541 = vrot.lane.b32.xlu0 %v6540_v49, %s6817_s15  ;;  %v6655_v49 = vld [vmem:[%s8106_s5 + $0x28] sm:$0xff]  }
 0x6a1   : > { %v2659_v3 = vmax.f32 %v2655_v50, 0.0 }
 0x6a2   : > { %v2656_v61 = vadd.f32 %v6734_v56, %v2652_v53 }
 0x6a4   : > { %v2660_v58 = vmax.f32 %v2656_v61, 0.0  ;;  %v6657_v61 = vld [vmem:[%s8106_s5 + $0x38] sm:$0xff]  }
 0x6a6   : > { %v6545_v62 = vpack.i.bf16 %v2660_v58, %v2659_v3 }
 0x6a8   : > { %6546 = vrot.lane.b32.xlu1 %v6545_v62, %s6817_s15 }
 0x712   : > { %v6542_v1 = vpop.permute.xlu0 %6541 }
 0x713   : > { %v6544_v57 = vunpack.i.h.bf16 %v6542_v1  ;;  %v6543_v2 = vunpack.i.l.bf16 %v6542_v1  ;;  %v6658_v1 = vld [vmem:[%s8106_s5 + $0x40] sm:$0xff]  }
 0x715   : > { %v2682_v4 = vsel %vm7249_vm7, %v6544_v57, 0.0  ;;  %v2675_v5 = vsel %vm1447_vm0, %v6543_v2, %v6544_v57 }
 0x716   : > { %v2681_v6 = vsel %vm7253_vm8, %v2675_v5, 0.0  ;;  %v6659_v5 = vld [vmem:[%s8106_s5 + $0x48] sm:$0xff]  }
 0x717   : > { %v6213_v14 = vpack.c.bf16 %v2682_v4, %v2681_v6 }
 0x719   : > { %2695 = vrot.lane.b32.xlu0 %v6213_v14, %s6801_s26 }
 0x71a   : > { %v6547_v60 = vpop.permute.xlu1 %6546 }
 0x71b   : > { %v6549_v59 = vunpack.i.h.bf16 %v6547_v60  ;;  %v6548_v7 = vunpack.i.l.bf16 %v6547_v60 }
 0x71d   : > { %v2684_v8 = vsel %vm7249_vm7, %v6549_v59, 0.0  ;;  %v2676_v10 = vsel %vm1447_vm0, %v6548_v7, %v6549_v59  ;;  %v6660_v59 = vld [vmem:[%s8106_s5 + $0x50] sm:$0xff]   ;;  %vm3464_vm7 = vcmask 637952  }
 0x71e   : > { %v2683_v11 = vsel %vm7253_vm8, %v2676_v10, 0.0  ;;  %vm3530_vm8 = vcmask 629760  }
 0x71f   : > { %v6214_v12 = vpack.c.bf16 %v2684_v8, %v2683_v11  ;;  %v6661_v11 = vld [vmem:[%s8106_s5 + $0x58] sm:$0xff]  }
 0x721   : > { %2697 = vrot.lane.b32.xlu1 %v6214_v12, %s6801_s26  ;;  %s8155_s26 = smov 110  }
 0x78b   : > { %v2696_v13 = vpop.permute.xlu0 %2695 }
 0x78c   : > { %v2699_v9 = vrot.slane %v2696_v13, 4 }
 0x78e   : > { %v2701_v15 = vsel %vm1170_vm6, %v2699_v9, %v2696_v13 }
 0x78f   : > { %2705 = vst.msk [vmem:[#allocation3] sm:$0xff] %vm7269_vm11, %v2701_v15  ;;  %v6662_v15 = vld [vmem:[%s8106_s5 + $0x60] sm:$0xff]  }
 0x793   : > { %v2698_v16 = vpop.permute.xlu1 %2697 }
 0x794   : > { %v2700_v19 = vrot.slane %v2698_v16, 4 }
 0x796   : > { %v2702_v27 = vsel %vm1170_vm6, %v2700_v19, %v2698_v16  ;;  %v2707_v17 = vld [vmem:[#allocation3] sm:$0xff]  ;;  %vm3398_vm6 = vcmask 646144  }
 0x797   : > { %2706 = vst.msk [vmem:[#allocation3 + $0x8] sm:$0xff] %vm7269_vm11, %v2702_v27  ;;  %vm3860_vm11 = vcmask 498688  }
 0x79e   : > { %v2708_v30 = vld [vmem:[#allocation3 + $0x8] sm:$0xff] }
 0x79f   : > { %v7428_v20 = vcombine.low %v2707_v17, %v2708_v30  ;;  %v7430_v18 = vcombine.high %v2707_v17, %v2708_v30  ;;  %v6663_v17 = vld [vmem:[%s8106_s5 + $0x68] sm:$0xff]  }
 0x7a1   : > { %2740 = vrot.lane.b32.xlu1 %v7430_v18, %s6817_s15  ;;  %2738 = vrot.lane.b32.xlu0 %v7428_v20, %s6817_s15  ;;  %s6825_s15 = smov 93  }
 0x7a5   : > { %2805 = vrot.lane.b32.xlu1 %v7430_v18, %s8155_s26  ;;  %2803 = vrot.lane.b32.xlu0 %v7428_v20, %s8155_s26  ;;  %s6827_s26 = smov 91  }
 0x7a9   : > { %2870 = vrot.lane.b32.xlu1 %v7430_v18, %s6822_s28  ;;  %2868 = vrot.lane.b32.xlu0 %v7428_v20, %s6822_s28  ;;  %s6830_s28 = smov 77  }
 0x7ad   : > { %2936 = vrot.lane.b32.xlu1 %v7430_v18, %s6823_s27  ;;  %2934 = vrot.lane.b32.xlu0 %v7428_v20, %s6823_s27  ;;  %s6831_s27 = smov 76  }
 0x7b1   : > { %3002 = vrot.lane.b32.xlu1 %v7430_v18, %s6824_s20  ;;  %3000 = vrot.lane.b32.xlu0 %v7428_v20, %s6824_s20  ;;  %s6832_s20 = smov 75  }
 0x7b5   : > { %3068 = vrot.lane.b32.xlu1 %v7430_v18, %s8153_s22  ;;  %3066 = vrot.lane.b32.xlu0 %v7428_v20, %s8153_s22  ;;  %s6828_s22 = smov 79  }
 0x7b9   : > { %3133 = vrot.lane.b32.xlu1 %v7430_v18, %s8154_s25  ;;  %3131 = vrot.lane.b32.xlu0 %v7428_v20, %s8154_s25  ;;  %s6829_s25 = smov 78  }
 0x7bd   : > { %3198 = vrot.lane.b32.xlu1 %v7430_v18, %s6825_s15  ;;  %3196 = vrot.lane.b32.xlu0 %v7428_v20, %s6825_s15  ;;  %s6833_s15 = smov 63  }
 0x7c1   : > { %3264 = vrot.lane.b32.xlu1 %v7430_v18, %s6826_s21  ;;  %3262 = vrot.lane.b32.xlu0 %v7428_v20, %s6826_s21  ;;  %s6834_s21 = smov 62  }
 0x7c5   : > { %3330 = vrot.lane.b32.xlu1 %v7430_v18, %s6827_s26  ;;  %3328 = vrot.lane.b32.xlu0 %v7428_v20, %s6827_s26  ;;  %s6835_s26 = smov 61  }
 0x7c9   : > { %3396 = vrot.lane.b32.xlu1 %v7430_v18, %s6828_s22  ;;  %3394 = vrot.lane.b32.xlu0 %v7428_v20, %s6828_s22  ;;  %s6836_s22 = smov 60  }
 0x7cd   : > { %3462 = vrot.lane.b32.xlu1 %v7430_v18, %s6829_s25  ;;  %3460 = vrot.lane.b32.xlu0 %v7428_v20, %s6829_s25  ;;  %s6837_s25 = smov 59  }
 0x7d1   : > { %3528 = vrot.lane.b32.xlu1 %v7430_v18, %s6830_s28  ;;  %3526 = vrot.lane.b32.xlu0 %v7428_v20, %s6830_s28  ;;  %s6838_s28 = smov 47  }
 0x7d5   : > { %3594 = vrot.lane.b32.xlu1 %v7430_v18, %s6831_s27  ;;  %3592 = vrot.lane.b32.xlu0 %v7428_v20, %s6831_s27  ;;  %s6839_s27 = smov 46  }
 0x7d9   : > { %3660 = vrot.lane.b32.xlu1 %v7430_v18, %s6832_s20  ;;  %3658 = vrot.lane.b32.xlu0 %v7428_v20, %s6832_s20  ;;  %s6840_s20 = smov 45  }
 0x7dd   : > { %3726 = vrot.lane.b32.xlu1 %v7430_v18, %s6833_s15  ;;  %3724 = vrot.lane.b32.xlu0 %v7428_v20, %s6833_s15  ;;  %s6841_s15 = smov 44  }
 0x7e1   : > { %3792 = vrot.lane.b32.xlu1 %v7430_v18, %s6834_s21  ;;  %3790 = vrot.lane.b32.xlu0 %v7428_v20, %s6834_s21  ;;  %s8156_s21 = smov 43  }
 0x7e5   : > { %3858 = vrot.lane.b32.xlu1 %v7430_v18, %s6835_s26  ;;  %3856 = vrot.lane.b32.xlu0 %v7428_v20, %s6835_s26  ;;  %s8170_s26 = smov 127  }
 0x7e9   : > { %3924 = vrot.lane.b32.xlu1 %v7430_v18, %s6836_s22  ;;  %3922 = vrot.lane.b32.xlu0 %v7428_v20, %s6836_s22 }
 0x7ed   : > { %3990 = vrot.lane.b32.xlu1 %v7430_v18, %s6837_s25  ;;  %3988 = vrot.lane.b32.xlu0 %v7428_v20, %s6837_s25 }
 0x7f1   : > { %4056 = vrot.lane.b32.xlu1 %v7430_v18, %s6838_s28  ;;  %4054 = vrot.lane.b32.xlu0 %v7428_v20, %s6838_s28 }
 0x7f5   : > { %4122 = vrot.lane.b32.xlu1 %v7430_v18, %s6839_s27  ;;  %4120 = vrot.lane.b32.xlu0 %v7428_v20, %s6839_s27 }
 0x7f9   : > { %4188 = vrot.lane.b32.xlu1 %v7430_v18, %s6840_s20  ;;  %4186 = vrot.lane.b32.xlu0 %v7428_v20, %s6840_s20  ;;  %s458_s20 = sand.u32 1, %s6787_s30  }
 0x7fd   : > { %4254 = vrot.lane.b32.xlu1 %v7430_v18, %s6841_s15  ;;  %4252 = vrot.lane.b32.xlu0 %v7428_v20, %s6841_s15  ;;  %s5753_s15 = scalar_lea.sflag [#allocation5], %s458_s20 }
 0x801   : > { %4320 = vrot.lane.b32.xlu1 %v7430_v18, %s8156_s21  ;;  %4318 = vrot.lane.b32.xlu0 %v7428_v20, %s8156_s21  ;;  %s6843_s21 = smov [#allocation4]  }
 0x802   : > { %s6739_s0 = sshll.u32 %s6843_s21, 4  ;;  %s6740_s0 = int_to_ptr.vmem [resolvable:$false] %s6739_s0 }
 0x803   : > { %s6741_s25 = scalar_lea.vmem %s6740_s0, 32 }
 0x805   : > { %2713 = vperm.xlu0 %6529, %v2709_v44   ;;  %2718 = vperm.xlu1 %6550, %v2710_v21   ;;  %v6664_v44 = vld [vmem:[%s8106_s5 + $0x70] sm:$0xff]  }
 0x813   : > { %v2741_v22 = vpop.permute.xlu1 %2740  ;;  %v2739_v23 = vpop.permute.xlu0 %2738 }
 0x814   : > { %v2742_v24 = vsel %vm1447_vm0, %v2739_v23, %v2741_v22  ;;  %2762 = vmatprep.subr.bf16.mxu0 %v2741_v22  ;;  %vm2938_vm0 = vcmask 883712  }
 0x815   : > { %2763 = vmatpush1.bf16.msra.mxu0 %v2742_v24  ;;  %v6665_v24 = vld [vmem:[%s8106_s5 + $0x78] sm:$0xff]  }
 0x817   : > { %v2806_v26 = vpop.permute.xlu1 %2805  ;;  %v2804_v34 = vpop.permute.xlu0 %2803 }
 0x818   : > { %v2807_v28 = vsel %vm1531_vm1, %v2804_v34, %v2806_v26  ;;  %5977 = vmatmul.mubr.msk.bf16.vlgmr.msra.gmra.mxu0 %vm1111_vm12, %v6650_v25  ;;  %2827 = vmatprep.subr.bf16.mxu1 %v2806_v26  ;;  %vm3004_vm1 = vcmask 875520  }
 0x819   : > { %2828 = vmatpush1.bf16.msra.mxu1 %v2807_v28  ;;  %2911 = vmatprep.mubr.bf16.mxu0 %v7109_v32  ;;  %v6666_v28 = vld [vmem:[%s8106_s5 + $0x80] sm:$0xff]  }
 0x81b   : > { %v2871_v35 = vpop.permute.xlu1 %2870  ;;  %v2869_v36 = vpop.permute.xlu0 %2868 }
 0x81c   : > { %v2873_v37 = vsel %vm2872_vm14, %v2869_v36, %v2871_v35  ;;  %5981 = vmatmul.mubr.msk.bf16.vlgmr.msra.gmra.mxu1 %vm1111_vm12, %v6651_v29  ;;  %2893 = vmatprep.subr.bf16.mxu0 %v2871_v35  ;;  %vm3926_vm14 = vcmask 490496  }
 0x81d   : > { %2894 = vmatpush1.bf16.msra.mxu0 %v2873_v37  ;;  %2977 = vmatprep.mubr.bf16.mxu1 %v7109_v32  ;;  %v6667_v37 = vld [vmem:[%s8106_s5 + $0x88] sm:$0xff]  }
 0x81f   : > { %v2937_v39 = vpop.permute.xlu1 %2936  ;;  %v2935_v40 = vpop.permute.xlu0 %2934 }
 0x820   : > { %v2939_v31 = vsel %vm2938_vm0, %v2935_v40, %v2937_v39  ;;  %5985 = vmatmul.mubr.msk.bf16.vlgmr.msra.gmra.mxu0 %vm1111_vm12, %v6652_v38  ;;  %2959 = vmatprep.subr.bf16.mxu1 %v2937_v39  ;;  %vm3992_vm0 = vcmask 482304  }
 0x821   : > { %2960 = vmatpush1.bf16.msra.mxu1 %v2939_v31  ;;  %3043 = vmatprep.mubr.bf16.mxu0 %v7109_v32  ;;  %v6668_v31 = vld [vmem:[%s8106_s5 + $0x90] sm:$0xff]  }
 0x823   : > { %v3003_v41 = vpop.permute.xlu1 %3002  ;;  %v3001_v42 = vpop.permute.xlu0 %3000 }
 0x824   : > { %v3005_v45 = vsel %vm3004_vm1, %v3001_v42, %v3003_v41  ;;  %5989 = vmatmul.mubr.msk.bf16.vlgmr.msra.gmra.mxu1 %vm1111_vm12, %v6653_v33  ;;  %3025 = vmatprep.subr.bf16.mxu0 %v3003_v41  ;;  %vm4058_vm1 = vcmask 384000  }
 0x825   : > { %3026 = vmatpush1.bf16.msra.mxu0 %v3005_v45  ;;  %3108 = vmatprep.mubr.bf16.mxu1 %v7109_v32  ;;  %v6669_v45 = vld [vmem:[%s8106_s5 + $0x98] sm:$0xff]  }
 0x827   : > { %v3069_v43 = vpop.permute.xlu1 %3068  ;;  %v3067_v47 = vpop.permute.xlu0 %3066 }
 0x828   : > { %v3070_v48 = vsel %vm1699_vm4, %v3067_v47, %v3069_v43  ;;  %5993 = vmatmul.mubr.msk.bf16.vlgmr.msra.gmra.mxu0 %vm1111_vm12, %v6654_v46  ;;  %3090 = vmatprep.subr.bf16.mxu1 %v3069_v43  ;;  %vm3266_vm4 = vcmask 752640  }
 0x829   : > { %3091 = vmatpush1.bf16.msra.mxu1 %v3070_v48  ;;  %3173 = vmatprep.mubr.bf16.mxu0 %v7109_v32  ;;  %v6670_v48 = vld [vmem:[%s8106_s5 + $0xa0] sm:$0xff]  }
 0x82b   : > { %v3134_v51 = vpop.permute.xlu1 %3133  ;;  %v3132_v52 = vpop.permute.xlu0 %3131 }
 0x82c   : > { %v3135_v63 = vsel %vm1783_vm5, %v3132_v52, %v3134_v51  ;;  %5997 = vmatmul.mubr.msk.bf16.vlgmr.msra.gmra.mxu1 %vm1111_vm12, %v6655_v49  ;;  %3155 = vmatprep.subr.bf16.mxu0 %v3134_v51  ;;  %vm3332_vm5 = vcmask 744448  }
 0x82d   : > { %3156 = vmatpush1.bf16.msra.mxu0 %v3135_v63  ;;  %3239 = vmatprep.mubr.bf16.mxu1 %v7109_v32  ;;  %v6671_v63 = vld [vmem:[%s8106_s5 + $0xa8] sm:$0xff]  }
 0x82f   : > { %v3199_v50 = vpop.permute.xlu1 %3198  ;;  %v3197_v53 = vpop.permute.xlu0 %3196 }
 0x830   : > { %v3201_v56 = vsel %vm3200_vm3, %v3197_v53, %v3199_v50  ;;  %6001 = vmatmul.mubr.msk.bf16.vlgmr.msra.gmra.mxu0 %vm1111_vm12, %v6656_v54  ;;  %3221 = vmatprep.subr.bf16.mxu1 %v3199_v50  ;;  %vm4124_vm3 = vcmask 375808  }
 0x831   : > { %3222 = vmatpush1.bf16.msra.mxu1 %v3201_v56  ;;  %3305 = vmatprep.mubr.bf16.mxu0 %v7109_v32  ;;  %v6672_v56 = vld [vmem:[%s8106_s5 + $0xb0] sm:$0xff]  }
 0x833   : > { %v3265_v3 = vpop.permute.xlu1 %3264  ;;  %v3263_v58 = vpop.permute.xlu0 %3262 }
 0x834   : > { %v3267_v62 = vsel %vm3266_vm4, %v3263_v58, %v3265_v3  ;;  %6005 = vmatmul.mubr.msk.bf16.vlgmr.msra.gmra.mxu1 %vm1111_vm12, %v6657_v61  ;;  %3287 = vmatprep.subr.bf16.mxu0 %v3265_v3  ;;  %vm4190_vm4 = vcmask 367616  }
 0x835   : > { %3288 = vmatpush1.bf16.msra.mxu0 %v3267_v62  ;;  %3371 = vmatprep.mubr.bf16.mxu1 %v7109_v32  ;;  %v6673_v62 = vld [vmem:[%s8106_s5 + $0xb8] sm:$0xff]  }
 0x837   : > { %v3331_v57 = vpop.permute.xlu1 %3330  ;;  %v3329_v2 = vpop.permute.xlu0 %3328 }
 0x838   : > { %v3333_v4 = vsel %vm3332_vm5, %v3329_v2, %v3331_v57  ;;  %6009 = vmatmul.mubr.msk.bf16.vlgmr.msra.gmra.mxu0 %vm1111_vm12, %v6658_v1  ;;  %3353 = vmatprep.subr.bf16.mxu1 %v3331_v57  ;;  %vm4256_vm5 = vcmask 359424  }
 0x839   : > { %3354 = vmatpush1.bf16.msra.mxu1 %v3333_v4  ;;  %3437 = vmatprep.mubr.bf16.mxu0 %v7109_v32  ;;  %v6674_v4 = vld [vmem:[%s8106_s5 + $0xc0] sm:$0xff]  }
 0x83b   : > { %v3397_v6 = vpop.permute.xlu1 %3396  ;;  %v3395_v14 = vpop.permute.xlu0 %3394 }
 0x83c   : > { %v3399_v60 = vsel %vm3398_vm6, %v3395_v14, %v3397_v6  ;;  %6013 = vmatmul.mubr.msk.bf16.vlgmr.msra.gmra.mxu1 %vm1111_vm12, %v6659_v5  ;;  %3419 = vmatprep.subr.bf16.mxu0 %v3397_v6  ;;  %vm4322_vm6 = vcmask 351232  }
 0x83d   : > { %3420 = vmatpush1.bf16.msra.mxu0 %v3399_v60  ;;  %3503 = vmatprep.mubr.bf16.mxu1 %v7109_v32 }
 0x83f   : > { %v3463_v7 = vpop.permute.xlu1 %3462  ;;  %v3461_v8 = vpop.permute.xlu0 %3460 }
 0x840   : > { %v3465_v10 = vsel %vm3464_vm7, %v3461_v8, %v3463_v7  ;;  %6017 = vmatmul.mubr.msk.bf16.vlgmr.msra.gmra.mxu0 %vm1111_vm12, %v6660_v59  ;;  %3485 = vmatprep.subr.bf16.mxu1 %v3463_v7  ;;  %vm4500_vm7 = vcmask 1047552  }
 0x841   : > { %3486 = vmatpush1.bf16.msra.mxu1 %v3465_v10  ;;  %3569 = vmatprep.mubr.bf16.mxu0 %v7109_v32 }
 0x843   : > { %v3529_v12 = vpop.permute.xlu1 %3528  ;;  %v3527_v13 = vpop.permute.xlu0 %3526 }
 0x844   : > { %v3531_v9 = vsel %vm3530_vm8, %v3527_v13, %v3529_v12  ;;  %6021 = vmatmul.mubr.msk.bf16.vlgmr.msra.gmra.mxu1 %vm1111_vm12, %v6661_v11  ;;  %3551 = vmatprep.subr.bf16.mxu0 %v3529_v12  ;;  %vm4565_vm8 = vcmask 261120  }
 0x845   : > { %3552 = vmatpush1.bf16.msra.mxu0 %v3531_v9  ;;  %3635 = vmatprep.mubr.bf16.mxu1 %v7109_v32 }
 0x847   : > { %v3595_v16 = vpop.permute.xlu1 %3594  ;;  %v3593_v19 = vpop.permute.xlu0 %3592 }
 0x848   : > { %v3597_v27 = vsel %vm3596_vm9, %v3593_v19, %v3595_v16  ;;  %6025 = vmatmul.mubr.msk.bf16.vlgmr.msra.gmra.mxu0 %vm1111_vm12, %v6662_v15  ;;  %3617 = vmatprep.subr.bf16.mxu1 %v3595_v16  ;;  %vm5611_vm9 = vcmask 1043456  }
 0x849   : > { %3618 = vmatpush1.bf16.msra.mxu1 %v3597_v27  ;;  %3701 = vmatprep.mubr.bf16.mxu0 %v7109_v32 }
 0x84b   : > { %v3661_v30 = vpop.permute.xlu1 %3660  ;;  %v3659_v20 = vpop.permute.xlu0 %3658 }
 0x84c   : > { %v3663_v18 = vsel %vm543_vm2, %v3659_v20, %v3661_v30  ;;  %6029 = vmatmul.mubr.msk.bf16.vlgmr.msra.gmra.mxu1 %vm1111_vm12, %v6663_v17  ;;  %3683 = vmatprep.subr.bf16.mxu0 %v3661_v30  ;;  %vm3794_vm2 = vcmask 506880  }
 0x84d   : > { %3684 = vmatpush1.bf16.msra.mxu0 %v3663_v18  ;;  %3767 = vmatprep.mubr.bf16.mxu1 %v7109_v32 }
 0x84f   : > { %v3727_v21 = vpop.permute.xlu1 %3726  ;;  %v3725_v22 = vpop.permute.xlu0 %3724 }
 0x850   : > { %v3729_v23 = vsel %vm3728_vm10, %v3725_v22, %v3727_v21  ;;  %6033 = vmatmul.mubr.msk.bf16.vlgmr.msra.gmra.mxu0 %vm1111_vm12, %v6664_v44  ;;  %3749 = vmatprep.subr.bf16.mxu1 %v3727_v21  ;;  %vm5706_vm10 = vcmask 1041408  }
 0x851   : > { %3750 = vmatpush1.bf16.msra.mxu1 %v3729_v23  ;;  %3833 = vmatprep.mubr.bf16.mxu0 %v7109_v32 }
 0x853   : > { %v3793_v25 = vpop.permute.xlu1 %3792  ;;  %v3791_v26 = vpop.permute.xlu0 %3790 }
 0x854   : > { %v3795_v34 = vsel %vm3794_vm2, %v3791_v26, %v3793_v25  ;;  %6037 = vmatmul.mubr.msk.bf16.vlgmr.msra.gmra.mxu1 %vm1111_vm12, %v6665_v24  ;;  %3815 = vmatprep.subr.bf16.mxu0 %v3793_v25  ;;  %vm5607_vm2 = vcmask 982016  }
 0x855   : > { %3816 = vmatpush1.bf16.msra.mxu0 %v3795_v34  ;;  %3899 = vmatprep.mubr.bf16.mxu1 %v7109_v32 }
 0x857   : > { %v3859_v29 = vpop.permute.xlu1 %3858  ;;  %v3857_v35 = vpop.permute.xlu0 %3856 }
 0x858   : > { %v3861_v36 = vsel %vm3860_vm11, %v3857_v35, %v3859_v29  ;;  %6041 = vmatmul.mubr.msk.bf16.vlgmr.msra.gmra.mxu0 %vm1111_vm12, %v6666_v28  ;;  %3881 = vmatprep.subr.bf16.mxu1 %v3859_v29  ;;  %vm5702_vm11 = vcmask 687104  }
 0x859   : > { %3882 = vmatpush1.bf16.msra.mxu1 %v3861_v36  ;;  %3965 = vmatprep.mubr.bf16.mxu0 %v7109_v32 }
 0x85b   : > { %v3925_v38 = vpop.permute.xlu1 %3924  ;;  %v3923_v39 = vpop.permute.xlu0 %3922 }
 0x85c   : > { %v3927_v40 = vsel %vm3926_vm14, %v3923_v39, %v3925_v38  ;;  %6045 = vmatmul.mubr.msk.bf16.vlgmr.msra.gmra.mxu1 %vm1111_vm12, %v6667_v37  ;;  %3947 = vmatprep.subr.bf16.mxu0 %v3925_v38  ;;  %vm5750_vm14 = vcmask 73728  }
 0x85d   : > { %3948 = vmatpush1.bf16.msra.mxu0 %v3927_v40  ;;  %4031 = vmatprep.mubr.bf16.mxu1 %v7109_v32 }
 0x85f   : > { %v3991_v33 = vpop.permute.xlu1 %3990  ;;  %v3989_v41 = vpop.permute.xlu0 %3988 }
 0x860   : > { %v3993_v42 = vsel %vm3992_vm0, %v3989_v41, %v3991_v33  ;;  %6049 = vmatmul.mubr.msk.bf16.vlgmr.msra.gmra.mxu0 %vm1111_vm12, %v6668_v31  ;;  %4013 = vmatprep.subr.bf16.mxu1 %v3991_v33 }
 0x861   : > { %4014 = vmatpush1.bf16.msra.mxu1 %v3993_v42  ;;  %4097 = vmatprep.mubr.bf16.mxu0 %v7109_v32 }
 0x863   : > { %v4057_v46 = vpop.permute.xlu1 %4056  ;;  %v4055_v43 = vpop.permute.xlu0 %4054 }
 0x864   : > { %v4059_v47 = vsel %vm4058_vm1, %v4055_v43, %v4057_v46  ;;  %6053 = vmatmul.mubr.msk.bf16.vlgmr.msra.gmra.mxu1 %vm1111_vm12, %v6669_v45  ;;  %4079 = vmatprep.subr.bf16.mxu0 %v4057_v46 }
 0x865   : > { %4080 = vmatpush1.bf16.msra.mxu0 %v4059_v47  ;;  %4163 = vmatprep.mubr.bf16.mxu1 %v7109_v32 }
 0x867   : > { %v4123_v49 = vpop.permute.xlu1 %4122  ;;  %v4121_v51 = vpop.permute.xlu0 %4120 }
 0x868   : > { %v4125_v52 = vsel %vm4124_vm3, %v4121_v51, %v4123_v49  ;;  %6057 = vmatmul.mubr.msk.bf16.vlgmr.msra.gmra.mxu0 %vm1111_vm12, %v6670_v48  ;;  %4145 = vmatprep.subr.bf16.mxu1 %v4123_v49 }
 0x869   : > { %4146 = vmatpush1.bf16.msra.mxu1 %v4125_v52  ;;  %4229 = vmatprep.mubr.bf16.mxu0 %v7109_v32 }
 0x86b   : > { %v4189_v54 = vpop.permute.xlu1 %4188  ;;  %v4187_v50 = vpop.permute.xlu0 %4186 }
 0x86c   : > { %v4191_v53 = vsel %vm4190_vm4, %v4187_v50, %v4189_v54  ;;  %6061 = vmatmul.mubr.msk.bf16.vlgmr.msra.gmra.mxu1 %vm1111_vm12, %v6671_v63  ;;  %4211 = vmatprep.subr.bf16.mxu0 %v4189_v54 }
 0x86d   : > { %4212 = vmatpush1.bf16.msra.mxu0 %v4191_v53  ;;  %4295 = vmatprep.mubr.bf16.mxu1 %v7109_v32 }
 0x86f   : > { %v4255_v61 = vpop.permute.xlu1 %4254  ;;  %v4253_v3 = vpop.permute.xlu0 %4252 }
 0x870   : > { %v4257_v58 = vsel %vm4256_vm5, %v4253_v3, %v4255_v61  ;;  %6065 = vmatmul.mubr.msk.bf16.vlgmr.msra.gmra.mxu0 %vm1111_vm12, %v6672_v56  ;;  %4277 = vmatprep.subr.bf16.mxu1 %v4255_v61 }
 0x871   : > { %4278 = vmatpush1.bf16.msra.mxu1 %v4257_v58  ;;  %4361 = vmatprep.mubr.bf16.mxu0 %v7109_v32 }
 0x872   : > { %4506 = vmatprep.subr.bf16.mxu1 %v7109_v32 }
 0x873   : > { %v4321_v1 = vpop.permute.xlu1 %4320  ;;  %v4319_v57 = vpop.permute.xlu0 %4318 }
 0x874   : > { %v4323_v2 = vsel %vm4322_vm6, %v4319_v57, %v4321_v1  ;;  %6069 = vmatmul.mubr.msk.bf16.vlgmr.msra.gmra.mxu1 %vm1111_vm12, %v6673_v62  ;;  %4343 = vmatprep.subr.bf16.mxu0 %v4321_v1 }
 0x875   : > { %4344 = vmatpush1.bf16.msra.mxu0 %v4323_v2 }
 0x876   : > { %6279 = vmatprep.subr.bf16.mxu0 %v8131_v55 }
 0x878   : > { %6073 = vmatmul.mubr.msk.bf16.vlgmr.msra.gmra.mxu0 %vm1111_vm12, %v6674_v4  ;;  %vm4499_vm12 = vcmask 1046528  }
 0x880   : > { %v2714_v63 = vpop.permute.xlu0 %2713  ;;  %v2719_v61 = vpop.permute.xlu1 %2718 }
 0x8d8   : > { %v2782_v5 = vpop.f32.mrf.mxu0 }
 0x8d9   : > { %v2791_v53 = vadd.f32 %v2782_v5, %v2714_v63 }
 0x8da   : > { %v2784_v6 = vpop.f32.mrf.mxu0 }
 0x8db   : > { %v2792_v56 = vadd.f32 %v2784_v6, %v2714_v63 }
 0x8dc   : > { %v2786_v14 = vpop.f32.mrf.mxu0  ;;  %v2847_v60 = vpop.f32.mrf.mxu1 }
 0x8dd   : > { %v2856_v62 = vadd.f32 %v2847_v60, %v2791_v53  ;;  %v2793_v4 = vadd.f32 %v2786_v14, %v2719_v61 }
 0x8de   : > { %v2788_v59 = vpop.f32.mrf.mxu0  ;;  %v2849_v7 = vpop.f32.mrf.mxu1 }
 0x8df   : > { %v2857_v1 = vadd.f32 %v2849_v7, %v2792_v56  ;;  %v2794_v55 = vadd.f32 %v2788_v59, %v2719_v61 }
 0x8e0   : > { %v2851_v8 = vpop.f32.mrf.mxu1  ;;  %v2913_v10 = vpop.f32.mrf.mxu0 }
 0x8e1   : > { %v2922_v0 = vadd.f32 %v2913_v10, %v2856_v62  ;;  %v2858_v5 = vadd.f32 %v2851_v8, %v2793_v4 }
 0x8e2   : > { %v2853_v11 = vpop.f32.mrf.mxu1  ;;  %v2915_v12 = vpop.f32.mrf.mxu0 }
 0x8e3   : > { %v2923_v32 = vadd.f32 %v2915_v12, %v2857_v1  ;;  %v2859_v6 = vadd.f32 %v2853_v11, %v2794_v55 }
 0x8e4   : > { %v2917_v13 = vpop.f32.mrf.mxu0  ;;  %v2979_v9 = vpop.f32.mrf.mxu1 }
 0x8e5   : > { %v2988_v63 = vadd.f32 %v2979_v9, %v2922_v0  ;;  %v2924_v7 = vadd.f32 %v2917_v13, %v2858_v5 }
 0x8e6   : > { %v2919_v15 = vpop.f32.mrf.mxu0  ;;  %v2981_v16 = vpop.f32.mrf.mxu1 }
 0x8e7   : > { %v2925_v53 = vadd.f32 %v2919_v15, %v2859_v6 }
 0x8e8   : > { %v7628_v19 = vpop.f32.mrf.mxu1  ;;  %v3045_v27 = vpop.f32.mrf.mxu0 }
 0x8e9   : > { %v3054_v56 = vadd.f32 %v3045_v27, %v2988_v63  ;;  %v2990_v10 = vadd.f32 %v7628_v19, %v2924_v7 }
 0x8ea   : > { %v7630_v17 = vpop.f32.mrf.mxu1  ;;  %v3047_v30 = vpop.f32.mrf.mxu0 }
 0x8eb   : > { %v2991_v12 = vadd.f32 %v7630_v17, %v2925_v53 }
 0x8ec   : > { %v7632_v20 = vpop.f32.mrf.mxu0  ;;  %v3110_v18 = vpop.f32.mrf.mxu1 }
 0x8ed   : > { %v3119_v8 = vadd.f32 %v3110_v18, %v3054_v56  ;;  %v3056_v11 = vadd.f32 %v7632_v20, %v2990_v10 }
 0x8ee   : > { %v7634_v44 = vpop.f32.mrf.mxu0  ;;  %v3112_v21 = vpop.f32.mrf.mxu1 }
 0x8ef   : > { %v3057_v13 = vadd.f32 %v7634_v44, %v2991_v12 }
 0x8f0   : > { %v7636_v22 = vpop.f32.mrf.mxu1  ;;  %v7638_v23 = vpop.f32.mrf.mxu0 }
 0x8f1   : > { %v3184_v9 = vadd.f32 %v7638_v23, %v3119_v8 }
 0x8f2   : > { %v7640_v24 = vpop.f32.mrf.mxu1  ;;  %v3177_v25 = vpop.f32.mrf.mxu0 }
 0x8f3   : > { %v3122_v19 = vadd.f32 %v7640_v24, %v3057_v13 }
 0x8f4   : > { %v7642_v26 = vpop.f32.mrf.mxu0  ;;  %v7644_v34 = vpop.f32.mrf.mxu1 }
 0x8f5   : > { %v3250_v17 = vadd.f32 %v7644_v34, %v3184_v9 }
 0x8f6   : > { %v7646_v28 = vpop.f32.mrf.mxu0  ;;  %v7648_v29 = vpop.f32.mrf.mxu1 }
 0x8f7   : > { %v3187_v20 = vadd.f32 %v7646_v28, %v3122_v19 }
 0x8f8   : > { %v7650_v35 = vpop.f32.mrf.mxu1  ;;  %v7652_v36 = vpop.f32.mrf.mxu0 }
 0x8f9   : > { %v3316_v44 = vadd.f32 %v7652_v36, %v3250_v17 }
 0x8fa   : > { %v7654_v37 = vpop.f32.mrf.mxu1  ;;  %v7656_v38 = vpop.f32.mrf.mxu0 }
 0x8fb   : > { %v3253_v24 = vadd.f32 %v7654_v37, %v3187_v20 }
 0x8fc   : > { %v7658_v39 = vpop.f32.mrf.mxu0  ;;  %v7660_v40 = vpop.f32.mrf.mxu1 }
 0x8fd   : > { %v3382_v34 = vadd.f32 %v7660_v40, %v3316_v44 }
 0x8fe   : > { %v7662_v31 = vpop.f32.mrf.mxu0  ;;  %v7664_v33 = vpop.f32.mrf.mxu1 }
 0x8ff   : > { %v3319_v28 = vadd.f32 %v7662_v31, %v3253_v24 }
 0x900   : > { %v7666_v41 = vpop.f32.mrf.mxu1  ;;  %v7668_v42 = vpop.f32.mrf.mxu0 }
 0x901   : > { %v3448_v36 = vadd.f32 %v7668_v42, %v3382_v34 }
 0x902   : > { %v7670_v45 = vpop.f32.mrf.mxu1  ;;  %v7672_v46 = vpop.f32.mrf.mxu0 }
 0x903   : > { %v3385_v37 = vadd.f32 %v7670_v45, %v3319_v28 }
 0x904   : > { %v7674_v43 = vpop.f32.mrf.mxu0  ;;  %v7676_v47 = vpop.f32.mrf.mxu1 }
 0x905   : > { %v3514_v40 = vadd.f32 %v7676_v47, %v3448_v36 }
 0x906   : > { %v7678_v48 = vpop.f32.mrf.mxu0  ;;  %v7680_v49 = vpop.f32.mrf.mxu1 }
 0x907   : > { %v3451_v31 = vadd.f32 %v7678_v48, %v3385_v37 }
 0x908   : > { %v7682_v51 = vpop.f32.mrf.mxu1  ;;  %v7684_v52 = vpop.f32.mrf.mxu0 }
 0x909   : > { %8157 = vst [vmem:[#allocation10_spill] sm:$0xff] %v7682_v51  ;;  %v3580_v42 = vadd.f32 %v7684_v52, %v3514_v40 }
 0x90a   : > { %v7686_v54 = vpop.f32.mrf.mxu1  ;;  %v7688_v50 = vpop.f32.mrf.mxu0 }
 0x90b   : > { %8158 = vst [vmem:[#allocation11_spill] sm:$0xff] %v7686_v54  ;;  %8159 = vst [vmem:[#allocation12_spill] sm:$0xff] %v7688_v50 }
 0x90c   : > { %v7690_v3 = vpop.f32.mrf.mxu0  ;;  %v7692_v58 = vpop.f32.mrf.mxu1 }
 0x90d   : > { %8160 = vst [vmem:[#allocation13_spill] sm:$0xff] %v7690_v3  ;;  %v2989_v3 = vadd.f32 %v2981_v16, %v2923_v32  ;;  %v3646_v47 = vadd.f32 %v7692_v58, %v3580_v42 }
 0x90e   : > { %v7694_v57 = vpop.f32.mrf.mxu0  ;;  %v7696_v2 = vpop.f32.mrf.mxu1 }
 0x90f   : > { %8161 = vst [vmem:[#allocation14_spill] sm:$0xff] %v7694_v57  ;;  %v3055_v57 = vadd.f32 %v3047_v30, %v2989_v3  ;;  %v3121_v30 = vadd.f32 %v7636_v22, %v3056_v11 }
 0x910   : > { %v7698_v54 = vpop.f32.mrf.mxu1  ;;  %v7700_v51 = vpop.f32.mrf.mxu0  ;;  %v8163_v10 = vld [vmem:[#allocation10_spill] sm:$0xff] }
 0x911   : > { %v3120_v55 = vadd.f32 %v3112_v21, %v3055_v57  ;;  %v3186_v3 = vadd.f32 %v7642_v26, %v3121_v30  ;;  %v3712_v52 = vadd.f32 %v7700_v51, %v3646_v47 }
 0x912   : > { %v7702_v50 = vpop.f32.mrf.mxu1  ;;  %v7704_v60 = vpop.f32.mrf.mxu0  ;;  %v8162_v7 = vld [vmem:[#allocation12_spill] sm:$0xff]  ;;  %v8164_v12 = vld [vmem:[#allocation11_spill] sm:$0xff] }
 0x913   : > { %v3185_v15 = vadd.f32 %v3177_v25, %v3120_v55  ;;  %v3252_v22 = vadd.f32 %v7650_v35, %v3186_v3  ;;  %v3517_v45 = vadd.f32 %v8164_v12, %v3451_v31 }
 0x914   : > { %v7706_v14 = vpop.f32.mrf.mxu0  ;;  %v7708_v59 = vpop.f32.mrf.mxu1  ;;  %v8165_v11 = vld [vmem:[#allocation13_spill] sm:$0xff] }
 0x915   : > { %v3251_v18 = vadd.f32 %v7648_v29, %v3185_v15  ;;  %v3318_v26 = vadd.f32 %v7658_v39, %v3252_v22  ;;  %v3778_v58 = vadd.f32 %v7708_v59, %v3712_v52 }
 0x916   : > { %v7712_v0 = vpop.f32.mrf.mxu0  ;;  %v3771_v32 = vpop.f32.mrf.mxu1  ;;  %v8166_v13 = vld [vmem:[#allocation14_spill] sm:$0xff] }
 0x917   : > { %v3317_v23 = vadd.f32 %v7656_v38, %v3251_v18  ;;  %v3384_v35 = vadd.f32 %v7666_v41, %v3318_v26  ;;  %v3583_v48 = vadd.f32 %v8166_v13, %v3517_v45 }
 0x918   : > { %v3773_v16 = vpop.f32.mrf.mxu1  ;;  %v3835_v27 = vpop.f32.mrf.mxu0 }
 0x919   : > { %v3383_v29 = vadd.f32 %v7664_v33, %v3317_v23  ;;  %v3450_v39 = vadd.f32 %v7674_v43, %v3384_v35  ;;  %v3649_v17 = vadd.f32 %v7702_v50, %v3583_v48  ;;  %v3844_v23 = vadd.f32 %v3835_v27, %v3778_v58  ;;  %v6676_v58 = vld [vmem:[%s8108_s7 + $0x30] sm:$0xff]  }
 0x91a   : > { %v3775_v21 = vpop.f32.mrf.mxu1  ;;  %v3837_v61 = vpop.f32.mrf.mxu0 }
 0x91b   : > { %v3449_v38 = vadd.f32 %v7672_v46, %v3383_v29  ;;  %v3516_v41 = vadd.f32 %v8163_v10, %v3450_v39  ;;  %v3715_v44 = vadd.f32 %v7712_v0, %v3649_v17 }
 0x91c   : > { %v3839_v25 = vpop.f32.mrf.mxu0  ;;  %v3901_v62 = vpop.f32.mrf.mxu1 }
 0x91d   : > { %v3515_v33 = vadd.f32 %v7680_v49, %v3449_v38  ;;  %v3582_v43 = vadd.f32 %v8165_v11, %v3516_v41  ;;  %v3781_v34 = vadd.f32 %v3775_v21, %v3715_v44  ;;  %v3910_v29 = vadd.f32 %v3901_v62, %v3844_v23  ;;  %v6679_v44 = vld [vmem:[%s8108_s7 + $0x18] sm:$0xff]   ;;  %v6680_v23 = vld [vmem:[%s8108_s7 + $0x10] sm:$0xff]  }
 0x91e   : > { %v3841_v1 = vpop.f32.mrf.mxu0  ;;  %v3903_v57 = vpop.f32.mrf.mxu1 }
 0x91f   : > { %v3581_v46 = vadd.f32 %v8162_v7, %v3515_v33  ;;  %v3648_v19 = vadd.f32 %v7698_v54, %v3582_v43  ;;  %v3847_v36 = vadd.f32 %v3841_v1, %v3781_v34 }
 0x920   : > { %v3905_v4 = vpop.f32.mrf.mxu1  ;;  %v3967_v5 = vpop.f32.mrf.mxu0 }
 0x921   : > { %v3647_v49 = vadd.f32 %v7696_v2, %v3581_v46  ;;  %v3714_v20 = vadd.f32 %v7706_v14, %v3648_v19  ;;  %v3976_v59 = vadd.f32 %v3967_v5, %v3910_v29 }
 0x922   : > { %v3907_v6 = vpop.f32.mrf.mxu1  ;;  %v3969_v63 = vpop.f32.mrf.mxu0 }
 0x923   : > { %v3713_v9 = vadd.f32 %v7704_v60, %v3647_v49  ;;  %v3780_v60 = vadd.f32 %v3773_v16, %v3714_v20  ;;  %v3913_v14 = vadd.f32 %v3907_v6, %v3847_v36  ;;  %v6678_v20 = vld [vmem:[%s8108_s7 + $0x20] sm:$0xff]  }
 0x924   : > { %v3971_v53 = vpop.f32.mrf.mxu0  ;;  %v4033_v56 = vpop.f32.mrf.mxu1 }
 0x925   : > { %v3779_v18 = vadd.f32 %v3771_v32, %v3713_v9  ;;  %v3846_v50 = vadd.f32 %v3839_v25, %v3780_v60  ;;  %v4042_v40 = vadd.f32 %v4033_v56, %v3976_v59  ;;  %v8168_v60 = vmov 65535  }
 0x926   : > { %v3973_v8 = vpop.f32.mrf.mxu0  ;;  %v4035_v55 = vpop.f32.mrf.mxu1  ;;  %v4501_v34 = vsel %vm4499_vm12, 4294967295, %v8168_v60  ;;  %v6703_v60 = vld [vmem:[%s8109_s8 + $0xc0] sm:$0xff]  }
 0x927   : > { %v3845_v22 = vadd.f32 %v3837_v61, %v3779_v18  ;;  %v3912_v37 = vadd.f32 %v3905_v4, %v3846_v50  ;;  %v3979_v39 = vadd.f32 %v3973_v8, %v3913_v14  ;;  %v8167_v18 = vld [vmem:[#allocation9_spill] sm:$0xff] }
 0x928   : > { %v4037_v15 = vpop.f32.mrf.mxu1  ;;  %v4099_v30 = vpop.f32.mrf.mxu0 }
 0x929   : > { %v3911_v26 = vadd.f32 %v3903_v57, %v3845_v22  ;;  %v3978_v33 = vadd.f32 %v3971_v53, %v3912_v37  ;;  %v4108_v16 = vadd.f32 %v4099_v30, %v4042_v40  ;;  %v6681_v22 = vld [vmem:[%s8108_s7 + $0x8] sm:$0xff]  }
 0x92a   : > { %v4039_v2 = vpop.f32.mrf.mxu1  ;;  %v4101_v3 = vpop.f32.mrf.mxu0 }
 0x92b   : > { %v3977_v32 = vadd.f32 %v3969_v63, %v3911_v26  ;;  %v4044_v31 = vadd.f32 %v4037_v15, %v3978_v33  ;;  %v4045_v42 = vadd.f32 %v4039_v2, %v3979_v39  ;;  %v6675_v15 = vld [vmem:[%s8108_s7 + $0x38] sm:$0xff]   ;;  %v4502_v26 = vsel %vm4500_vm7, %v4501_v34, 0 }
 0x92c   : > { %v4103_v51 = vpop.f32.mrf.mxu0  ;;  %v4165_v24 = vpop.f32.mrf.mxu1  ;;  %4507 = vmatpush1.bf16.msra.mxu1 %v6675_v15  ;;  %v6704_v34 = vld [vmem:[%s8109_s8 + $0x78] sm:$0xff]  }
 0x92d   : > { %v4043_v0 = vadd.f32 %v4035_v55, %v3977_v32  ;;  %v4174_v25 = vadd.f32 %v4165_v24, %v4108_v16  ;;  %v4110_v7 = vadd.f32 %v4103_v51, %v4044_v31  ;;  %4508 = vmatprep.subr.bf16.mxu1 %v8167_v18  ;;  %v6682_v51 = vld [vmem:[%s8108_s7] sm:$0xff]  }
 0x92e   : > { %v4105_v54 = vpop.f32.mrf.mxu0  ;;  %v4167_v28 = vpop.f32.mrf.mxu1  ;;  %v6683_v24 = vld [vmem:[%s8108_s7 + $0x40] sm:$0xff]  }
 0x92f   : > { %v4109_v21 = vadd.f32 %v4101_v3, %v4043_v0  ;;  %v4111_v46 = vadd.f32 %v4105_v54, %v4045_v42  ;;  %v6677_v3 = vld [vmem:[%s8108_s7 + $0x28] sm:$0xff]   ;;  %v4504_v50 = vand.u32 %v6683_v24, %v4502_v26  ;;  %v6702_v24 = vld [vmem:[%s8109_s8 + $0x50] sm:$0xff]  }
 0x930   : > { %v4169_v38 = vpop.f32.mrf.mxu1  ;;  %v4231_v35 = vpop.f32.mrf.mxu0  ;;  %4509 = vmatpush1.bf16.msra.mxu1 %v6676_v58  ;;  %v6684_v0 = vld [vmem:[%s8109_s8 + $0x8] sm:$0xff]  }
 0x931   : > { %v4175_v1 = vadd.f32 %v4167_v28, %v4109_v21  ;;  %v4240_v4 = vadd.f32 %v4231_v35, %v4174_v25  ;;  %v4176_v41 = vadd.f32 %v4169_v38, %v4110_v7  ;;  %4510 = vmatprep.subr.bf16.mxu1 %v8167_v18  ;;  %v8169_v35 = vmov 0.0   ;;  %6280 = vmatpush3.bf16.msra.mxu0 %v6684_v0  ;;  %v6705_v26 = vld [vmem:[%s8109_s8 + $0xe8] sm:$0xff]   ;;  %v6712_v0 = vld [vmem:[%s8109_s8 + $0xd8] sm:$0xff]  }
 0x932   : > { %v4171_v27 = vpop.f32.mrf.mxu1  ;;  %v4233_v61 = vpop.f32.mrf.mxu0  ;;  %6281 = vmatprep.subr.bf16.mxu0 %v8169_v35 }
 0x933   : > { %v4241_v6 = vadd.f32 %v4233_v61, %v4175_v1  ;;  %v4177_v12 = vadd.f32 %v4171_v27, %v4111_v46 }
 0x934   : > { %v4235_v62 = vpop.f32.mrf.mxu0  ;;  %v4297_v57 = vpop.f32.mrf.mxu1  ;;  %4511 = vmatpush1.bf16.msra.mxu1 %v6677_v3  ;;  %v6698_v3 = vld [vmem:[%s8109_s8 + $0x30] sm:$0xff]  }
 0x935   : > { %v4306_v53 = vadd.f32 %v4297_v57, %v4240_v4  ;;  %v4242_v8 = vadd.f32 %v4235_v62, %v4176_v41  ;;  %4512 = vmatprep.subr.bf16.mxu1 %v8167_v18  ;;  %v6687_v41 = vld [vmem:[%s8109_s8 + $0x40] sm:$0xff]  }
 0x936   : > { %v4237_v5 = vpop.f32.mrf.mxu0  ;;  %v4299_v63 = vpop.f32.mrf.mxu1 }
 0x937   : > { %v4307_v45 = vadd.f32 %v4299_v63, %v4241_v6  ;;  %v4243_v55 = vadd.f32 %v4237_v5, %v4177_v12  ;;  %v6685_v6 = vld [vmem:[%s8109_s8 + $0x48] sm:$0xff]  }
 0x938   : > { %v4301_v56 = vpop.f32.mrf.mxu1  ;;  %v4363_v10 = vpop.f32.mrf.mxu0  ;;  %4513 = vmatpush1.bf16.msra.mxu1 %v6678_v20  ;;  %v6699_v20 = vld [vmem:[%s8109_s8 + $0xa0] sm:$0xff]  }
 0x939   : > { %v4372_v11 = vadd.f32 %v4363_v10, %v4306_v53  ;;  %v4308_v48 = vadd.f32 %v4301_v56, %v4242_v8  ;;  %4514 = vmatprep.subr.bf16.mxu1 %v8167_v18  ;;  %v6686_v10 = vld [vmem:[%s8109_s8] sm:$0xff]   ;;  %v6688_v53 = vld [vmem:[%s8109_s8 + $0x18] sm:$0xff]  }
 0x93a   : > { %v4303_v47 = vpop.f32.mrf.mxu1  ;;  %v4365_v49 = vpop.f32.mrf.mxu0  ;;  %6282 = vmatpush3.bf16.msra.mxu0 %v6686_v10  ;;  %v6727_v10 = vld [vmem:[%s8113_s12 + $0x10] sm:$0xff]  }
 0x93b   : > { %v4373_v43 = vadd.f32 %v4365_v49, %v4307_v45  ;;  %v4309_v52 = vadd.f32 %v4303_v47, %v4243_v55  ;;  %6287 = vmatprep.subr.bf16.mxu0 %v8169_v35  ;;  %v6689_v49 = vld [vmem:[%s8109_s8 + $0x68] sm:$0xff]  }
 0x93c   : > { %v4367_v13 = vpop.f32.mrf.mxu0  ;;  %4515 = vmatpush1.bf16.msra.mxu1 %v6679_v44  ;;  %v6700_v44 = vld [vmem:[%s8109_s8 + $0x58] sm:$0xff]  }
 0x93d   : > { %v6551_v9 = vpack.i.bf16 %v4373_v43, %v4372_v11  ;;  %v4374_v19 = vadd.f32 %v4367_v13, %v4308_v48  ;;  %4516 = vmatprep.subr.bf16.mxu1 %v8167_v18  ;;  %v6691_v13 = vld [vmem:[%s8109_s8 + $0x60] sm:$0xff]   ;;  %v6692_v48 = vld [vmem:[%s8109_s8 + $0x28] sm:$0xff]  }
 0x93e   : > { %v4369_v30 = vpop.f32.mrf.mxu0 }
 0x93f   : > { %v4375_v17 = vadd.f32 %v4369_v30, %v4309_v52  ;;  %6552 = vrot.lane.b32.xlu0 %v6551_v9, %s8152_s18  ;;  %v6693_v9 = vld [vmem:[%s8109_s8 + $0x88] sm:$0xff]   ;;  %v6694_v30 = vld [vmem:[%s8109_s8 + $0x20] sm:$0xff]  }
 0x940   : > { %4517 = vmatpush1.bf16.msra.mxu1 %v6680_v23 }
 0x941   : > { %v6556_v2 = vpack.i.bf16 %v4375_v17, %v4374_v19  ;;  %4518 = vmatprep.subr.bf16.mxu1 %v8167_v18 }
 0x943   : > { %6557 = vrot.lane.b32.xlu1 %v6556_v2, %s8152_s18  ;;  %s6208_s18 = sshll.u32 %s6940_s17, 4 }
 0x944   : > { %4519 = vmatpush1.bf16.msra.mxu1 %v6681_v22  ;;  %v6701_v22 = vld [vmem:[%s8109_s8 + $0xc8] sm:$0xff]   ;;  %s8060_s27 = scalar_lea.hbm %s8115_s14, %s6208_s18 }
 0x945   : > { %4520 = vmatprep.subr.bf16.mxu1 %v8167_v18 }
 0x948   : > { %4521 = vmatpush1.bf16.msra.mxu1 %v6682_v51 }
 0x949   : > { %4536 = vmatprep.subr.bf16.mxu1 %v8167_v18  ;;  %v6697_v18 = vld [vmem:[%s8109_s8 + $0xa8] sm:$0xff]  }
 0x94c   : > { %4537 = vmatpush2.bf16.msra.mxu1 %v4504_v50  ;;  %v6707_v50 = vld [vmem:[%s8109_s8 + $0xe0] sm:$0xff]  }
 0x94d   : > { %6311 = vmatprep.subr.bf16.mxu1 %v8169_v35 }
 0x9b1   : > { %v6553_v29 = vpop.permute.xlu0 %6552 }
 0x9b2   : > { %v6555_v54 = vunpack.i.h.bf16 %v6553_v29  ;;  %v6554_v28 = vunpack.i.l.bf16 %v6553_v29 }
 0x9b4   : > { %v4396_v36 = vmax.f32 %v4373_v43, %v6555_v54  ;;  %v4389_v59 = vsel %vm1363_vm15, %v6554_v28, %v6555_v54  ;;  %v6706_v28 = vld [vmem:[%s8109_s8 + $0x70] sm:$0xff]  }
 0x9b5   : > { %v4395_v32 = vmax.f32 %v4372_v11, %v4389_v59  ;;  %v6558_v38 = vpop.permute.xlu1 %6557  ;;  %v6690_v11 = vld [vmem:[%s8109_s8 + $0x10] sm:$0xff]  }
 0x9b6   : > { %v6560_v37 = vunpack.i.h.bf16 %v6558_v38  ;;  %v6559_v14 = vunpack.i.l.bf16 %v6558_v38  ;;  %v6709_v38 = vld [vmem:[%s8109_s8 + $0x90] sm:$0xff]  }
 0x9b7   : > { %v6561_v40 = vpack.i.bf16 %v4396_v36, %v4395_v32 }
 0x9b8   : > { %v4398_v27 = vmax.f32 %v4375_v17, %v6560_v37  ;;  %v4390_v61 = vsel %vm1363_vm15, %v6559_v14, %v6560_v37  ;;  %vm4495_vm15 = vcmask 121856   ;;  %v6696_v17 = vld [vmem:[%s8109_s8 + $0x38] sm:$0xff]  }
 0x9b9   : > { %v4397_v33 = vmax.f32 %v4374_v19, %v4390_v61  ;;  %6562 = vrot.lane.b32.xlu0 %v6561_v40, %s8170_s26  ;;  %v6695_v19 = vld [vmem:[%s8109_s8 + $0x80] sm:$0xff]   ;;  %v6710_v37 = vld [vmem:[%s8109_s8 + $0xb8] sm:$0xff]   ;;  %v6711_v40 = vld [vmem:[%s8109_s8 + $0xb0] sm:$0xff]  }
 0x9ba   : > { %v6713_v61 = vld [vmem:[%s8109_s8 + $0xd0] sm:$0xff]  }
 0x9bb   : > { %v6566_v39 = vpack.i.bf16 %v4398_v27, %v4397_v33 }
 0x9bd   : > { %6567 = vrot.lane.b32.xlu1 %v6566_v39, %s8170_s26  ;;  %s459_s26 = scalar_lea.vmem [#allocation4], %s458_s20 }
 0x9be   : > { %s5765_s22 = sshll.u32 %s459_s26, 4  ;;  %s8062_s22 = int_to_ptr.vmem [resolvable:$true] %s5765_s22 }
 0x9bf   : > { %s6735_s17 = scalar_lea.vmem %s8062_s22, 16  ;;  %p6742_p0 = scmp.lt.s32.totalorder %s8062_s22, %s6740_s0 }
 0x9c0   : > { %p6736_p11 = scmp.ne.s32.totalorder %s8062_s22, %s6735_s17  ;;  %p6743_p1 = scmp.lt.s32.totalorder %s6741_s25, %s6735_s17 }
 0x9c2   : > { %p6737_p12 = pnand %p6736_p11, %p6957_p5  ;;  %p6744_p2 = por %p6743_p1, %p6742_p0 }
 0x9c4   : > { %p6738_p13 = pneg %p6737_p12 }
 0x9c6   : > { %p6745_p3 = pnand %p6744_p2, %p6738_p13 }
 0xa2b   : > { %v6563_v16 = vpop.permute.xlu0 %6562 }
 0xa2c   : > { %v6565_v21 = vunpack.i.h.bf16 %v6563_v16  ;;  %v6564_v62 = vunpack.i.l.bf16 %v6563_v16  ;;  %v6715_v16 = vld [vmem:[%s8109_s8 + $0xf0] sm:$0xff]  }
 0xa2e   : > { %v4412_v31 = vsel %vm1195_vm13, %v6564_v62, %v6565_v21  ;;  %v4419_v1 = vmax.f32 %v4396_v36, %v6565_v21  ;;  %v6708_v36 = vld [vmem:[%s8109_s8 + $0x98] sm:$0xff]  }
 0xa2f   : > { %v6568_v57 = vpop.permute.xlu1 %6567  ;;  %v4418_v7 = vmax.f32 %v4395_v32, %v4412_v31  ;;  %v6716_v62 = vld [vmem:[%s8111_s10 + $0x38] ss:$0 sps:$4 sm:$0xff]   ;;  %v6717_v31 = vld [vmem:[%s8111_s10 + $0x30] sm:$0xff]  }
 0xa30   : > { %v6570_v42 = vunpack.i.h.bf16 %v6568_v57  ;;  %v6569_v25 = vunpack.i.l.bf16 %v6568_v57  ;;  %v5613_v57 = vsel %vm5611_vm9, %v6716_v62, 0 }
 0xa32   : > { %v4421_v5 = vmax.f32 %v4398_v27, %v6570_v42  ;;  %v4413_v63 = vsel %vm1195_vm13, %v6569_v25, %v6570_v42  ;;  %vm6842_vm13 = vmmov 0   ;;  %v6718_v42 = vld [vmem:[%s8111_s10 + $0x28] sm:$0xff]   ;;  %v6719_v25 = vld [vmem:[%s8111_s10 + $0x20] sm:$0xff]  }
 0xa33   : > { %v4420_v46 = vmax.f32 %v4397_v33, %v4413_v63  ;;  %6283 = vmatprep.mubr.msk.bf16.mxu0 %vm6842_vm13, %v8169_v35  ;;  %v6714_v33 = vld [vmem:[%s8109_s8 + $0xf8] sm:$0xff]   ;;  %v6722_v63 = vld [vmem:[%s8111_s10 + $0x8] sm:$0xff]  }
 0xa34   : > { %v4423_v4 = vpack.c.bf16 %v4421_v5, %v4419_v1  ;;  %v6720_v1 = vld [vmem:[%s8111_s10 + $0x18] sm:$0xff]   ;;  %v6721_v5 = vld [vmem:[%s8111_s10 + $0x10] sm:$0xff]  }
 0xa35   : > { %v4422_v56 = vpack.c.bf16 %v4420_v46, %v4418_v7  ;;  %v6723_v7 = vld [vmem:[%s8111_s10] sm:$0xff]   ;;  %v6724_v46 = vld [vmem:[%s8113_s12 + $0x28] ss:$0 sps:$4 sm:$0x33]  }
 0xa36   : > { %6083 = vmatprep.mubr.msk.bf16.mxu1 %vm4495_vm15, %v4423_v4  ;;  %v5708_v4 = vsel %vm5706_vm10, %v6724_v46, 0 }
 0xa37   : > { %4539 = vmatmul.mubr.bf16.vlgmr.msra.gmra.mxu1 %v4422_v56  ;;  %v6726_v56 = vld [vmem:[%s8113_s12 + $0x18] sm:$0xff]  }
 0xa38   : > { %6312 = vmatpush3.bf16.msra.mxu1 %v6685_v6  ;;  %6315 = vmatprep.mubr.msk.bf16.mxu1 %vm6842_vm13, %v8169_v35  ;;  %v6725_v6 = vld [vmem:[%s8113_s12 + $0x20] sm:$0xff]  }
 0xa39   : > { %6313 = vmatprep.subr.bf16.mxu1 %v8169_v35 }
 0xa3c   : > { %6314 = vmatpush3.bf16.msra.mxu1 %v6687_v41 }
 0xa3d   : > { %6327 = vmatprep.subr.bf16.mxu1 %v8169_v35 }
 0xaf7   : > { %v4540_v12 = vpop.f32.mrf.mxu1 }
 0xaf8   : > { %v4548_v45 = vpack.c.bf16 %v4540_v12, %v4540_v12 }
 0xaf9   : > { %v4542_v47 = vpop.f32.mrf.mxu1 }
 0xafa   : > { %6284 = vmatmul.mubr.msk.bf16.vlgmr.msra.gmra.mxu0 %vm4565_vm8, %v4548_v45  ;;  %v4803_v8 = vrot.slane %v4548_v45, 2  ;;  %v7842_v52 = vshrl.u32 %v4548_v45, 16  ;;  %v4927_v15 = vrot.slane %v4548_v45, 3  ;;  %v4679_v58 = vrot.slane %v4548_v45, 1 }
 0xafb   : > { %v4543_v55 = vpop.f32.mrf.mxu1  ;;  %6288 = vmatpush3.bf16.msra.mxu0 %v6688_v53  ;;  %6291 = vmatprep.mubr.msk.bf16.mxu0 %vm6842_vm13, %v8169_v35 }
 0xafc   : > { %6316 = vmatmul.mubr.msk.bf16.vlgmr.msra.gmra.mxu1 %vm4565_vm8, %v4803_v8  ;;  %6289 = vmatprep.subr.bf16.mxu0 %v8169_v35  ;;  %v7871_v2 = vpack.c.bf16 %v4543_v55, %v4543_v55  ;;  %v4741_v23 = vrot.slane %v7842_v52, 1  ;;  %v4865_v29 = vrot.slane %v7842_v52, 2  ;;  %v4989_v59 = vrot.slane %v7842_v52, 3 }
 0xafd   : > { %v4545_v43 = vpop.f32.mrf.mxu1  ;;  %6328 = vmatpush3.bf16.msra.mxu1 %v6689_v49  ;;  %6331 = vmatprep.mubr.msk.bf16.mxu1 %vm6842_vm13, %v8169_v35 }
 0xafe   : > { %6329 = vmatprep.subr.bf16.mxu1 %v8169_v35  ;;  %v5177_v51 = vrot.slane %v7871_v2, 1  ;;  %v5301_v54 = vrot.slane %v7871_v2, 2  ;;  %v5425_v32 = vrot.slane %v7871_v2, 3  ;;  %v5113_v14 = vshrl.u32 %v7871_v2, 16 }
 0xaff   : > { %6290 = vmatpush3.bf16.msra.mxu0 %v6690_v11 }
 0xb00   : > { %6295 = vmatprep.subr.bf16.mxu0 %v8169_v35  ;;  %v5239_v27 = vrot.slane %v5113_v14, 1  ;;  %v5363_v39 = vrot.slane %v5113_v14, 2  ;;  %v5487_v21 = vrot.slane %v5113_v14, 3 }
 0xb01   : > { %6330 = vmatpush3.bf16.msra.mxu1 %v6691_v13 }
 0xb02   : > { %6292 = vmatmul.mubr.msk.bf16.vlgmr.msra.gmra.mxu0 %vm4565_vm8, %v7842_v52  ;;  %6343 = vmatprep.subr.bf16.mxu1 %v8169_v35 }
 0xb03   : > { %6296 = vmatpush3.bf16.msra.mxu0 %v6692_v48  ;;  %6299 = vmatprep.mubr.msk.bf16.mxu0 %vm6842_vm13, %v8169_v35 }
 0xb04   : > { %6332 = vmatmul.mubr.msk.bf16.vlgmr.msra.gmra.mxu1 %vm4565_vm8, %v4927_v15  ;;  %6297 = vmatprep.subr.bf16.mxu0 %v8169_v35 }
 0xb05   : > { %6344 = vmatpush3.bf16.msra.mxu1 %v6693_v9  ;;  %6347 = vmatprep.mubr.msk.bf16.mxu1 %vm6842_vm13, %v8169_v35 }
 0xb06   : > { %6345 = vmatprep.subr.bf16.mxu1 %v8169_v35 }
 0xb07   : > { %6298 = vmatpush3.bf16.msra.mxu0 %v6694_v30 }
 0xb08   : > { %6303 = vmatprep.subr.bf16.mxu0 %v8169_v35 }
 0xb09   : > { %6346 = vmatpush3.bf16.msra.mxu1 %v6695_v19 }
 0xb0a   : > { %6300 = vmatmul.mubr.msk.bf16.vlgmr.msra.gmra.mxu0 %vm4565_vm8, %v4679_v58  ;;  %6359 = vmatprep.subr.bf16.mxu1 %v8169_v35 }
 0xb0b   : > { %6304 = vmatpush3.bf16.msra.mxu0 %v6696_v17  ;;  %6307 = vmatprep.mubr.msk.bf16.mxu0 %vm6842_vm13, %v8169_v35 }
 0xb0c   : > { %6348 = vmatmul.mubr.msk.bf16.vlgmr.msra.gmra.mxu1 %vm4565_vm8, %v7871_v2  ;;  %6305 = vmatprep.subr.bf16.mxu0 %v8169_v35 }
 0xb0d   : > { %6360 = vmatpush3.bf16.msra.mxu1 %v6697_v18  ;;  %6363 = vmatprep.mubr.msk.bf16.mxu1 %vm6842_vm13, %v8169_v35 }
 0xb0e   : > { %6361 = vmatprep.subr.bf16.mxu1 %v8169_v35 }
 0xb0f   : > { %6306 = vmatpush3.bf16.msra.mxu0 %v6698_v3 }
 0xb10   : > { %6319 = vmatprep.subr.bf16.mxu0 %v8169_v35 }
 0xb11   : > { %6362 = vmatpush3.bf16.msra.mxu1 %v6699_v20 }
 0xb12   : > { %6308 = vmatmul.mubr.msk.bf16.vlgmr.msra.gmra.mxu0 %vm4565_vm8, %v4741_v23  ;;  %6375 = vmatprep.subr.bf16.mxu1 %v8169_v35 }
 0xb13   : > { %6320 = vmatpush3.bf16.msra.mxu0 %v6700_v44  ;;  %6323 = vmatprep.mubr.msk.bf16.mxu0 %vm6842_vm13, %v8169_v35 }
 0xb14   : > { %6364 = vmatmul.mubr.msk.bf16.vlgmr.msra.gmra.mxu1 %vm4565_vm8, %v5177_v51  ;;  %6321 = vmatprep.subr.bf16.mxu0 %v8169_v35 }
 0xb15   : > { %6376 = vmatpush3.bf16.msra.mxu1 %v6701_v22  ;;  %6379 = vmatprep.mubr.msk.bf16.mxu1 %vm6842_vm13, %v8169_v35 }
 0xb16   : > { %6377 = vmatprep.subr.bf16.mxu1 %v8169_v35 }
 0xb17   : > { %6322 = vmatpush3.bf16.msra.mxu0 %v6702_v24  ;;  %v4547_v24 = vld [vmem:[%s8110_s9] sm:$0x1] }
 0xb18   : > { %6335 = vmatprep.subr.bf16.mxu0 %v8169_v35 }
 0xb19   : > { %6378 = vmatpush3.bf16.msra.mxu1 %v6703_v60 }
 0xb1a   : > { %6324 = vmatmul.mubr.msk.bf16.vlgmr.msra.gmra.mxu0 %vm4565_vm8, %v4865_v29  ;;  %6391 = vmatprep.subr.bf16.mxu1 %v8169_v35 }
 0xb1b   : > { %6336 = vmatpush3.bf16.msra.mxu0 %v6704_v34  ;;  %6339 = vmatprep.mubr.msk.bf16.mxu0 %vm6842_vm13, %v8169_v35 }
 0xb1c   : > { %6380 = vmatmul.mubr.msk.bf16.vlgmr.msra.gmra.mxu1 %vm4565_vm8, %v5301_v54  ;;  %6337 = vmatprep.subr.bf16.mxu0 %v8169_v35 }
 0xb1d   : > { %6392 = vmatpush3.bf16.msra.mxu1 %v6705_v26  ;;  %6395 = vmatprep.mubr.msk.bf16.mxu1 %vm6842_vm13, %v8169_v35 }
 0xb1e   : > { %6393 = vmatprep.subr.bf16.mxu1 %v8169_v35 }
 0xb1f   : > { %6338 = vmatpush3.bf16.msra.mxu0 %v6706_v28 }
 0xb20   : > { %6351 = vmatprep.subr.bf16.mxu0 %v8169_v35 }
 0xb21   : > { %6394 = vmatpush3.bf16.msra.mxu1 %v6707_v50 }
 0xb22   : > { %6340 = vmatmul.mubr.msk.bf16.vlgmr.msra.gmra.mxu0 %vm4565_vm8, %v4989_v59  ;;  %6407 = vmatprep.subr.bf16.mxu1 %v8169_v35 }
 0xb23   : > { %6352 = vmatpush3.bf16.msra.mxu0 %v6708_v36  ;;  %6355 = vmatprep.mubr.msk.bf16.mxu0 %vm6842_vm13, %v8169_v35 }
 0xb24   : > { %6396 = vmatmul.mubr.msk.bf16.vlgmr.msra.gmra.mxu1 %vm4565_vm8, %v5425_v32  ;;  %6353 = vmatprep.subr.bf16.mxu0 %v8169_v35 }
 0xb25   : > { %6423 = vmatprep.mubr.msk.bf16.mxu1 %vm6842_vm13, %v8169_v35  ;;  %6408 = vmatpush3.bf16.msra.mxu1 %v5613_v57 }
 0xb26   : > { %6409 = vmatprep.subr.bf16.mxu1 %v8169_v35 }
 0xb27   : > { %6354 = vmatpush3.bf16.msra.mxu0 %v6709_v38 }
 0xb28   : > { %6367 = vmatprep.subr.bf16.mxu0 %v8169_v35 }
 0xb29   : > { %6410 = vmatpush3.bf16.msra.mxu1 %v6717_v31 }
 0xb2a   : > { %6356 = vmatmul.mubr.msk.bf16.vlgmr.msra.gmra.mxu0 %vm4565_vm8, %v5113_v14  ;;  %6411 = vmatprep.subr.bf16.mxu1 %v8169_v35 }
 0xb2b   : > { %6368 = vmatpush3.bf16.msra.mxu0 %v6710_v37  ;;  %6371 = vmatprep.mubr.msk.bf16.mxu0 %vm6842_vm13, %v8169_v35 }
 0xb2c   : > { %6369 = vmatprep.subr.bf16.mxu0 %v8169_v35 }
 0xb2d   : > { %6412 = vmatpush3.bf16.msra.mxu1 %v6718_v42 }
 0xb2e   : > { %6413 = vmatprep.subr.bf16.mxu1 %v8169_v35 }
 0xb2f   : > { %6370 = vmatpush3.bf16.msra.mxu0 %v6711_v40 }
 0xb30   : > { %6383 = vmatprep.subr.bf16.mxu0 %v8169_v35 }
 0xb31   : > { %6414 = vmatpush3.bf16.msra.mxu1 %v6719_v25 }
 0xb32   : > { %6372 = vmatmul.mubr.msk.bf16.vlgmr.msra.gmra.mxu0 %vm4565_vm8, %v5239_v27  ;;  %6415 = vmatprep.subr.bf16.mxu1 %v8169_v35 }
 0xb33   : > { %6384 = vmatpush3.bf16.msra.mxu0 %v6712_v0  ;;  %6387 = vmatprep.mubr.msk.bf16.mxu0 %vm6842_vm13, %v8169_v35 }
 0xb34   : > { %6385 = vmatprep.subr.bf16.mxu0 %v8169_v35 }
 0xb35   : > { %6416 = vmatpush3.bf16.msra.mxu1 %v6720_v1 }
 0xb36   : > { %6417 = vmatprep.subr.bf16.mxu1 %v8169_v35 }
 0xb37   : > { %6386 = vmatpush3.bf16.msra.mxu0 %v6713_v61 }
 0xb38   : > { %6399 = vmatprep.subr.bf16.mxu0 %v8169_v35 }
 0xb39   : > { %6418 = vmatpush3.bf16.msra.mxu1 %v6721_v5 }
 0xb3a   : > { %6388 = vmatmul.mubr.msk.bf16.vlgmr.msra.gmra.mxu0 %vm4565_vm8, %v5363_v39  ;;  %6419 = vmatprep.subr.bf16.mxu1 %v8169_v35 }
 0xb3b   : > { %6400 = vmatpush3.bf16.msra.mxu0 %v6714_v33  ;;  %6403 = vmatprep.mubr.msk.bf16.mxu0 %vm6842_vm13, %v8169_v35 }
 0xb3c   : > { %6401 = vmatprep.subr.bf16.mxu0 %v8169_v35 }
 0xb3d   : > { %6420 = vmatpush3.bf16.msra.mxu1 %v6722_v63 }
 0xb3e   : > { %6421 = vmatprep.subr.bf16.mxu1 %v8169_v35 }
 0xb3f   : > { %6402 = vmatpush3.bf16.msra.mxu0 %v6715_v16 }
 0xb40   : > { %6427 = vmatprep.subr.bf16.mxu0 %v8169_v35 }
 0xb41   : > { %6422 = vmatpush3.bf16.msra.mxu1 %v6723_v7 }
 0xb42   : > { %6404 = vmatmul.mubr.msk.bf16.vlgmr.msra.gmra.mxu0 %vm4565_vm8, %v5487_v21 }
 0xb43   : > { %6439 = vmatprep.mubr.msk.bf16.mxu0 %vm6842_vm13, %v8169_v35  ;;  %6428 = vmatpush3.bf16.msra.mxu0 %v5708_v4 }
 0xb44   : > { %6429 = vmatprep.subr.bf16.mxu0 %v8169_v35 }
 0xb47   : > { %6430 = vmatpush3.bf16.msra.mxu0 %v6725_v6 }
 0xb48   : > { %6431 = vmatprep.subr.bf16.mxu0 %v8169_v35 }
 0xb4b   : > { %6432 = vmatpush3.bf16.msra.mxu0 %v6726_v56 }
 0xb4c   : > { %6433 = vmatprep.subr.bf16.mxu0 %v8169_v35 }
 0xb4f   : > { %6434 = vmatpush3.bf16.msra.mxu0 %v6727_v10 }
 0xb50   : > { %6435 = vmatprep.subr.bf16.mxu0 %v8169_v35 }
 0xbba   : > { %v4603_v41 = vpop.f32.mrf.mxu0 }
 0xbbb   : > { %v4609_v54 = vadd.f32 %v4603_v41, %v4547_v24 }
 0xbbc   : > { %v6285_v12 = vpop.f32.mrf.mxu0  ;;  %v4853_v53 = vpop.f32.mrf.mxu1 }
 0xbbe   : > { %v4606_v45 = vpop.f32.mrf.mxu0  ;;  %v6317_v47 = vpop.f32.mrf.mxu1 }
 0xbc0   : > { %v6286_v49 = vpop.f32.mrf.mxu0  ;;  %v4856_v8 = vpop.f32.mrf.mxu1 }
 0xbc2   : > { %v4666_v55 = vpop.f32.mrf.mxu0  ;;  %v6318_v11 = vpop.f32.mrf.mxu1 }
 0xbc3   : > { %v4672_v36 = vadd.f32 %v4666_v55, %v4609_v54 }
 0xbc4   : > { %v6293_v43 = vpop.f32.mrf.mxu0  ;;  %v4977_v13 = vpop.f32.mrf.mxu1 }
 0xbc6   : > { %v4669_v48 = vpop.f32.mrf.mxu0  ;;  %v6333_v52 = vpop.f32.mrf.mxu1 }
 0xbc8   : > { %v6294_v9 = vpop.f32.mrf.mxu0  ;;  %v4980_v15 = vpop.f32.mrf.mxu1 }
 0xbca   : > { %v4729_v30 = vpop.f32.mrf.mxu0  ;;  %v6334_v19 = vpop.f32.mrf.mxu1 }
 0xbcb   : > { %v4735_v38 = vadd.f32 %v4729_v30, %v4672_v36 }
 0xbcc   : > { %v6301_v17 = vpop.f32.mrf.mxu0  ;;  %v5101_v58 = vpop.f32.mrf.mxu1 }
 0xbce   : > { %v4732_v18 = vpop.f32.mrf.mxu0  ;;  %v6349_v2 = vpop.f32.mrf.mxu1 }
 0xbcf   : > { %v6728_v2 = vld [vmem:[%s8113_s12 + $0x8] sm:$0xff]  }
 0xbd0   : > { %v6302_v3 = vpop.f32.mrf.mxu0  ;;  %v5104_v20 = vpop.f32.mrf.mxu1  ;;  %6436 = vmatpush3.bf16.msra.mxu0 %v6728_v2 }
 0xbd1   : > { %6437 = vmatprep.subr.bf16.mxu0 %v8169_v35  ;;  %v6729_v3 = vld [vmem:[%s8113_s12] sm:$0xff]  }
 0xbd2   : > { %v4791_v44 = vpop.f32.mrf.mxu0  ;;  %v6350_v23 = vpop.f32.mrf.mxu1  ;;  %v5561_v20 = vld [vmem:[%s8112_s11] sm:$0x1] }
 0xbd3   : > { %v4797_v40 = vadd.f32 %v4791_v44, %v4735_v38  ;;  %v5668_v35 = vld [vmem:[%s8114_s13] sm:$0x1] }
 0xbd4   : > { %v6309_v22 = vpop.f32.mrf.mxu0  ;;  %v5227_v51 = vpop.f32.mrf.mxu1  ;;  %6438 = vmatpush3.bf16.msra.mxu0 %v6729_v3 }
 0xbd5   : > { %v4859_v39 = vadd.f32 %v4853_v53, %v4797_v40 }
 0xbd6   : > { %v4794_v60 = vpop.f32.mrf.mxu0  ;;  %v6365_v34 = vpop.f32.mrf.mxu1 }
 0xbd8   : > { %v6310_v29 = vpop.f32.mrf.mxu0  ;;  %v5230_v26 = vpop.f32.mrf.mxu1 }
 0xbda   : > { %v4915_v28 = vpop.f32.mrf.mxu0  ;;  %v6366_v50 = vpop.f32.mrf.mxu1 }
 0xbdb   : > { %v4921_v62 = vadd.f32 %v4915_v28, %v4859_v39 }
 0xbdc   : > { %v6325_v59 = vpop.f32.mrf.mxu0  ;;  %v5351_v32 = vpop.f32.mrf.mxu1 }
 0xbdd   : > { %v4983_v1 = vadd.f32 %v4977_v13, %v4921_v62 }
 0xbde   : > { %v4918_v37 = vpop.f32.mrf.mxu0  ;;  %v6381_v14 = vpop.f32.mrf.mxu1 }
 0xbe0   : > { %v6326_v0 = vpop.f32.mrf.mxu0  ;;  %v5354_v27 = vpop.f32.mrf.mxu1 }
 0xbe2   : > { %v5039_v61 = vpop.f32.mrf.mxu0  ;;  %v6382_v33 = vpop.f32.mrf.mxu1 }
 0xbe3   : > { %v5045_v7 = vadd.f32 %v5039_v61, %v4983_v1 }
 0xbe4   : > { %v6341_v16 = vpop.f32.mrf.mxu0  ;;  %v5475_v21 = vpop.f32.mrf.mxu1 }
 0xbe5   : > { %v5107_v6 = vadd.f32 %v5101_v58, %v5045_v7 }
 0xbe6   : > { %v5042_v57 = vpop.f32.mrf.mxu0  ;;  %v6397_v31 = vpop.f32.mrf.mxu1 }
 0xbe8   : > { %v6342_v42 = vpop.f32.mrf.mxu0  ;;  %v5478_v25 = vpop.f32.mrf.mxu1 }
 0xbea   : > { %v5164_v5 = vpop.f32.mrf.mxu0  ;;  %v6398_v63 = vpop.f32.mrf.mxu1 }
 0xbeb   : > { %v5170_v10 = vadd.f32 %v5164_v5, %v5107_v6 }
 0xbec   : > { %v6357_v46 = vpop.f32.mrf.mxu0 }
 0xbed   : > { %v5233_v45 = vadd.f32 %v5227_v51, %v5170_v10 }
 0xbee   : > { %v5167_v4 = vpop.f32.mrf.mxu0 }
 0xbf0   : > { %v6358_v56 = vpop.f32.mrf.mxu0 }
 0xbf2   : > { %v5289_v41 = vpop.f32.mrf.mxu0 }
 0xbf3   : > { %v5295_v47 = vadd.f32 %v5289_v41, %v5233_v45 }
 0xbf4   : > { %v6373_v12 = vpop.f32.mrf.mxu0 }
 0xbf5   : > { %v5357_v55 = vadd.f32 %v5351_v32, %v5295_v47 }
 0xbf6   : > { %v5292_v53 = vpop.f32.mrf.mxu0 }
 0xbf8   : > { %v6374_v49 = vpop.f32.mrf.mxu0 }
 0xbfa   : > { %v5413_v8 = vpop.f32.mrf.mxu0 }
 0xbfb   : > { %v5419_v43 = vadd.f32 %v5413_v8, %v5357_v55 }
 0xbfc   : > { %v6389_v11 = vpop.f32.mrf.mxu0 }
 0xbfd   : > { %v5481_v52 = vadd.f32 %v5475_v21, %v5419_v43 }
 0xbfe   : > { %v5416_v48 = vpop.f32.mrf.mxu0 }
 0xc00   : > { %v6390_v13 = vpop.f32.mrf.mxu0 }
 0xc02   : > { %v5537_v9 = vpop.f32.mrf.mxu0 }
 0xc03   : > { %v5543_v15 = vadd.f32 %v5537_v9, %v5481_v52 }
 0xc04   : > { %v6405_v30 = vpop.f32.mrf.mxu0 }
 0xc05   : > { %v5544_v19 = vmax.f32 %v5543_v15, 0.0 }
 0xc06   : > { %v5540_v17 = vpop.f32.mrf.mxu0 }
 0xc07   : > { %v5545_v58 = vpack.c.bf16 %v5544_v19, %v5544_v19 }
 0xc08   : > { %v6406_v18 = vpop.f32.mrf.mxu0 }
 0xc09   : > { %6424 = vmatmul.mubr.msk.bf16.vlgmr.msra.gmra.mxu1 %vm5607_vm2, %v5545_v58 }
 0xcc9   : > { %v5649_v44 = vpop.f32.mrf.mxu1 }
 0xcca   : > { %v5650_v23 = vadd.f32 %v5649_v44, %v5561_v20 }
 0xccb   : > { %v6425_v22 = vpop.f32.mrf.mxu1 }
 0xccc   : > { %v5655_v51 = vmax.f32 %v5650_v23, 0.0 }
 0xccd   : > { %v5652_v24 = vpop.f32.mrf.mxu1 }
 0xcce   : > { %v5656_v60 = vpack.c.bf16 %v5655_v51, %v5655_v51 }
 0xccf   : > { %v6426_v34 = vpop.f32.mrf.mxu1 }
 0xcd0   : > { %6440 = vmatmul.mubr.msk.bf16.vlgmr.msra.gmra.mxu0 %vm5702_vm11, %v5656_v60 }
 0xd90   : > { %v5744_v29 = vpop.f32.mrf.mxu0 }
 0xd91   : > { %v5745_v26 = vadd.f32 %v5744_v29, %v5668_v35 }
 0xd92   : > { %v6441_v54 = vpop.f32.mrf.mxu0 }
 0xd93   : > { %5751 = vst.msk [vmem:[%s459_s26] sm:$0x1] %vm5750_vm14, %v5745_v26 }
 0xd94   : > { %v5747_v28 = vpop.f32.mrf.mxu0 }
 0xd95   : > { %6748 = shalt.err (!%p6745_p3)
}
 0xd96   : > { %s6749_s18 = scalar_lea.hbm %s8060_s27, 16  ;;  %s6753_s28 = scalar_lea.hbm %s8115_s14, 32 }
 0xd97   : > { %p6750_p4 = scmp.ne.s32.totalorder %s8060_s27, %s6749_s18  ;;  %p6754_p9 = scmp.lt.s32.totalorder %s8060_s27, %s8115_s14 }
 0xd98   : > { %p6755_p10 = scmp.lt.s32.totalorder %s6753_s28, %s6749_s18 }
 0xd99   : > { %p6751_p7 = pnand %p6750_p4, %p6957_p5 }
 0xd9a   : > { %p6756_p11 = por %p6755_p10, %p6754_p9 }
 0xd9b   : > { %p6752_p8 = pneg %p6751_p7 }
 0xd9d   : > { %p6757_p12 = pnand %p6756_p11, %p6752_p8 }
 0xd9f   : > { %6760 = shalt.err (!%p6757_p12)
}
 0xda0   : > { %6444 = dma.vmem_to_hbm [thread:$0]  (%p6957_p5), %s8062_s22, 16, %s8060_s27, %s5753_s15   ;;  %v6442_v50 = vpop.f32.mrf.mxu0 }
 0xda1 PF: > { %p6450_p13 = scmp.ge.s32.totalorder %s6795_s16, 2  ;;  %s5777_s0 = sand.u32 1, %s6783_s29  }
 0xda2   : > { %s5778_s1 = scalar_lea.sflag [#allocation5], %s5777_s0 }
 0xda3   : > { %p6447_p0 = pnand %p6450_p13, %p6961_p6 }
 0xda5   : > { %p6448_p1 = pneg %p6447_p0 }
 0xda7   : > { %6778 = dma.done.wait (%p6448_p1), %s5778_s1, 16  }
 0xda8   : > { %6780 = vsyncadd (%p6448_p1), %s5778_s1, 4294967280  ;;  %s8171_s17 = sld [smem:[#allocation7_spill]]  ;;  %p24_p2 = scmp.ge.s32.totalorder %s6944_s19, 4  }
 0xda9   : > { %s8172_s15 = sld [smem:[#allocation8_spill]]  ;;  %s8173_s29 = smov %s6787_s30 }
 0xdaa   : > { %s8175_s16 = smov %s6944_s19  ;;  %26 = sbr.rel (!%p24_p2) target bundleno = 6 (0x6), region = 161 }
 0xdae   : > { %s8174_s30 = smov %s8171_s17 }
 0xdaf   :  { %5782 = vsyncpa [#allocation5], 1 }
 0xdb0   :  { %5784 = vsyncpa [#allocation5 + $0x1], 1 }

</bundles_post_ra>
